<compile_context>
chip_gen: v5e
topology: v5e:2x2
jax: 0.10.0
libtpu: 0.0.40
codegen_flags: <defaults>
</compile_context>

<pallas_src>
import functools

import numpy as np
import jax
import jax.numpy as jnp
from jax import lax
from jax.experimental import pallas as pl
from jax.experimental.pallas import tpu as pltpu


# ----------------------------------------------------------------------------
# Fused Pallas kernel: whole block, whole batch, one invocation.
# ----------------------------------------------------------------------------
def _basic_block_kernel(x_ref, wb1_ref, b1_ref, wb2_ref, w3_ref, b23_ref,
                        o_ref, xp1_ref, xp2_ref, *, N, T, H, W, Cin, Cm):
    f32 = jnp.float32
    Lin = W * Cin
    Lmid = W * Cm
    M = N * H * T

    def pad_into(xp_ref, interior, lanes):
        # Halo-only zeroing: only the T/H borders are cleared (interior is
        # fully overwritten right after), and this runs once per call.
        xp_ref[:, 0:1, :, :] = jnp.zeros((N, 1, T + 2, lanes), f32)
        xp_ref[:, H + 1:H + 2, :, :] = jnp.zeros((N, 1, T + 2, lanes), f32)
        xp_ref[:, :, 0:1, :] = jnp.zeros((N, H + 2, 1, lanes), f32)
        xp_ref[:, :, T + 1:T + 2, :] = jnp.zeros((N, H + 2, 1, lanes), f32)
        xp_ref[:, 1:H + 1, 1:T + 1, :] = interior

    def conv3x3x3(xp_ref, wb_ref, lanes):
        # xp_ref: (N, H+2, T+2, lanes) zero-padded slab in VMEM scratch
        # wb_ref: (9, lanes, W*Cm) bf16 banded weight (kw taps + W-pad + BN
        #         scale folded in); one wide matmul per (kt, kh) tap.
        acc = jnp.zeros((M, Lmid), f32)
        for kh in range(3):                               # static, unrolled
            for kt in range(3):
                piece = xp_ref[:, kh:kh + H, kt:kt + T, :].reshape(M, lanes)
                band = wb_ref[kt * 3 + kh].astype(f32)    # bf16 -> f32
                acc = acc + jnp.dot(piece, band, preferred_element_type=f32)
        return acc

    # ---- conv1 (3x3x3) + bn1 + relu ------------------------------------------
    pad_into(xp1_ref, x_ref[...], Lin)
    h1 = jnp.maximum(conv3x3x3(xp1_ref, wb1_ref, Lin) + b1_ref[...], 0.0)

    # ---- conv2 (3x3x3) + bn2 -------------------------------------------------
    pad_into(xp2_ref, h1.reshape(N, H, T, Lmid), Lmid)
    out = conv3x3x3(xp2_ref, wb2_ref, Lmid)

    # ---- shortcut: conv3 1x1x1 + bn3 (computed late: short live range) ------
    idn = jnp.dot(x_ref[...].reshape(M, Lin), w3_ref[...].astype(f32),
                  preferred_element_type=f32)

    # ---- add + relu, dense lane-aligned (M, W*Cm) store ----------------------
    o_ref[...] = jnp.maximum(out + idn + b23_ref[...], 0.0).astype(o_ref.dtype)


# ----------------------------------------------------------------------------
# Wrapper-side weight preparation (BN scale folding, banded / block-diag forms)
# ----------------------------------------------------------------------------
def fold_bn(gamma, beta, mean, var, eps=1e-3):
    # eps=1e-3 matches the module's explicit nn.BatchNorm3d(..., eps=0.001).
    scale = gamma / jnp.sqrt(var + eps)
    bias = beta - mean * scale
    return scale, bias


def _banded_conv_weight(w, scale, W):
    """w: (3,3,3,Cin,Cout) DHWIO, scale: (Cout,) -> (9, W*Cin, W*Cout).

    band[kt*3+kh, wp*Cin+c, wv*Cout+o] = w[kt,kh,wp-wv+1,c,o] * scale[o]
    whenever 0 <= wp-wv+1 < 3 (W-direction zero padding implicit), else 0.
    """
    ws = w * scale                                        # fold BN scale
    sel = np.zeros((3, W, W), np.float32)
    for kw in range(3):
        for wv in range(W):
            wp = wv + kw - 1
            if 0 <= wp < W:
                sel[kw, wp, wv] = 1.0
    band = jnp.einsum("kpw,thkco->thpcwo", jnp.asarray(sel), ws,
                      precision=lax.Precision.HIGHEST)
    _, _, _, Cin, Cout = w.shape
    return band.reshape(9, W * Cin, W * Cout)


def _blockdiag_pointwise_weight(w, scale, W):
    """w: (Cin, Cout), scale: (Cout,) -> (W*Cin, W*Cout) block-diagonal."""
    Cin, Cout = w.shape
    ws = w * scale
    blk = jnp.einsum("vw,co->vcwo", jnp.eye(W, dtype=ws.dtype), ws,
                     precision=lax.Precision.HIGHEST)
    return blk.reshape(W * Cin, W * Cout)


# ----------------------------------------------------------------------------
# Forward pass
# ----------------------------------------------------------------------------
def basic_block_forward(x_ncdhw, p):
    """x_ncdhw: (N, Cin, T, H, W) like PyTorch.  Returns (N, Cout, T, H, W)."""
    N, Cin, T, H, W = x_ncdhw.shape
    Cm = p["w1"].shape[-1]                                # num_filters
    Lin, Lmid = W * Cin, W * Cm
    M = N * H * T

    # lane-dense (N, H, T, W*C) row order: T is the sublane-internal axis so
    # the +/-1 kt shifts of the padded slab stay inside one 8-sublane tile.
    x = jnp.transpose(x_ncdhw, (0, 3, 2, 4, 1)).reshape(N, H, T, Lin)

    # fold BN scales into weights, merge bn2+bn3 biases, store weights in bf16
    wb1 = _banded_conv_weight(p["w1"], p["s1"], W).astype(jnp.bfloat16)
    wb2 = _banded_conv_weight(p["w2"], p["s2"], W).astype(jnp.bfloat16)
    w3b = _blockdiag_pointwise_weight(p["w3"], p["s3"], W).astype(jnp.bfloat16)
    b1t = jnp.tile(p["b1"], W).reshape(1, Lmid)
    b23t = jnp.tile(p["b2"] + p["b3"], W).reshape(1, Lmid)

    kernel = functools.partial(_basic_block_kernel,
                               N=N, T=T, H=H, W=W, Cin=Cin, Cm=Cm)
    out = pl.pallas_call(
        kernel,
        out_shape=jax.ShapeDtypeStruct((M, Lmid), x_ncdhw.dtype),
        grid=(1,),
        in_specs=[
            pl.BlockSpec((N, H, T, Lin), lambda i: (0, 0, 0, 0)),
            pl.BlockSpec((9, Lin, Lmid), lambda i: (0, 0, 0)),
            pl.BlockSpec((1, Lmid), lambda i: (0, 0)),
            pl.BlockSpec((9, Lmid, Lmid), lambda i: (0, 0, 0)),
            pl.BlockSpec((Lin, Lmid), lambda i: (0, 0)),
            pl.BlockSpec((1, Lmid), lambda i: (0, 0)),
        ],
        out_specs=pl.BlockSpec((M, Lmid), lambda i: (0, 0)),
        scratch_shapes=[
            pltpu.VMEM((N, H + 2, T + 2, Lin), jnp.float32),   # padded x slab
            pltpu.VMEM((N, H + 2, T + 2, Lmid), jnp.float32),  # padded h1 slab
        ],
        compiler_params=pltpu.CompilerParams(
            dimension_semantics=("arbitrary",)),
    )(x, wb1, b1t, wb2, w3b, b23t)

    out = out.reshape(N, H, T, W, Cm)
    return jnp.transpose(out, (0, 4, 2, 1, 3))            # back to NCDHW


# ----------------------------------------------------------------------------
# Parameters
# ----------------------------------------------------------------------------
def make_params(key, input_filters, num_filters):
    ks = jax.random.split(key, 6)
    p = {}
    # conv weights stored channels-last: (kt, kh, kw, Cin, Cout) / (Cin, Cout)
    p["w1"] = jax.random.normal(ks[0], (3, 3, 3, input_filters, num_filters),
                                jnp.float32) * 0.08
    p["w2"] = jax.random.normal(ks[1], (3, 3, 3, num_filters, num_filters),
                                jnp.float32) * 0.05
    p["w3"] = jax.random.normal(ks[2], (input_filters, num_filters),
                                jnp.float32) * 0.1

    def bn(k, c):
        k1, k2, k3, k4 = jax.random.split(k, 4)
        gamma = 1.0 + 0.1 * jax.random.normal(k1, (c,), jnp.float32)
        beta = 0.1 * jax.random.normal(k2, (c,), jnp.float32)
        mean = 0.1 * jax.random.normal(k3, (c,), jnp.float32)
        var = jax.random.uniform(k4, (c,), jnp.float32, 0.5, 1.5)
        return fold_bn(gamma, beta, mean, var)

    p["s1"], p["b1"] = bn(ks[3], num_filters)
    p["s2"], p["b2"] = bn(ks[4], num_filters)
    p["s3"], p["b3"] = bn(ks[5], num_filters)
    return p


# ----------------------------------------------------------------------------
# Pure-JAX reference (f32 weights, HIGHEST precision) for correctness check
# ----------------------------------------------------------------------------
def basic_block_reference(x_ncdhw, p):
    x = jnp.transpose(x_ncdhw, (0, 2, 3, 4, 1))           # NDHWC
    dn = ("NDHWC", "DHWIO", "NDHWC")
    h1 = lax.conv_general_dilated(x, p["w1"], (1, 1, 1),
                                  ((1, 1), (1, 1), (1, 1)),
                                  dimension_numbers=dn,
                                  precision=lax.Precision.HIGHEST)
    h1 = jnp.maximum(h1 * p["s1"] + p["b1"], 0.0)
    h2 = lax.conv_general_dilated(h1, p["w2"], (1, 1, 1),
                                  ((1, 1), (1, 1), (1, 1)),
                                  dimension_numbers=dn,
                                  precision=lax.Precision.HIGHEST)
    h2 = h2 * p["s2"] + p["b2"]
    idn = jnp.einsum("nthwc,co->nthwo", x, p["w3"],
                     precision=lax.Precision.HIGHEST) * p["s3"] + p["b3"]
    out = jnp.maximum(h2 + idn, 0.0)
    return jnp.transpose(out, (0, 4, 1, 2, 3))


# ----------------------------------------------------------------------------
if __name__ == "__main__":
    # Module config: BasicBlock(input_filters=8, num_filters=16, base_filters=8,
    #                           down_sampling=False, block_type='3d',
    #                           is_real_3d=True, with_bn=True)
    # (base_filters is not used by BasicBlock's conv shapes.)
    input_filters, num_filters = 8, 16
    N, T, H, W = 2, 4, 8, 8          # W * num_filters = 128 -> lane-dense out

    key = jax.random.PRNGKey(0)
    kx, kp = jax.random.split(key)
    x = jax.random.normal(kx, (N, input_filters, T, H, W), jnp.float32)
    params = make_params(kp, input_filters, num_filters)

    out = basic_block_forward(x, params)
    out = jax.block_until_ready(out)

    ref = basic_block_reference(x, params)
    assert out.shape == (N, num_filters, T, H, W)
    # Tolerance widened (1e-3 -> 2e-2) because conv/BN weights are stored in
    # bf16 (per performance review); expected rounding error is <~1e-2.
    assert jnp.allclose(out, ref, rtol=2e-2, atol=2e-2), "mismatch vs reference"

    print("KERNEL_OK")
</pallas_src>

<mosaic_0001>
module attributes {stable_mosaic.version = 11 : i64} {
  func.func @_basic_block_kernel(%arg0: i32, %arg1: memref<2x8x4x64xf32, #tpu.memory_space<vmem>>, %arg2: memref<9x64x128xbf16, #tpu.memory_space<vmem>>, %arg3: memref<1x128xf32, #tpu.memory_space<vmem>>, %arg4: memref<9x128x128xbf16, #tpu.memory_space<vmem>>, %arg5: memref<64x128xbf16, #tpu.memory_space<vmem>>, %arg6: memref<1x128xf32, #tpu.memory_space<vmem>>, %arg7: memref<64x128xf32, #tpu.memory_space<vmem>>, %arg8: memref<2x10x6x64xf32, #tpu.memory_space<vmem>>, %arg9: memref<2x10x6x128xf32, #tpu.memory_space<vmem>>) attributes {dimension_semantics = [#tpu.dimension_semantics<arbitrary>], iteration_bounds = array<i64: 1>, scalar_prefetch = 0 : i64, scratch_operands = 2 : i64, tpu.core_type = #tpu.core_type<tc>, window_params = [{pipeline_mode = #tpu.pipeline_mode<synchronous>, transform_indices = @transform_0, window_bounds = array<i64: 2, 8, 4, 64>}, {pipeline_mode = #tpu.pipeline_mode<synchronous>, transform_indices = @transform_1, window_bounds = array<i64: 9, 64, 128>}, {pipeline_mode = #tpu.pipeline_mode<synchronous>, transform_indices = @transform_2, window_bounds = array<i64: 1, 128>}, {pipeline_mode = #tpu.pipeline_mode<synchronous>, transform_indices = @transform_3, window_bounds = array<i64: 9, 128, 128>}, {pipeline_mode = #tpu.pipeline_mode<synchronous>, transform_indices = @transform_4, window_bounds = array<i64: 64, 128>}, {pipeline_mode = #tpu.pipeline_mode<synchronous>, transform_indices = @transform_5, window_bounds = array<i64: 1, 128>}, {pipeline_mode = #tpu.pipeline_mode<synchronous>, transform_indices = @transform_6, window_bounds = array<i64: 64, 128>}]} {
    %c0 = arith.constant 0 : index
    %c0_0 = arith.constant 0 : index
    %c0_1 = arith.constant 0 : index
    %c0_2 = arith.constant 0 : index
    %0 = vector.load %arg1[%c0, %c0_0, %c0_1, %c0_2] : memref<2x8x4x64xf32, #tpu.memory_space<vmem>>, vector<2x8x4x64xf32>
    %cst = arith.constant 0.000000e+00 : f32
    %1 = vector.broadcast %cst : f32 to vector<2x1x6x64xf32>
    %c0_3 = arith.constant 0 : index
    %c0_4 = arith.constant 0 : index
    %c0_5 = arith.constant 0 : index
    %c0_6 = arith.constant 0 : index
    %2 = vector.load %arg8[%c0_3, %c0_4, %c0_5, %c0_6] : memref<2x10x6x64xf32, #tpu.memory_space<vmem>>, vector<2x1x6x64xf32>
    tpu.vector_store %arg8[%c0_3, %c0_4, %c0_5, %c0_6], %1 {strides = array<i32>} : memref<2x10x6x64xf32, #tpu.memory_space<vmem>>, vector<2x1x6x64xf32>,
    %cst_7 = arith.constant 0.000000e+00 : f32
    %3 = vector.broadcast %cst_7 : f32 to vector<2x1x6x64xf32>
    %c0_8 = arith.constant 0 : index
    %c9 = arith.constant 9 : index
    %c0_9 = arith.constant 0 : index
    %c0_10 = arith.constant 0 : index
    %4 = vector.load %arg8[%c0_8, %c9, %c0_9, %c0_10] : memref<2x10x6x64xf32, #tpu.memory_space<vmem>>, vector<2x1x6x64xf32>
    tpu.vector_store %arg8[%c0_8, %c9, %c0_9, %c0_10], %3 {strides = array<i32>} : memref<2x10x6x64xf32, #tpu.memory_space<vmem>>, vector<2x1x6x64xf32>,
    %cst_11 = arith.constant 0.000000e+00 : f32
    %5 = vector.broadcast %cst_11 : f32 to vector<2x10x1x64xf32>
    %c0_12 = arith.constant 0 : index
    %c0_13 = arith.constant 0 : index
    %c0_14 = arith.constant 0 : index
    %c0_15 = arith.constant 0 : index
    %6 = vector.load %arg8[%c0_12, %c0_13, %c0_14, %c0_15] : memref<2x10x6x64xf32, #tpu.memory_space<vmem>>, vector<2x10x1x64xf32>
    tpu.vector_store %arg8[%c0_12, %c0_13, %c0_14, %c0_15], %5 {strides = array<i32>} : memref<2x10x6x64xf32, #tpu.memory_space<vmem>>, vector<2x10x1x64xf32>,
    %cst_16 = arith.constant 0.000000e+00 : f32
    %7 = vector.broadcast %cst_16 : f32 to vector<2x10x1x64xf32>
    %c0_17 = arith.constant 0 : index
    %c0_18 = arith.constant 0 : index
    %c5 = arith.constant 5 : index
    %c0_19 = arith.constant 0 : index
    %8 = vector.load %arg8[%c0_17, %c0_18, %c5, %c0_19] : memref<2x10x6x64xf32, #tpu.memory_space<vmem>>, vector<2x10x1x64xf32>
    tpu.vector_store %arg8[%c0_17, %c0_18, %c5, %c0_19], %7 {strides = array<i32>} : memref<2x10x6x64xf32, #tpu.memory_space<vmem>>, vector<2x10x1x64xf32>,
    %c0_20 = arith.constant 0 : index
    %c1 = arith.constant 1 : index
    %c1_21 = arith.constant 1 : index
    %c0_22 = arith.constant 0 : index
    %9 = vector.load %arg8[%c0_20, %c1, %c1_21, %c0_22] : memref<2x10x6x64xf32, #tpu.memory_space<vmem>>, vector<2x8x4x64xf32>
    tpu.vector_store %arg8[%c0_20, %c1, %c1_21, %c0_22], %0 {strides = array<i32>} : memref<2x10x6x64xf32, #tpu.memory_space<vmem>>, vector<2x8x4x64xf32>,
    %cst_23 = arith.constant 0.000000e+00 : f32
    %10 = vector.broadcast %cst_23 : f32 to vector<64x128xf32>
    %c0_24 = arith.constant 0 : index
    %c0_25 = arith.constant 0 : index
    %c0_26 = arith.constant 0 : index
    %c0_27 = arith.constant 0 : index
    %11 = vector.load %arg8[%c0_24, %c0_25, %c0_26, %c0_27] : memref<2x10x6x64xf32, #tpu.memory_space<vmem>>, vector<2x8x4x64xf32>
    %12 = vector.shape_cast %11 : vector<2x8x4x64xf32> to vector<64x64xf32>
    %c0_28 = arith.constant 0 : index
    %c0_29 = arith.constant 0 : index
    %c0_30 = arith.constant 0 : index
    %13 = vector.load %arg2[%c0_28, %c0_29, %c0_30] : memref<9x64x128xbf16, #tpu.memory_space<vmem>>, vector<1x64x128xbf16>
    %14 = vector.shape_cast %13 : vector<1x64x128xbf16> to vector<64x128xbf16>
    %15 = arith.extf %14 : vector<64x128xbf16> to vector<64x128xf32>
    %cst_31 = arith.constant dense<0.000000e+00> : vector<64x128xf32>
    %16 = tpu.matmul %12, %15, %cst_31 {dimension_numbers = #tpu.dot_dimension_numbers<[1], [0], [0], [1], [0, 0, 1, 1], [], []>} : vector<64x64xf32>, vector<64x128xf32>, vector<64x128xf32> -> vector<64x128xf32>
    %17 = arith.addf %10, %16 : vector<64x128xf32>
    %c0_32 = arith.constant 0 : index
    %c0_33 = arith.constant 0 : index
    %c1_34 = arith.constant 1 : index
    %c0_35 = arith.constant 0 : index
    %18 = vector.load %arg8[%c0_32, %c0_33, %c1_34, %c0_35] : memref<2x10x6x64xf32, #tpu.memory_space<vmem>>, vector<2x8x4x64xf32>
    %19 = vector.shape_cast %18 : vector<2x8x4x64xf32> to vector<64x64xf32>
    %c3 = arith.constant 3 : index
    %c0_36 = arith.constant 0 : index
    %c0_37 = arith.constant 0 : index
    %20 = vector.load %arg2[%c3, %c0_36, %c0_37] : memref<9x64x128xbf16, #tpu.memory_space<vmem>>, vector<1x64x128xbf16>
    %21 = vector.shape_cast %20 : vector<1x64x128xbf16> to vector<64x128xbf16>
    %22 = arith.extf %21 : vector<64x128xbf16> to vector<64x128xf32>
    %cst_38 = arith.constant dense<0.000000e+00> : vector<64x128xf32>
    %23 = tpu.matmul %19, %22, %cst_38 {dimension_numbers = #tpu.dot_dimension_numbers<[1], [0], [0], [1], [0, 0, 1, 1], [], []>} : vector<64x64xf32>, vector<64x128xf32>, vector<64x128xf32> -> vector<64x128xf32>
    %24 = arith.addf %17, %23 : vector<64x128xf32>
    %c0_39 = arith.constant 0 : index
    %c0_40 = arith.constant 0 : index
    %c2 = arith.constant 2 : index
    %c0_41 = arith.constant 0 : index
    %25 = vector.load %arg8[%c0_39, %c0_40, %c2, %c0_41] : memref<2x10x6x64xf32, #tpu.memory_space<vmem>>, vector<2x8x4x64xf32>
    %26 = vector.shape_cast %25 : vector<2x8x4x64xf32> to vector<64x64xf32>
    %c6 = arith.constant 6 : index
    %c0_42 = arith.constant 0 : index
    %c0_43 = arith.constant 0 : index
    %27 = vector.load %arg2[%c6, %c0_42, %c0_43] : memref<9x64x128xbf16, #tpu.memory_space<vmem>>, vector<1x64x128xbf16>
    %28 = vector.shape_cast %27 : vector<1x64x128xbf16> to vector<64x128xbf16>
    %29 = arith.extf %28 : vector<64x128xbf16> to vector<64x128xf32>
    %cst_44 = arith.constant dense<0.000000e+00> : vector<64x128xf32>
    %30 = tpu.matmul %26, %29, %cst_44 {dimension_numbers = #tpu.dot_dimension_numbers<[1], [0], [0], [1], [0, 0, 1, 1], [], []>} : vector<64x64xf32>, vector<64x128xf32>, vector<64x128xf32> -> vector<64x128xf32>
    %31 = arith.addf %24, %30 : vector<64x128xf32>
    %c0_45 = arith.constant 0 : index
    %c1_46 = arith.constant 1 : index
    %c0_47 = arith.constant 0 : index
    %c0_48 = arith.constant 0 : index
    %32 = vector.load %arg8[%c0_45, %c1_46, %c0_47, %c0_48] : memref<2x10x6x64xf32, #tpu.memory_space<vmem>>, vector<2x8x4x64xf32>
    %33 = vector.shape_cast %32 : vector<2x8x4x64xf32> to vector<64x64xf32>
    %c1_49 = arith.constant 1 : index
    %c0_50 = arith.constant 0 : index
    %c0_51 = arith.constant 0 : index
    %34 = vector.load %arg2[%c1_49, %c0_50, %c0_51] : memref<9x64x128xbf16, #tpu.memory_space<vmem>>, vector<1x64x128xbf16>
    %35 = vector.shape_cast %34 : vector<1x64x128xbf16> to vector<64x128xbf16>
    %36 = arith.extf %35 : vector<64x128xbf16> to vector<64x128xf32>
    %cst_52 = arith.constant dense<0.000000e+00> : vector<64x128xf32>
    %37 = tpu.matmul %33, %36, %cst_52 {dimension_numbers = #tpu.dot_dimension_numbers<[1], [0], [0], [1], [0, 0, 1, 1], [], []>} : vector<64x64xf32>, vector<64x128xf32>, vector<64x128xf32> -> vector<64x128xf32>
    %38 = arith.addf %31, %37 : vector<64x128xf32>
    %c0_53 = arith.constant 0 : index
    %c1_54 = arith.constant 1 : index
    %c1_55 = arith.constant 1 : index
    %c0_56 = arith.constant 0 : index
    %39 = vector.load %arg8[%c0_53, %c1_54, %c1_55, %c0_56] : memref<2x10x6x64xf32, #tpu.memory_space<vmem>>, vector<2x8x4x64xf32>
    %40 = vector.shape_cast %39 : vector<2x8x4x64xf32> to vector<64x64xf32>
    %c4 = arith.constant 4 : index
    %c0_57 = arith.constant 0 : index
    %c0_58 = arith.constant 0 : index
    %41 = vector.load %arg2[%c4, %c0_57, %c0_58] : memref<9x64x128xbf16, #tpu.memory_space<vmem>>, vector<1x64x128xbf16>
    %42 = vector.shape_cast %41 : vector<1x64x128xbf16> to vector<64x128xbf16>
    %43 = arith.extf %42 : vector<64x128xbf16> to vector<64x128xf32>
    %cst_59 = arith.constant dense<0.000000e+00> : vector<64x128xf32>
    %44 = tpu.matmul %40, %43, %cst_59 {dimension_numbers = #tpu.dot_dimension_numbers<[1], [0], [0], [1], [0, 0, 1, 1], [], []>} : vector<64x64xf32>, vector<64x128xf32>, vector<64x128xf32> -> vector<64x128xf32>
    %45 = arith.addf %38, %44 : vector<64x128xf32>
    %c0_60 = arith.constant 0 : index
    %c1_61 = arith.constant 1 : index
    %c2_62 = arith.constant 2 : index
    %c0_63 = arith.constant 0 : index
    %46 = vector.load %arg8[%c0_60, %c1_61, %c2_62, %c0_63] : memref<2x10x6x64xf32, #tpu.memory_space<vmem>>, vector<2x8x4x64xf32>
    %47 = vector.shape_cast %46 : vector<2x8x4x64xf32> to vector<64x64xf32>
    %c7 = arith.constant 7 : index
    %c0_64 = arith.constant 0 : index
    %c0_65 = arith.constant 0 : index
    %48 = vector.load %arg2[%c7, %c0_64, %c0_65] : memref<9x64x128xbf16, #tpu.memory_space<vmem>>, vector<1x64x128xbf16>
    %49 = vector.shape_cast %48 : vector<1x64x128xbf16> to vector<64x128xbf16>
    %50 = arith.extf %49 : vector<64x128xbf16> to vector<64x128xf32>
    %cst_66 = arith.constant dense<0.000000e+00> : vector<64x128xf32>
    %51 = tpu.matmul %47, %50, %cst_66 {dimension_numbers = #tpu.dot_dimension_numbers<[1], [0], [0], [1], [0, 0, 1, 1], [], []>} : vector<64x64xf32>, vector<64x128xf32>, vector<64x128xf32> -> vector<64x128xf32>
    %52 = arith.addf %45, %51 : vector<64x128xf32>
    %c0_67 = arith.constant 0 : index
    %c2_68 = arith.constant 2 : index
    %c0_69 = arith.constant 0 : index
    %c0_70 = arith.constant 0 : index
    %53 = vector.load %arg8[%c0_67, %c2_68, %c0_69, %c0_70] : memref<2x10x6x64xf32, #tpu.memory_space<vmem>>, vector<2x8x4x64xf32>
    %54 = vector.shape_cast %53 : vector<2x8x4x64xf32> to vector<64x64xf32>
    %c2_71 = arith.constant 2 : index
    %c0_72 = arith.constant 0 : index
    %c0_73 = arith.constant 0 : index
    %55 = vector.load %arg2[%c2_71, %c0_72, %c0_73] : memref<9x64x128xbf16, #tpu.memory_space<vmem>>, vector<1x64x128xbf16>
    %56 = vector.shape_cast %55 : vector<1x64x128xbf16> to vector<64x128xbf16>
    %57 = arith.extf %56 : vector<64x128xbf16> to vector<64x128xf32>
    %cst_74 = arith.constant dense<0.000000e+00> : vector<64x128xf32>
    %58 = tpu.matmul %54, %57, %cst_74 {dimension_numbers = #tpu.dot_dimension_numbers<[1], [0], [0], [1], [0, 0, 1, 1], [], []>} : vector<64x64xf32>, vector<64x128xf32>, vector<64x128xf32> -> vector<64x128xf32>
    %59 = arith.addf %52, %58 : vector<64x128xf32>
    %c0_75 = arith.constant 0 : index
    %c2_76 = arith.constant 2 : index
    %c1_77 = arith.constant 1 : index
    %c0_78 = arith.constant 0 : index
    %60 = vector.load %arg8[%c0_75, %c2_76, %c1_77, %c0_78] : memref<2x10x6x64xf32, #tpu.memory_space<vmem>>, vector<2x8x4x64xf32>
    %61 = vector.shape_cast %60 : vector<2x8x4x64xf32> to vector<64x64xf32>
    %c5_79 = arith.constant 5 : index
    %c0_80 = arith.constant 0 : index
    %c0_81 = arith.constant 0 : index
    %62 = vector.load %arg2[%c5_79, %c0_80, %c0_81] : memref<9x64x128xbf16, #tpu.memory_space<vmem>>, vector<1x64x128xbf16>
    %63 = vector.shape_cast %62 : vector<1x64x128xbf16> to vector<64x128xbf16>
    %64 = arith.extf %63 : vector<64x128xbf16> to vector<64x128xf32>
    %cst_82 = arith.constant dense<0.000000e+00> : vector<64x128xf32>
    %65 = tpu.matmul %61, %64, %cst_82 {dimension_numbers = #tpu.dot_dimension_numbers<[1], [0], [0], [1], [0, 0, 1, 1], [], []>} : vector<64x64xf32>, vector<64x128xf32>, vector<64x128xf32> -> vector<64x128xf32>
    %66 = arith.addf %59, %65 : vector<64x128xf32>
    %c0_83 = arith.constant 0 : index
    %c2_84 = arith.constant 2 : index
    %c2_85 = arith.constant 2 : index
    %c0_86 = arith.constant 0 : index
    %67 = vector.load %arg8[%c0_83, %c2_84, %c2_85, %c0_86] : memref<2x10x6x64xf32, #tpu.memory_space<vmem>>, vector<2x8x4x64xf32>
    %68 = vector.shape_cast %67 : vector<2x8x4x64xf32> to vector<64x64xf32>
    %c8 = arith.constant 8 : index
    %c0_87 = arith.constant 0 : index
    %c0_88 = arith.constant 0 : index
    %69 = vector.load %arg2[%c8, %c0_87, %c0_88] : memref<9x64x128xbf16, #tpu.memory_space<vmem>>, vector<1x64x128xbf16>
    %70 = vector.shape_cast %69 : vector<1x64x128xbf16> to vector<64x128xbf16>
    %71 = arith.extf %70 : vector<64x128xbf16> to vector<64x128xf32>
    %cst_89 = arith.constant dense<0.000000e+00> : vector<64x128xf32>
    %72 = tpu.matmul %68, %71, %cst_89 {dimension_numbers = #tpu.dot_dimension_numbers<[1], [0], [0], [1], [0, 0, 1, 1], [], []>} : vector<64x64xf32>, vector<64x128xf32>, vector<64x128xf32> -> vector<64x128xf32>
    %73 = arith.addf %66, %72 : vector<64x128xf32>
    %c0_90 = arith.constant 0 : index
    %c0_91 = arith.constant 0 : index
    %74 = vector.load %arg3[%c0_90, %c0_91] : memref<1x128xf32, #tpu.memory_space<vmem>>, vector<1x128xf32>
    %75 = vector.broadcast %74 : vector<1x128xf32> to vector<64x128xf32>
    %76 = arith.addf %73, %75 : vector<64x128xf32>
    %cst_92 = arith.constant 0.000000e+00 : f32
    %77 = vector.broadcast %cst_92 : f32 to vector<64x128xf32>
    %78 = arith.maximumf %76, %77 : vector<64x128xf32>
    %79 = vector.shape_cast %78 : vector<64x128xf32> to vector<2x8x4x128xf32>
    %cst_93 = arith.constant 0.000000e+00 : f32
    %80 = vector.broadcast %cst_93 : f32 to vector<2x1x6x128xf32>
    %c0_94 = arith.constant 0 : index
    %c0_95 = arith.constant 0 : index
    %c0_96 = arith.constant 0 : index
    %c0_97 = arith.constant 0 : index
    %81 = vector.load %arg9[%c0_94, %c0_95, %c0_96, %c0_97] : memref<2x10x6x128xf32, #tpu.memory_space<vmem>>, vector<2x1x6x128xf32>
    tpu.vector_store %arg9[%c0_94, %c0_95, %c0_96, %c0_97], %80 {strides = array<i32>} : memref<2x10x6x128xf32, #tpu.memory_space<vmem>>, vector<2x1x6x128xf32>,
    %cst_98 = arith.constant 0.000000e+00 : f32
    %82 = vector.broadcast %cst_98 : f32 to vector<2x1x6x128xf32>
    %c0_99 = arith.constant 0 : index
    %c9_100 = arith.constant 9 : index
    %c0_101 = arith.constant 0 : index
    %c0_102 = arith.constant 0 : index
    %83 = vector.load %arg9[%c0_99, %c9_100, %c0_101, %c0_102] : memref<2x10x6x128xf32, #tpu.memory_space<vmem>>, vector<2x1x6x128xf32>
    tpu.vector_store %arg9[%c0_99, %c9_100, %c0_101, %c0_102], %82 {strides = array<i32>} : memref<2x10x6x128xf32, #tpu.memory_space<vmem>>, vector<2x1x6x128xf32>,
    %cst_103 = arith.constant 0.000000e+00 : f32
    %84 = vector.broadcast %cst_103 : f32 to vector<2x10x1x128xf32>
    %c0_104 = arith.constant 0 : index
    %c0_105 = arith.constant 0 : index
    %c0_106 = arith.constant 0 : index
    %c0_107 = arith.constant 0 : index
    %85 = vector.load %arg9[%c0_104, %c0_105, %c0_106, %c0_107] : memref<2x10x6x128xf32, #tpu.memory_space<vmem>>, vector<2x10x1x128xf32>
    tpu.vector_store %arg9[%c0_104, %c0_105, %c0_106, %c0_107], %84 {strides = array<i32>} : memref<2x10x6x128xf32, #tpu.memory_space<vmem>>, vector<2x10x1x128xf32>,
    %cst_108 = arith.constant 0.000000e+00 : f32
    %86 = vector.broadcast %cst_108 : f32 to vector<2x10x1x128xf32>
    %c0_109 = arith.constant 0 : index
    %c0_110 = arith.constant 0 : index
    %c5_111 = arith.constant 5 : index
    %c0_112 = arith.constant 0 : index
    %87 = vector.load %arg9[%c0_109, %c0_110, %c5_111, %c0_112] : memref<2x10x6x128xf32, #tpu.memory_space<vmem>>, vector<2x10x1x128xf32>
    tpu.vector_store %arg9[%c0_109, %c0_110, %c5_111, %c0_112], %86 {strides = array<i32>} : memref<2x10x6x128xf32, #tpu.memory_space<vmem>>, vector<2x10x1x128xf32>,
    %c0_113 = arith.constant 0 : index
    %c1_114 = arith.constant 1 : index
    %c1_115 = arith.constant 1 : index
    %c0_116 = arith.constant 0 : index
    %88 = vector.load %arg9[%c0_113, %c1_114, %c1_115, %c0_116] : memref<2x10x6x128xf32, #tpu.memory_space<vmem>>, vector<2x8x4x128xf32>
    tpu.vector_store %arg9[%c0_113, %c1_114, %c1_115, %c0_116], %79 {strides = array<i32>} : memref<2x10x6x128xf32, #tpu.memory_space<vmem>>, vector<2x8x4x128xf32>,
    %cst_117 = arith.constant 0.000000e+00 : f32
    %89 = vector.broadcast %cst_117 : f32 to vector<64x128xf32>
    %c0_118 = arith.constant 0 : index
    %c0_119 = arith.constant 0 : index
    %c0_120 = arith.constant 0 : index
    %c0_121 = arith.constant 0 : index
    %90 = vector.load %arg9[%c0_118, %c0_119, %c0_120, %c0_121] : memref<2x10x6x128xf32, #tpu.memory_space<vmem>>, vector<2x8x4x128xf32>
    %91 = vector.shape_cast %90 : vector<2x8x4x128xf32> to vector<64x128xf32>
    %c0_122 = arith.constant 0 : index
    %c0_123 = arith.constant 0 : index
    %c0_124 = arith.constant 0 : index
    %92 = vector.load %arg4[%c0_122, %c0_123, %c0_124] : memref<9x128x128xbf16, #tpu.memory_space<vmem>>, vector<1x128x128xbf16>
    %93 = vector.shape_cast %92 : vector<1x128x128xbf16> to vector<128x128xbf16>
    %94 = arith.extf %93 : vector<128x128xbf16> to vector<128x128xf32>
    %cst_125 = arith.constant dense<0.000000e+00> : vector<64x128xf32>
    %95 = tpu.matmul %91, %94, %cst_125 {dimension_numbers = #tpu.dot_dimension_numbers<[1], [0], [0], [1], [0, 0, 1, 1], [], []>} : vector<64x128xf32>, vector<128x128xf32>, vector<64x128xf32> -> vector<64x128xf32>
    %96 = arith.addf %89, %95 : vector<64x128xf32>
    %c0_126 = arith.constant 0 : index
    %c0_127 = arith.constant 0 : index
    %c1_128 = arith.constant 1 : index
    %c0_129 = arith.constant 0 : index
    %97 = vector.load %arg9[%c0_126, %c0_127, %c1_128, %c0_129] : memref<2x10x6x128xf32, #tpu.memory_space<vmem>>, vector<2x8x4x128xf32>
    %98 = vector.shape_cast %97 : vector<2x8x4x128xf32> to vector<64x128xf32>
    %c3_130 = arith.constant 3 : index
    %c0_131 = arith.constant 0 : index
    %c0_132 = arith.constant 0 : index
    %99 = vector.load %arg4[%c3_130, %c0_131, %c0_132] : memref<9x128x128xbf16, #tpu.memory_space<vmem>>, vector<1x128x128xbf16>
    %100 = vector.shape_cast %99 : vector<1x128x128xbf16> to vector<128x128xbf16>
    %101 = arith.extf %100 : vector<128x128xbf16> to vector<128x128xf32>
    %cst_133 = arith.constant dense<0.000000e+00> : vector<64x128xf32>
    %102 = tpu.matmul %98, %101, %cst_133 {dimension_numbers = #tpu.dot_dimension_numbers<[1], [0], [0], [1], [0, 0, 1, 1], [], []>} : vector<64x128xf32>, vector<128x128xf32>, vector<64x128xf32> -> vector<64x128xf32>
    %103 = arith.addf %96, %102 : vector<64x128xf32>
    %c0_134 = arith.constant 0 : index
    %c0_135 = arith.constant 0 : index
    %c2_136 = arith.constant 2 : index
    %c0_137 = arith.constant 0 : index
    %104 = vector.load %arg9[%c0_134, %c0_135, %c2_136, %c0_137] : memref<2x10x6x128xf32, #tpu.memory_space<vmem>>, vector<2x8x4x128xf32>
    %105 = vector.shape_cast %104 : vector<2x8x4x128xf32> to vector<64x128xf32>
    %c6_138 = arith.constant 6 : index
    %c0_139 = arith.constant 0 : index
    %c0_140 = arith.constant 0 : index
    %106 = vector.load %arg4[%c6_138, %c0_139, %c0_140] : memref<9x128x128xbf16, #tpu.memory_space<vmem>>, vector<1x128x128xbf16>
    %107 = vector.shape_cast %106 : vector<1x128x128xbf16> to vector<128x128xbf16>
    %108 = arith.extf %107 : vector<128x128xbf16> to vector<128x128xf32>
    %cst_141 = arith.constant dense<0.000000e+00> : vector<64x128xf32>
    %109 = tpu.matmul %105, %108, %cst_141 {dimension_numbers = #tpu.dot_dimension_numbers<[1], [0], [0], [1], [0, 0, 1, 1], [], []>} : vector<64x128xf32>, vector<128x128xf32>, vector<64x128xf32> -> vector<64x128xf32>
    %110 = arith.addf %103, %109 : vector<64x128xf32>
    %c0_142 = arith.constant 0 : index
    %c1_143 = arith.constant 1 : index
    %c0_144 = arith.constant 0 : index
    %c0_145 = arith.constant 0 : index
    %111 = vector.load %arg9[%c0_142, %c1_143, %c0_144, %c0_145] : memref<2x10x6x128xf32, #tpu.memory_space<vmem>>, vector<2x8x4x128xf32>
    %112 = vector.shape_cast %111 : vector<2x8x4x128xf32> to vector<64x128xf32>
    %c1_146 = arith.constant 1 : index
    %c0_147 = arith.constant 0 : index
    %c0_148 = arith.constant 0 : index
    %113 = vector.load %arg4[%c1_146, %c0_147, %c0_148] : memref<9x128x128xbf16, #tpu.memory_space<vmem>>, vector<1x128x128xbf16>
    %114 = vector.shape_cast %113 : vector<1x128x128xbf16> to vector<128x128xbf16>
    %115 = arith.extf %114 : vector<128x128xbf16> to vector<128x128xf32>
    %cst_149 = arith.constant dense<0.000000e+00> : vector<64x128xf32>
    %116 = tpu.matmul %112, %115, %cst_149 {dimension_numbers = #tpu.dot_dimension_numbers<[1], [0], [0], [1], [0, 0, 1, 1], [], []>} : vector<64x128xf32>, vector<128x128xf32>, vector<64x128xf32> -> vector<64x128xf32>
    %117 = arith.addf %110, %116 : vector<64x128xf32>
    %c0_150 = arith.constant 0 : index
    %c1_151 = arith.constant 1 : index
    %c1_152 = arith.constant 1 : index
    %c0_153 = arith.constant 0 : index
    %118 = vector.load %arg9[%c0_150, %c1_151, %c1_152, %c0_153] : memref<2x10x6x128xf32, #tpu.memory_space<vmem>>, vector<2x8x4x128xf32>
    %119 = vector.shape_cast %118 : vector<2x8x4x128xf32> to vector<64x128xf32>
    %c4_154 = arith.constant 4 : index
    %c0_155 = arith.constant 0 : index
    %c0_156 = arith.constant 0 : index
    %120 = vector.load %arg4[%c4_154, %c0_155, %c0_156] : memref<9x128x128xbf16, #tpu.memory_space<vmem>>, vector<1x128x128xbf16>
    %121 = vector.shape_cast %120 : vector<1x128x128xbf16> to vector<128x128xbf16>
    %122 = arith.extf %121 : vector<128x128xbf16> to vector<128x128xf32>
    %cst_157 = arith.constant dense<0.000000e+00> : vector<64x128xf32>
    %123 = tpu.matmul %119, %122, %cst_157 {dimension_numbers = #tpu.dot_dimension_numbers<[1], [0], [0], [1], [0, 0, 1, 1], [], []>} : vector<64x128xf32>, vector<128x128xf32>, vector<64x128xf32> -> vector<64x128xf32>
    %124 = arith.addf %117, %123 : vector<64x128xf32>
    %c0_158 = arith.constant 0 : index
    %c1_159 = arith.constant 1 : index
    %c2_160 = arith.constant 2 : index
    %c0_161 = arith.constant 0 : index
    %125 = vector.load %arg9[%c0_158, %c1_159, %c2_160, %c0_161] : memref<2x10x6x128xf32, #tpu.memory_space<vmem>>, vector<2x8x4x128xf32>
    %126 = vector.shape_cast %125 : vector<2x8x4x128xf32> to vector<64x128xf32>
    %c7_162 = arith.constant 7 : index
    %c0_163 = arith.constant 0 : index
    %c0_164 = arith.constant 0 : index
    %127 = vector.load %arg4[%c7_162, %c0_163, %c0_164] : memref<9x128x128xbf16, #tpu.memory_space<vmem>>, vector<1x128x128xbf16>
    %128 = vector.shape_cast %127 : vector<1x128x128xbf16> to vector<128x128xbf16>
    %129 = arith.extf %128 : vector<128x128xbf16> to vector<128x128xf32>
    %cst_165 = arith.constant dense<0.000000e+00> : vector<64x128xf32>
    %130 = tpu.matmul %126, %129, %cst_165 {dimension_numbers = #tpu.dot_dimension_numbers<[1], [0], [0], [1], [0, 0, 1, 1], [], []>} : vector<64x128xf32>, vector<128x128xf32>, vector<64x128xf32> -> vector<64x128xf32>
    %131 = arith.addf %124, %130 : vector<64x128xf32>
    %c0_166 = arith.constant 0 : index
    %c2_167 = arith.constant 2 : index
    %c0_168 = arith.constant 0 : index
    %c0_169 = arith.constant 0 : index
    %132 = vector.load %arg9[%c0_166, %c2_167, %c0_168, %c0_169] : memref<2x10x6x128xf32, #tpu.memory_space<vmem>>, vector<2x8x4x128xf32>
    %133 = vector.shape_cast %132 : vector<2x8x4x128xf32> to vector<64x128xf32>
    %c2_170 = arith.constant 2 : index
    %c0_171 = arith.constant 0 : index
    %c0_172 = arith.constant 0 : index
    %134 = vector.load %arg4[%c2_170, %c0_171, %c0_172] : memref<9x128x128xbf16, #tpu.memory_space<vmem>>, vector<1x128x128xbf16>
    %135 = vector.shape_cast %134 : vector<1x128x128xbf16> to vector<128x128xbf16>
    %136 = arith.extf %135 : vector<128x128xbf16> to vector<128x128xf32>
    %cst_173 = arith.constant dense<0.000000e+00> : vector<64x128xf32>
    %137 = tpu.matmul %133, %136, %cst_173 {dimension_numbers = #tpu.dot_dimension_numbers<[1], [0], [0], [1], [0, 0, 1, 1], [], []>} : vector<64x128xf32>, vector<128x128xf32>, vector<64x128xf32> -> vector<64x128xf32>
    %138 = arith.addf %131, %137 : vector<64x128xf32>
    %c0_174 = arith.constant 0 : index
    %c2_175 = arith.constant 2 : index
    %c1_176 = arith.constant 1 : index
    %c0_177 = arith.constant 0 : index
    %139 = vector.load %arg9[%c0_174, %c2_175, %c1_176, %c0_177] : memref<2x10x6x128xf32, #tpu.memory_space<vmem>>, vector<2x8x4x128xf32>
    %140 = vector.shape_cast %139 : vector<2x8x4x128xf32> to vector<64x128xf32>
    %c5_178 = arith.constant 5 : index
    %c0_179 = arith.constant 0 : index
    %c0_180 = arith.constant 0 : index
    %141 = vector.load %arg4[%c5_178, %c0_179, %c0_180] : memref<9x128x128xbf16, #tpu.memory_space<vmem>>, vector<1x128x128xbf16>
    %142 = vector.shape_cast %141 : vector<1x128x128xbf16> to vector<128x128xbf16>
    %143 = arith.extf %142 : vector<128x128xbf16> to vector<128x128xf32>
    %cst_181 = arith.constant dense<0.000000e+00> : vector<64x128xf32>
    %144 = tpu.matmul %140, %143, %cst_181 {dimension_numbers = #tpu.dot_dimension_numbers<[1], [0], [0], [1], [0, 0, 1, 1], [], []>} : vector<64x128xf32>, vector<128x128xf32>, vector<64x128xf32> -> vector<64x128xf32>
    %145 = arith.addf %138, %144 : vector<64x128xf32>
    %c0_182 = arith.constant 0 : index
    %c2_183 = arith.constant 2 : index
    %c2_184 = arith.constant 2 : index
    %c0_185 = arith.constant 0 : index
    %146 = vector.load %arg9[%c0_182, %c2_183, %c2_184, %c0_185] : memref<2x10x6x128xf32, #tpu.memory_space<vmem>>, vector<2x8x4x128xf32>
    %147 = vector.shape_cast %146 : vector<2x8x4x128xf32> to vector<64x128xf32>
    %c8_186 = arith.constant 8 : index
    %c0_187 = arith.constant 0 : index
    %c0_188 = arith.constant 0 : index
    %148 = vector.load %arg4[%c8_186, %c0_187, %c0_188] : memref<9x128x128xbf16, #tpu.memory_space<vmem>>, vector<1x128x128xbf16>
    %149 = vector.shape_cast %148 : vector<1x128x128xbf16> to vector<128x128xbf16>
    %150 = arith.extf %149 : vector<128x128xbf16> to vector<128x128xf32>
    %cst_189 = arith.constant dense<0.000000e+00> : vector<64x128xf32>
    %151 = tpu.matmul %147, %150, %cst_189 {dimension_numbers = #tpu.dot_dimension_numbers<[1], [0], [0], [1], [0, 0, 1, 1], [], []>} : vector<64x128xf32>, vector<128x128xf32>, vector<64x128xf32> -> vector<64x128xf32>
    %152 = arith.addf %145, %151 : vector<64x128xf32>
    %c0_190 = arith.constant 0 : index
    %c0_191 = arith.constant 0 : index
    %c0_192 = arith.constant 0 : index
    %c0_193 = arith.constant 0 : index
    %153 = vector.load %arg1[%c0_190, %c0_191, %c0_192, %c0_193] : memref<2x8x4x64xf32, #tpu.memory_space<vmem>>, vector<2x8x4x64xf32>
    %154 = vector.shape_cast %153 : vector<2x8x4x64xf32> to vector<64x64xf32>
    %c0_194 = arith.constant 0 : index
    %c0_195 = arith.constant 0 : index
    %155 = vector.load %arg5[%c0_194, %c0_195] : memref<64x128xbf16, #tpu.memory_space<vmem>>, vector<64x128xbf16>
    %156 = arith.extf %155 : vector<64x128xbf16> to vector<64x128xf32>
    %cst_196 = arith.constant dense<0.000000e+00> : vector<64x128xf32>
    %157 = tpu.matmul %154, %156, %cst_196 {dimension_numbers = #tpu.dot_dimension_numbers<[1], [0], [0], [1], [0, 0, 1, 1], [], []>} : vector<64x64xf32>, vector<64x128xf32>, vector<64x128xf32> -> vector<64x128xf32>
    %158 = arith.addf %152, %157 : vector<64x128xf32>
    %c0_197 = arith.constant 0 : index
    %c0_198 = arith.constant 0 : index
    %159 = vector.load %arg6[%c0_197, %c0_198] : memref<1x128xf32, #tpu.memory_space<vmem>>, vector<1x128xf32>
    %160 = vector.broadcast %159 : vector<1x128xf32> to vector<64x128xf32>
    %161 = arith.addf %158, %160 : vector<64x128xf32>
    %cst_199 = arith.constant 0.000000e+00 : f32
    %162 = vector.broadcast %cst_199 : f32 to vector<64x128xf32>
    %163 = arith.maximumf %161, %162 : vector<64x128xf32>
    %c0_200 = arith.constant 0 : index
    %c0_201 = arith.constant 0 : index
    %164 = vector.load %arg7[%c0_200, %c0_201] : memref<64x128xf32, #tpu.memory_space<vmem>>, vector<64x128xf32>
    tpu.vector_store %arg7[%c0_200, %c0_201], %163 {strides = array<i32>} : memref<64x128xf32, #tpu.memory_space<vmem>>, vector<64x128xf32>,
    return
  }
  func.func @transform_0(%arg0: i32) -> (i32, i32, i32, i32) {
    %c0_i32 = arith.constant 0 : i32
    %c0_i32_0 = arith.constant 0 : i32
    %c0_i32_1 = arith.constant 0 : i32
    %c0_i32_2 = arith.constant 0 : i32
    %c0_i32_3 = arith.constant 0 : i32
    return %c0_i32, %c0_i32_0, %c0_i32_1, %c0_i32_2 : i32, i32, i32, i32
  }
  func.func @transform_1(%arg0: i32) -> (i32, i32, i32) {
    %c0_i32 = arith.constant 0 : i32
    %c0_i32_0 = arith.constant 0 : i32
    %c0_i32_1 = arith.constant 0 : i32
    %c0_i32_2 = arith.constant 0 : i32
    return %c0_i32, %c0_i32_0, %c0_i32_1 : i32, i32, i32
  }
  func.func @transform_2(%arg0: i32) -> (i32, i32) {
    %c0_i32 = arith.constant 0 : i32
    %c0_i32_0 = arith.constant 0 : i32
    %c0_i32_1 = arith.constant 0 : i32
    return %c0_i32, %c0_i32_0 : i32, i32
  }
  func.func @transform_3(%arg0: i32) -> (i32, i32, i32) {
    %c0_i32 = arith.constant 0 : i32
    %c0_i32_0 = arith.constant 0 : i32
    %c0_i32_1 = arith.constant 0 : i32
    %c0_i32_2 = arith.constant 0 : i32
    return %c0_i32, %c0_i32_0, %c0_i32_1 : i32, i32, i32
  }
  func.func @transform_4(%arg0: i32) -> (i32, i32) {
    %c0_i32 = arith.constant 0 : i32
    %c0_i32_0 = arith.constant 0 : i32
    %c0_i32_1 = arith.constant 0 : i32
    return %c0_i32, %c0_i32_0 : i32, i32
  }
  func.func @transform_5(%arg0: i32) -> (i32, i32) {
    %c0_i32 = arith.constant 0 : i32
    %c0_i32_0 = arith.constant 0 : i32
    %c0_i32_1 = arith.constant 0 : i32
    return %c0_i32, %c0_i32_0 : i32, i32
  }
  func.func @transform_6(%arg0: i32) -> (i32, i32) {
    %c0_i32 = arith.constant 0 : i32
    %c0_i32_0 = arith.constant 0 : i32
    %c0_i32_1 = arith.constant 0 : i32
    return %c0_i32, %c0_i32_0 : i32, i32
  }
}

</mosaic_0001>

<bundles_post_ra>
// kernel: tpu_custom_call.1
= control target key start
LH: loop header
LB: loop body
LE: loop exit
PB: predicated region body
PF: predicated region fallthrough
CT: control target
= control target key end

     0   :  { %11 = vsyncpa [#allocation5], 0  ;;  %s4554_s0 = inlined_call_operand.hbm [shape: f32[2,8,4,64], index: 0, kind: input, shape index: {}]   ;;  %s4555_s1 = inlined_call_operand.hbm [shape: bf16[9,64,128], index: 1, kind: input, shape index: {}]   ;;  %s4556_s2 = inlined_call_operand.vmem [shape: f32[1,128], index: 2, kind: input, shape index: {}]   ;;  %s4557_s3 = inlined_call_operand.hbm [shape: bf16[9,128,128], index: 3, kind: input, shape index: {}]   ;;  %s4558_s4 = inlined_call_operand.hbm [shape: bf16[64,128], index: 4, kind: input, shape index: {}]   ;;  %s4559_s5 = inlined_call_operand.vmem [shape: f32[1,128], index: 5, kind: input, shape index: {}]   ;;  %s4560_s6 = inlined_call_operand.hbm [shape: f32[64,128], index: 6, kind: output, shape index: {}]  }
   0x1   :  { %12 = vsyncpa [#allocation8], 0 }
   0x2   :  { %13 = vsyncpa [#allocation11], 0 }
   0x3   :  { %14 = vsyncpa [#allocation6], 0  ;;  %s32_s23 = sshll.u32 %s4555_s1, 4  ;;  %s3903_s24 = smov [#allocation7]   ;;  %s33_s23 = int_to_ptr.hbm [resolvable:$true] %s32_s23 }
   0x4   :  { %s34_s25 = sshll.u32 %s3903_s24, 4  ;;  %s19_s28 = sshll.u32 %s4554_s0, 4  ;;  %s35_s25 = int_to_ptr.vmem [resolvable:$true] %s34_s25  ;;  %s20_s28 = int_to_ptr.hbm [resolvable:$true] %s19_s28 }
   0x5   :  { %s3904_s29 = smov 64   ;;  %s3905_s30 = smov 4  }
   0x6   :  { %40 = dma.hbm_to_vmem [thread:$0]  %s33_s23, 4608, %s35_s25, [#allocation8], %s3904_s29, %s3904_s29, %s3905_s30  }
   0x7   :  { %s3906_s7 = smov [#allocation4]   ;;  %s47_s11 = sshll.u32 %s4557_s3, 4  ;;  %s48_s11 = int_to_ptr.hbm [resolvable:$true] %s47_s11 }
   0x8   :  { %s21_s8 = sshll.u32 %s3906_s7, 4  ;;  %s60_s13 = sshll.u32 %s4558_s4, 4  ;;  %s22_s8 = int_to_ptr.vmem [resolvable:$true] %s21_s8  ;;  %s61_s13 = int_to_ptr.hbm [resolvable:$true] %s60_s13 }
   0x9   :  { %27 = dma.hbm_to_vmem [thread:$0]  %s20_s28, 1024, %s22_s8, [#allocation5], %s3904_s29, %s3904_s29, %s3905_s30  }
   0xa   :  { %s3907_s14 = smov [#allocation9]   ;;  %s3908_s0 = smov [#allocation10]  }
   0xb   :  { %s49_s15 = sshll.u32 %s3907_s14, 4  ;;  %s62_s16 = sshll.u32 %s3908_s0, 4  ;;  %s50_s15 = int_to_ptr.vmem [resolvable:$true] %s49_s15  ;;  %s63_s16 = int_to_ptr.vmem [resolvable:$true] %s62_s16 }
   0xc   :  { %55 = dma.hbm_to_vmem [thread:$0]  %s48_s11, 9216, %s50_s15, [#allocation8], %s3904_s29, %s3904_s29, %s3905_s30  }
   0xd   :  { %68 = dma.hbm_to_vmem [thread:$0]  %s61_s13, 512, %s63_s16, [#allocation11], %s3904_s29, %s3904_s29, %s3905_s30  }
   0xe   :  { %3895 = dma.done.wait [#allocation5], 1024  }
   0xf   :  { %3896 = vsyncadd [#allocation5], 4294966272 }
  0x10   :  { %3897 = dma.done.wait [#allocation8], 13824  }
  0x11   :  { %3898 = vsyncadd [#allocation8], 4294953472 }
  0x12   :  { %3899 = dma.done.wait [#allocation11], 512  }
  0x13   :  { %3900 = vsyncadd [#allocation11], 4294966784  ;;  %vm103_vm0 = vcmask 521216   ;;  %v3909_v0 = vmov 0.0   ;;  %vm151_vm1 = vcmask 519168   ;;  %v3651_v1 = vld [vmem:[#allocation7 + $0x78] sm:$0xff]  }
  0x14   :  { %104 = vst.msk [vmem:[#allocation2] sm:$0x3f] %vm103_vm0, %v3909_v0  ;;  %v3650_v2 = vld [vmem:[#allocation7 + $0x70] sm:$0xff]   ;;  %v3229_v3 = vunpack.c.h.bf16 %v3651_v1  ;;  %v3228_v4 = vunpack.c.l.bf16 %v3651_v1  ;;  %v87_v5 = vld [vmem:[#allocation4] sm:$0xf]  ;;  %v3648_v7 = vld [vmem:[#allocation7 + $0x18] sm:$0xff]  }
  0x15   :  { %105 = vst.msk [vmem:[#allocation2 + $0x50] sm:$0x3f] %vm103_vm0, %v3909_v0  ;;  %v3647_v8 = vld [vmem:[#allocation7 + $0x10] sm:$0xff]   ;;  %v3225_v9 = vunpack.c.h.bf16 %v3650_v2  ;;  %v3213_v10 = vunpack.c.h.bf16 %v3648_v7  ;;  %v3212_v11 = vunpack.c.l.bf16 %v3648_v7  ;;  %v3649_v12 = vld [vmem:[#allocation7 + $0x68] sm:$0xff]   ;;  %v3224_v13 = vunpack.c.l.bf16 %v3650_v2  ;;  %v3215_v17 = vld [vmem:[#allocation7 + $0x60] sm:$0xff]   ;;  %s3103_s21 = sshll.u32 %s4560_s6, 4  ;;  %s3104_s21 = int_to_ptr.hbm [resolvable:$true] %s3103_s21 }
  0x16   :  { %107 = vst.msk [vmem:[#allocation2 + $0x48] sm:$0x3f] %vm103_vm0, %v3909_v0  ;;  %305 = vmatpush.msra.mxu0 %v3229_v3  ;;  %v3209_v14 = vunpack.c.h.bf16 %v3647_v8  ;;  %v3221_v15 = vunpack.c.h.bf16 %v3649_v12  ;;  %v3208_v16 = vunpack.c.l.bf16 %v3647_v8  ;;  %v3220_v18 = vunpack.c.l.bf16 %v3649_v12  ;;  %v3646_v23 = vld [vmem:[#allocation7 + $0x8] sm:$0xff]   ;;  %v3199_v26 = vld [vmem:[#allocation7] sm:$0xff]   ;;  %v91_v32 = vld [vmem:[#allocation4 + $0x10] sm:$0xf] }
  0x17   :  { %108 = vst.msk [vmem:[#allocation2 + $0x98] sm:$0x3f] %vm103_vm0, %v3909_v0  ;;  %3739 = vmatpush.msra.mxu1 %v3213_v10  ;;  %v3217_v20 = vunpack.c.h.bf16 %v3215_v17  ;;  %v3216_v21 = vunpack.c.l.bf16 %v3215_v17  ;;  %vm280_vm2 = vcmask 523264   ;;  %v3205_v24 = vunpack.c.h.bf16 %v3646_v23  ;;  %v88_v29 = vld [vmem:[#allocation4 + $0x4] sm:$0xf]  ;;  %v3654_v38 = vld [vmem:[#allocation7 + $0xd8] sm:$0xff]  }
  0x18   :  { %1502 = vst [vmem:[#allocation3] sm:$0x3f] %v3909_v0  ;;  %306 = vmatpush.msra.mxu0 %v3228_v4  ;;  %v3204_v25 = vunpack.c.l.bf16 %v3646_v23  ;;  %v3201_v27 = vunpack.c.h.bf16 %v3199_v26  ;;  %v3200_v28 = vunpack.c.l.bf16 %v3199_v26  ;;  %v89_v30 = vld [vmem:[#allocation4 + $0x8] sm:$0xf]  ;;  %v90_v31 = vld [vmem:[#allocation4 + $0xc] sm:$0xf]  ;;  %v3245_v40 = vunpack.c.h.bf16 %v3654_v38 }
  0x19   :  { %1503 = vst [vmem:[#allocation3 + $0x50] sm:$0x3f] %v3909_v0  ;;  %3740 = vmatpush.msra.mxu1 %v3212_v11  ;;  %vm109_vm3 = vcmask 516096   ;;  %v98_v33 = vld [vmem:[#allocation4 + $0x2c] sm:$0xf]  ;;  %v3244_v41 = vunpack.c.l.bf16 %v3654_v38  ;;  %v4024_v42 = vld [vmem:[#allocation7 + $0xd0] sm:$0xff]  }
  0x1a   :  { %1505 = vst [vmem:[#allocation3 + $0x48] sm:$0x3f] %v3909_v0  ;;  %307 = vmatpush.msra.mxu0 %v3225_v9  ;;  %v99_v34 = vld [vmem:[#allocation4 + $0x30] sm:$0xf]  ;;  %546 = vmatpush.msra.mxu2 %v3245_v40  ;;  %v3241_v43 = vunpack.c.h.bf16 %v4024_v42  ;;  %v92_v52 = vld [vmem:[#allocation4 + $0x14] sm:$0xf]  ;;  %v3240_v57 = vunpack.c.l.bf16 %v4024_v42 }
  0x1b   :  { %v200_v6 = vld [vmem:[#allocation2 + $0x1] sm:$0xf]  ;;  %152 = vst.msk [vmem:[#allocation2 + $0x9] sm:$0xf] %vm151_vm1, %v87_v5  ;;  %3741 = vmatpush.msra.mxu1 %v3209_v14  ;;  %3747 = vmatpush.msra.mxu3 %v3245_v40  ;;  %v93_v53 = vld [vmem:[#allocation4 + $0x18] sm:$0xf] }
  0x1c   :  { %249 = vst [vmem:[#allocation1] ss:$2 sm:$0xff] %v200_v6  ;;  %308 = vmatpush.msra.mxu0 %v3224_v13  ;;  %547 = vmatpush.msra.mxu2 %v3244_v41  ;;  %v100_v54 = vld [vmem:[#allocation4 + $0x34] sm:$0xf]  ;;  %v101_v55 = vld [vmem:[#allocation4 + $0x38] sm:$0xf] }
  0x1d   :  { %1506 = vst [vmem:[#allocation3 + $0x98] sm:$0x3f] %v3909_v0  ;;  %3742 = vmatpush.msra.mxu1 %v3208_v16  ;;  %3748 = vmatpush.msra.mxu3 %v3244_v41  ;;  %v95_v56 = vld [vmem:[#allocation4 + $0x20] sm:$0xf]  ;;  %v208_v58 = vld [vmem:[#allocation2 + $0x51] sm:$0xf] }
  0x1e   :  { %1508 = vst [vmem:[#allocation3 + $0x8] sm:$0x1] %v3909_v0  ;;  %309 = vmatpush.msra.mxu0 %v3221_v15  ;;  %548 = vmatpush.msra.mxu2 %v3241_v43  ;;  %v3652_v59 = vld [vmem:[#allocation7 + $0xc8] sm:$0xff]   ;;  %v3231_v60 = vld [vmem:[#allocation7 + $0xc0] sm:$0xff]   ;;  %v3657_v13 = vld [vmem:[#allocation7 + $0x38] sm:$0xff]   ;;  %s3911_s22 = smov 128  }
  0x1f   :  { %1509 = vst [vmem:[#allocation3 + $0x10] sm:$0x1] %v3909_v0  ;;  %3743 = vmatpush.msra.mxu1 %v3205_v24  ;;  %3749 = vmatpush.msra.mxu3 %v3241_v43  ;;  %v3237_v62 = vunpack.c.h.bf16 %v3652_v59  ;;  %v3236_v63 = vunpack.c.l.bf16 %v3652_v59  ;;  %v3233_v1 = vunpack.c.h.bf16 %v3231_v60  ;;  %v96_v3 = vld [vmem:[#allocation4 + $0x24] sm:$0xf]  ;;  %v97_v5 = vld [vmem:[#allocation4 + $0x28] sm:$0xf]  ;;  %v3232_v7 = vunpack.c.l.bf16 %v3231_v60 }
  0x20   :  { %1510 = vst [vmem:[#allocation3 + $0x18] sm:$0x1] %v3909_v0  ;;  %310 = vmatpush.msra.mxu0 %v3220_v18  ;;  %549 = vmatpush.msra.mxu2 %v3240_v57  ;;  %v3261_v15 = vunpack.c.h.bf16 %v3657_v13  ;;  %s3912_s23 = smov 8  }
  0x21   :  { %1511 = vst [vmem:[#allocation3 + $0x20] sm:$0x1] %v3909_v0  ;;  %3744 = vmatpush.msra.mxu1 %v3204_v25  ;;  %3750 = vmatpush.msra.mxu3 %v3240_v57 }
  0x22   :  { %v201_v19 = vld [vmem:[#allocation2 + $0x9] sm:$0xf]  ;;  %1512 = vst [vmem:[#allocation3 + $0x28] sm:$0x1] %v3909_v0  ;;  %311 = vmatpush.msra.mxu0 %v3217_v20  ;;  %550 = vmatpush.msra.mxu2 %v3237_v62 }
  0x23   :  { %251 = vst [vmem:[#allocation1 + $0x1] ss:$2 sm:$0xff] %v201_v19  ;;  %3745 = vmatpush.msra.mxu1 %v3201_v27  ;;  %3751 = vmatpush.msra.mxu3 %v3237_v62 }
  0x24   :  { %1513 = vst [vmem:[#allocation3 + $0x30] sm:$0x1] %v3909_v0  ;;  %312 = vmatpush.msra.mxu0 %v3216_v21  ;;  %551 = vmatpush.msra.mxu2 %v3236_v63 }
  0x25   :  { %1514 = vst [vmem:[#allocation3 + $0x38] sm:$0x1] %v3909_v0  ;;  %3746 = vmatpush.msra.mxu1 %v3200_v28  ;;  %3752 = vmatpush.msra.mxu3 %v3236_v63 }
  0x26   :  { %1515 = vst [vmem:[#allocation3 + $0x40] sm:$0x1] %v3909_v0  ;;  %409 = vmatpush.msrb.mxu0 %v3213_v10  ;;  %552 = vmatpush.msra.mxu2 %v3233_v1 }
  0x27   :  { %1518 = vst [vmem:[#allocation3 + $0x58] sm:$0x1] %v3909_v0  ;;  %3753 = vmatpush.msra.mxu3 %v3233_v1 }
  0x28   :  { %1519 = vst [vmem:[#allocation3 + $0x60] sm:$0x1] %v3909_v0  ;;  %410 = vmatpush.msrb.mxu0 %v3212_v11  ;;  %553 = vmatpush.msra.mxu2 %v3232_v7 }
  0x29   :  { %1520 = vst [vmem:[#allocation3 + $0x68] sm:$0x1] %v3909_v0  ;;  %3754 = vmatpush.msra.mxu3 %v3232_v7 }
  0x2a   :  { %v264_v22 = vld.sshfl [vmem:[#allocation1] sm:$0xff pattern:$0x75316420]  ;;  %1521 = vst [vmem:[#allocation3 + $0x70] sm:$0x1] %v3909_v0  ;;  %411 = vmatpush.msrb.mxu0 %v3209_v14 }
  0x2b   :  { %3118 = vmatmul.msk.f32.vlgmr.msra.gmra.mxu0 %vm280_vm2, %v264_v22  ;;  %1522 = vst [vmem:[#allocation3 + $0x78] sm:$0x1] %v3909_v0  ;;  %691 = vmatpush.msrb.mxu3 %v3261_v15 }
  0x2c   :  { %1523 = vst [vmem:[#allocation3 + $0x80] sm:$0x1] %v3909_v0  ;;  %412 = vmatpush.msrb.mxu0 %v3208_v16 }
  0x2d   :  { %1524 = vst [vmem:[#allocation3 + $0x88] sm:$0x1] %v3909_v0 }
  0x2e   :  { %1525 = vst [vmem:[#allocation3 + $0x90] sm:$0x1] %v3909_v0  ;;  %413 = vmatpush.msrb.mxu0 %v3205_v24 }
  0x2f   :  { %1528 = vst [vmem:[#allocation3 + $0xd] sm:$0x1] %v3909_v0 }
  0x30   :  { %1529 = vst [vmem:[#allocation3 + $0x15] sm:$0x1] %v3909_v0  ;;  %414 = vmatpush.msrb.mxu0 %v3204_v25 }
  0x31   :  { %1530 = vst [vmem:[#allocation3 + $0x1d] sm:$0x1] %v3909_v0 }
  0x32   :  { %1531 = vst [vmem:[#allocation3 + $0x25] sm:$0x1] %v3909_v0  ;;  %415 = vmatpush.msrb.mxu0 %v3201_v27 }
  0x33   :  { %1532 = vst [vmem:[#allocation3 + $0x2d] sm:$0x1] %v3909_v0 }
  0x34   :  { %1533 = vst [vmem:[#allocation3 + $0x35] sm:$0x1] %v3909_v0  ;;  %416 = vmatpush.msrb.mxu0 %v3200_v28  ;;  %v3260_v28 = vunpack.c.l.bf16 %v3657_v13 }
  0x35   :  { %1534 = vst [vmem:[#allocation3 + $0x3d] sm:$0x1] %v3909_v0 }
  0x36   :  { %1535 = vst [vmem:[#allocation3 + $0x45] sm:$0x1] %v3909_v0  ;;  %692 = vmatpush.msrb.mxu3 %v3260_v28 }
  0x37   :  { %1538 = vst [vmem:[#allocation3 + $0x5d] sm:$0x1] %v3909_v0 }
  0x38   :  { %1539 = vst [vmem:[#allocation3 + $0x65] sm:$0x1] %v3909_v0 }
  0x39   :  { %1540 = vst [vmem:[#allocation3 + $0x6d] sm:$0x1] %v3909_v0 }
  0x3a   :  { %1541 = vst [vmem:[#allocation3 + $0x75] sm:$0x1] %v3909_v0 }
  0x3b   :  { %1542 = vst [vmem:[#allocation3 + $0x7d] sm:$0x1] %v3909_v0 }
  0x3c   :  { %1543 = vst [vmem:[#allocation3 + $0x85] sm:$0x1] %v3909_v0 }
  0x3d   :  { %1544 = vst [vmem:[#allocation3 + $0x8d] sm:$0x1] %v3909_v0 }
  0x3e   :  { %1545 = vst [vmem:[#allocation3 + $0x95] sm:$0x1] %v3909_v0 }
  0x3f   :  { %1507 = vst [vmem:[#allocation3] sm:$0x1] %v3909_v0 }
  0x40   :  { %1516 = vst [vmem:[#allocation3 + $0x48] sm:$0x1] %v3909_v0 }
  0x41   :  { %1517 = vst [vmem:[#allocation3 + $0x50] sm:$0x1] %v3909_v0 }
  0x42   :  { %1526 = vst [vmem:[#allocation3 + $0x98] sm:$0x1] %v3909_v0 }
  0x43   :  { %1527 = vst [vmem:[#allocation3 + $0x5] sm:$0x1] %v3909_v0 }
  0x44   :  { %1536 = vst [vmem:[#allocation3 + $0x4d] sm:$0x1] %v3909_v0 }
  0x45   :  { %1537 = vst [vmem:[#allocation3 + $0x55] sm:$0x1] %v3909_v0 }
  0x46   :  { %1546 = vst [vmem:[#allocation3 + $0x9d] sm:$0x1] %v3909_v0 }
  0x47   :  { %153 = vst.msk [vmem:[#allocation2 + $0x11] sm:$0xf] %vm151_vm1, %v88_v29  ;;  %v3656_v29 = vld [vmem:[#allocation7 + $0x30] sm:$0xff]  }
  0x48   :  { %154 = vst.msk [vmem:[#allocation2 + $0x19] sm:$0xf] %vm151_vm1, %v89_v30 }
  0x49   :  { %155 = vst.msk [vmem:[#allocation2 + $0x21] sm:$0xf] %vm151_vm1, %v90_v31 }
  0x4a   :  { %156 = vst.msk [vmem:[#allocation2 + $0x29] sm:$0xf] %vm151_vm1, %v91_v32  ;;  %v3257_v32 = vunpack.c.h.bf16 %v3656_v29 }
  0x4b   :  { %114 = vst.msk [vmem:[#allocation2 + $0x20] sm:$0x1] %vm109_vm3, %v3909_v0 }
  0x4c   :  { %115 = vst.msk [vmem:[#allocation2 + $0x28] sm:$0x1] %vm109_vm3, %v3909_v0  ;;  %693 = vmatpush.msrb.mxu3 %v3257_v32 }
  0x4d   :  { %163 = vst.msk [vmem:[#allocation2 + $0x71] sm:$0xf] %vm151_vm1, %v98_v33 }
  0x4e   :  { %v202_v35 = vld [vmem:[#allocation2 + $0x11] sm:$0xf]  ;;  %164 = vst.msk [vmem:[#allocation2 + $0x79] sm:$0xf] %vm151_vm1, %v99_v34 }
  0x4f   :  { %v203_v36 = vld [vmem:[#allocation2 + $0x19] sm:$0xf]  ;;  %253 = vst [vmem:[#allocation1 + $0x10] ss:$2 sm:$0xff] %v202_v35  ;;  %v3256_v35 = vunpack.c.l.bf16 %v3656_v29 }
  0x50   :  { %255 = vst [vmem:[#allocation1 + $0x11] ss:$2 sm:$0xff] %v203_v36  ;;  %v204_v37 = vld [vmem:[#allocation2 + $0x21] sm:$0xf] }
  0x51   :  { %v205_v39 = vld [vmem:[#allocation2 + $0x29] sm:$0xf]  ;;  %257 = vst [vmem:[#allocation1 + $0x20] ss:$2 sm:$0xff] %v204_v37  ;;  %694 = vmatpush.msrb.mxu3 %v3256_v35  ;;  %v3263_v35 = vld [vmem:[#allocation7 + $0x80] sm:$0xff]  }
  0x52   :  { %259 = vst [vmem:[#allocation1 + $0x21] ss:$2 sm:$0xff] %v205_v39  ;;  %v172_v48 = vld [vmem:[#allocation2 + $0x20] sm:$0xf]  ;;  %v3655_v37 = vld [vmem:[#allocation7 + $0x28] sm:$0xff]  }
  0x53   :  { %110 = vst.msk [vmem:[#allocation2] sm:$0x1] %vm109_vm3, %v3909_v0  ;;  %v173_v49 = vld [vmem:[#allocation2 + $0x28] sm:$0xf]  ;;  %v3253_v39 = vunpack.c.h.bf16 %v3655_v37  ;;  %v3252_v43 = vunpack.c.l.bf16 %v3655_v37 }
  0x54   :  { %111 = vst.msk [vmem:[#allocation2 + $0x8] sm:$0x1] %vm109_vm3, %v3909_v0  ;;  %v212_v44 = vld [vmem:[#allocation2 + $0x71] sm:$0xf]  ;;  %v591_v59 = vld [vmem:[#allocation2 + $0x28] sm:$0xf] }
  0x55   :  { %112 = vst.msk [vmem:[#allocation2 + $0x10] sm:$0x1] %vm109_vm3, %v3909_v0  ;;  %v213_v46 = vld [vmem:[#allocation2 + $0x79] sm:$0xf]  ;;  %695 = vmatpush.msrb.mxu3 %v3253_v39 }
  0x56   :  { %113 = vst.msk [vmem:[#allocation2 + $0x18] sm:$0x1] %vm109_vm3, %v3909_v0 }
  0x57   :  { %v265_v45 = vld.sshfl [vmem:[#allocation1 + $0x10] sm:$0xff pattern:$0x75316420]  ;;  %116 = vst.msk [vmem:[#allocation2 + $0x30] sm:$0x1] %vm109_vm3, %v3909_v0  ;;  %696 = vmatpush.msrb.mxu3 %v3252_v43 }
  0x58   :  { %3119 = vmatmul.msk.f32.gmra.mxu0 %vm280_vm2, %v265_v45  ;;  %117 = vst.msk [vmem:[#allocation2 + $0x38] sm:$0x1] %vm109_vm3, %v3909_v0 }
  0x59   :  { %v266_v47 = vld.sshfl [vmem:[#allocation1 + $0x20] sm:$0xff pattern:$0x75316420]  ;;  %118 = vst.msk [vmem:[#allocation2 + $0x40] sm:$0x1] %vm109_vm3, %v3909_v0 }
  0x5a   :  { %272 = vst [vmem:[#allocation1 + $0x20] ss:$2 sm:$0xff] %v212_v44  ;;  %v168_v16 = vld [vmem:[#allocation2] sm:$0xf] }
  0x5b   :  { %273 = vst [vmem:[#allocation1 + $0x21] ss:$2 sm:$0xff] %v213_v46  ;;  %v169_v18 = vld [vmem:[#allocation2 + $0x8] sm:$0xf]  ;;  %v3247_v44 = vld [vmem:[#allocation7 + $0x20] sm:$0xff]  }
  0x5c   :  { %119 = vst.msk [vmem:[#allocation2 + $0x48] sm:$0x1] %vm109_vm3, %v3909_v0  ;;  %v170_v31 = vld [vmem:[#allocation2 + $0x10] sm:$0xf]  ;;  %v3249_v46 = vunpack.c.h.bf16 %v3247_v44  ;;  %v587_v15 = vld [vmem:[#allocation2 + $0x8] sm:$0xf] }
  0x5d   :  { %120 = vst.msk [vmem:[#allocation2 + $0x50] sm:$0x1] %vm109_vm3, %v3909_v0  ;;  %v171_v34 = vld [vmem:[#allocation2 + $0x18] sm:$0xf] }
  0x5e   :  { %121 = vst.msk [vmem:[#allocation2 + $0x58] sm:$0x1] %vm109_vm3, %v3909_v0  ;;  %697 = vmatpush.msrb.mxu3 %v3249_v46  ;;  %v589_v46 = vld [vmem:[#allocation2 + $0x18] sm:$0xf] }
  0x5f   :  { %122 = vst.msk [vmem:[#allocation2 + $0x60] sm:$0x1] %vm109_vm3, %v3909_v0 }
  0x60   :  { %3120 = vmatmul.msk.f32.gmra.mxu0 %vm280_vm2, %v266_v47  ;;  %123 = vst.msk [vmem:[#allocation2 + $0x68] sm:$0x1] %vm109_vm3, %v3909_v0 }
  0x61   :  { %124 = vst.msk [vmem:[#allocation2 + $0x70] sm:$0x1] %vm109_vm3, %v3909_v0 }
  0x62   :  { %v4051_v50 = vld.sshfl [vmem:[#allocation1 + $0x20] sm:$0xff pattern:$0x75316420]  ;;  %125 = vst.msk [vmem:[#allocation2 + $0x78] sm:$0x1] %vm109_vm3, %v3909_v0 }
  0x63   :  { %362 = vst [vmem:[#allocation1 + $0x20] ss:$2 sm:$0xff] %v172_v48  ;;  %v3248_v48 = vunpack.c.l.bf16 %v3247_v44 }
  0x64   :  { %364 = vst [vmem:[#allocation1 + $0x21] ss:$2 sm:$0xff] %v173_v49  ;;  %v176_v27 = vld [vmem:[#allocation2 + $0x50] sm:$0xf] }
  0x65   :  { %126 = vst.msk [vmem:[#allocation2 + $0x80] sm:$0x1] %vm109_vm3, %v3909_v0  ;;  %698 = vmatpush.msrb.mxu3 %v3248_v48 }
  0x66   :  { %127 = vst.msk [vmem:[#allocation2 + $0x88] sm:$0x1] %vm109_vm3, %v3909_v0 }
  0x67   :  { %128 = vst.msk [vmem:[#allocation2 + $0x90] sm:$0x1] %vm109_vm3, %v3909_v0 }
  0x68   :  { %129 = vst.msk [vmem:[#allocation2 + $0x98] sm:$0x1] %vm109_vm3, %v3909_v0  ;;  %v180_v61 = vld [vmem:[#allocation2 + $0x70] sm:$0xf] }
  0x69   :  { %130 = vst.msk [vmem:[#allocation2 + $0x5] sm:$0x1] %vm109_vm3, %v3909_v0 }
  0x6a   :  { %131 = vst.msk [vmem:[#allocation2 + $0xd] sm:$0x1] %vm109_vm3, %v3909_v0 }
  0x6b   :  { %v371_v51 = vld.sshfl [vmem:[#allocation1 + $0x20] sm:$0xff pattern:$0x75316420]  ;;  %132 = vst.msk [vmem:[#allocation2 + $0x15] sm:$0x1] %vm109_vm3, %v3909_v0 }
  0x6c   :  { %3128 = vmatmul.msk.f32.vlgmr.msra.gmra.mxu1 %vm280_vm2, %v371_v51  ;;  %133 = vst.msk [vmem:[#allocation2 + $0x1d] sm:$0x1] %vm109_vm3, %v3909_v0 }
  0x6d   :  { %134 = vst.msk [vmem:[#allocation2 + $0x25] sm:$0x1] %vm109_vm3, %v3909_v0 }
  0x6e   :  { %135 = vst.msk [vmem:[#allocation2 + $0x2d] sm:$0x1] %vm109_vm3, %v3909_v0 }
  0x6f   :  { %136 = vst.msk [vmem:[#allocation2 + $0x35] sm:$0x1] %vm109_vm3, %v3909_v0 }
  0x70   :  { %137 = vst.msk [vmem:[#allocation2 + $0x3d] sm:$0x1] %vm109_vm3, %v3909_v0  ;;  %v442_v45 = vld [vmem:[#allocation2 + $0x2] sm:$0xf] }
  0x71   :  { %138 = vst.msk [vmem:[#allocation2 + $0x45] sm:$0x1] %vm109_vm3, %v3909_v0  ;;  %v443_v47 = vld [vmem:[#allocation2 + $0xa] sm:$0xf] }
  0x72   :  { %139 = vst.msk [vmem:[#allocation2 + $0x4d] sm:$0x1] %vm109_vm3, %v3909_v0 }
  0x73   :  { %140 = vst.msk [vmem:[#allocation2 + $0x55] sm:$0x1] %vm109_vm3, %v3909_v0  ;;  %v445_v1 = vld [vmem:[#allocation2 + $0x1a] sm:$0xf] }
  0x74   :  { %141 = vst.msk [vmem:[#allocation2 + $0x5d] sm:$0x1] %vm109_vm3, %v3909_v0  ;;  %v446_v8 = vld [vmem:[#allocation2 + $0x22] sm:$0xf] }
  0x75   :  { %142 = vst.msk [vmem:[#allocation2 + $0x65] sm:$0x1] %vm109_vm3, %v3909_v0  ;;  %v447_v9 = vld [vmem:[#allocation2 + $0x2a] sm:$0xf] }
  0x76   :  { %143 = vst.msk [vmem:[#allocation2 + $0x6d] sm:$0x1] %vm109_vm3, %v3909_v0 }
  0x77   :  { %144 = vst.msk [vmem:[#allocation2 + $0x75] sm:$0x1] %vm109_vm3, %v3909_v0 }
  0x78   :  { %145 = vst.msk [vmem:[#allocation2 + $0x7d] sm:$0x1] %vm109_vm3, %v3909_v0 }
  0x79   :  { %146 = vst.msk [vmem:[#allocation2 + $0x85] sm:$0x1] %vm109_vm3, %v3909_v0 }
  0x7a   :  { %147 = vst.msk [vmem:[#allocation2 + $0x8d] sm:$0x1] %vm109_vm3, %v3909_v0  ;;  %v450_v60 = vld [vmem:[#allocation2 + $0x52] sm:$0xf] }
  0x7b   :  { %148 = vst.msk [vmem:[#allocation2 + $0x95] sm:$0x1] %vm109_vm3, %v3909_v0 }
  0x7c   :  { %149 = vst.msk [vmem:[#allocation2 + $0x9d] sm:$0x1] %vm109_vm3, %v3909_v0  ;;  %v181_v0 = vld [vmem:[#allocation2 + $0x78] sm:$0xf] }
  0x7d   :  { %157 = vst.msk [vmem:[#allocation2 + $0x31] sm:$0xf] %vm151_vm1, %v92_v52 }
  0x7e   :  { %158 = vst.msk [vmem:[#allocation2 + $0x39] sm:$0xf] %vm151_vm1, %v93_v53  ;;  %v454_v21 = vld [vmem:[#allocation2 + $0x72] sm:$0xf]  ;;  %v3669_v53 = vld [vmem:[#allocation7 + $0xb8] sm:$0xff]  }
  0x7f   :  { %165 = vst.msk [vmem:[#allocation2 + $0x81] sm:$0xf] %vm151_vm1, %v100_v54  ;;  %v455_v22 = vld [vmem:[#allocation2 + $0x7a] sm:$0xf] }
  0x80   :  { %166 = vst.msk [vmem:[#allocation2 + $0x89] sm:$0xf] %vm151_vm1, %v101_v55  ;;  %v3325_v55 = vunpack.c.h.bf16 %v3669_v53 }
  0x81   :  { %160 = vst.msk [vmem:[#allocation2 + $0x59] sm:$0xf] %vm151_vm1, %v95_v56 }
  0x82   :  { %268 = vst [vmem:[#allocation1] ss:$2 sm:$0xff] %v208_v58 }
  0x83   :  { %377 = vst [vmem:[#allocation1 + $0x20] ss:$2 sm:$0xff] %v180_v61  ;;  %v444_v61 = vld [vmem:[#allocation2 + $0x12] sm:$0xf] }
  0x84   :  { %v206_v2 = vld [vmem:[#allocation2 + $0x31] sm:$0xf]  ;;  %378 = vst [vmem:[#allocation1 + $0x21] ss:$2 sm:$0xff] %v181_v0  ;;  %v3324_v0 = vunpack.c.l.bf16 %v3669_v53  ;;  %v590_v53 = vld [vmem:[#allocation2 + $0x20] sm:$0xf] }
  0x85   :  { %v207_v4 = vld [vmem:[#allocation2 + $0x39] sm:$0xf]  ;;  %261 = vst [vmem:[#allocation1 + $0x30] ss:$2 sm:$0xff] %v206_v2  ;;  %v174_v23 = vld [vmem:[#allocation2 + $0x30] sm:$0xf] }
  0x86   :  { %263 = vst [vmem:[#allocation1 + $0x31] ss:$2 sm:$0xff] %v207_v4  ;;  %v214_v10 = vld [vmem:[#allocation2 + $0x81] sm:$0xf]  ;;  %v175_v25 = vld [vmem:[#allocation2 + $0x38] sm:$0xf] }
  0x87   :  { %161 = vst.msk [vmem:[#allocation2 + $0x61] sm:$0xf] %vm151_vm1, %v96_v3  ;;  %v215_v12 = vld [vmem:[#allocation2 + $0x89] sm:$0xf]  ;;  %v182_v38 = vld [vmem:[#allocation2 + $0x80] sm:$0xf] }
  0x88   :  { %v209_v6 = vld [vmem:[#allocation2 + $0x59] sm:$0xf]  ;;  %162 = vst.msk [vmem:[#allocation2 + $0x69] sm:$0xf] %vm151_vm1, %v97_v5  ;;  %v183_v41 = vld [vmem:[#allocation2 + $0x88] sm:$0xf] }
  0x89   :  { %269 = vst [vmem:[#allocation1 + $0x1] ss:$2 sm:$0xff] %v209_v6  ;;  %v177_v30 = vld [vmem:[#allocation2 + $0x58] sm:$0xf]  ;;  %v448_v56 = vld [vmem:[#allocation2 + $0x32] sm:$0xf] }
  0x8a   :  { %v449_v57 = vld [vmem:[#allocation2 + $0x3a] sm:$0xf]  ;;  %v456_v4 = vld [vmem:[#allocation2 + $0x82] sm:$0xf]  ;;  %v457_v7 = vld [vmem:[#allocation2 + $0x8a] sm:$0xf] }
  0x8b   :  { %v4112_v11 = vld.sshfl [vmem:[#allocation1 + $0x20] sm:$0xff pattern:$0x75316420] }
  0x8c   :  { %499 = vst [vmem:[#allocation1 + $0x20] ss:$2 sm:$0xff] %v446_v8  ;;  %v451_v62 = vld [vmem:[#allocation2 + $0x5a] sm:$0xf] }
  0x8d   :  { %v267_v14 = vld.sshfl [vmem:[#allocation1 + $0x30] sm:$0xff pattern:$0x75316420]  ;;  %501 = vst [vmem:[#allocation1 + $0x21] ss:$2 sm:$0xff] %v447_v9  ;;  %v3660_v5 = vld [vmem:[#allocation7 + $0x98] sm:$0xff]  }
  0x8e   :  { %3121 = vmatmul.msk.f32.gmra.mxu0 %vm280_vm2, %v267_v14  ;;  %274 = vst [vmem:[#allocation1 + $0x30] ss:$2 sm:$0xff] %v214_v10  ;;  %v210_v17 = vld [vmem:[#allocation2 + $0x61] sm:$0xf]  ;;  %v94_v3 = vld [vmem:[#allocation4 + $0x1c] sm:$0xf]  ;;  %v3277_v8 = vunpack.c.h.bf16 %v3660_v5  ;;  %v3276_v9 = vunpack.c.l.bf16 %v3660_v5 }
  0x8f   :  { %275 = vst [vmem:[#allocation1 + $0x31] ss:$2 sm:$0xff] %v215_v12  ;;  %v211_v19 = vld [vmem:[#allocation2 + $0x69] sm:$0xf]  ;;  %v178_v51 = vld [vmem:[#allocation2 + $0x60] sm:$0xf] }
  0x90   :  { %v276_v20 = vld.sshfl [vmem:[#allocation1] sm:$0xff pattern:$0x75316420]  ;;  %270 = vst [vmem:[#allocation1 + $0x10] ss:$2 sm:$0xff] %v210_v17  ;;  %v3659_v12 = vld [vmem:[#allocation7 + $0x90] sm:$0xff]   ;;  %836 = vmatpush.msra.mxu0 %v3277_v8 }
  0x91   :  { %354 = vst [vmem:[#allocation1] ss:$2 sm:$0xff] %v168_v16  ;;  %v179_v52 = vld [vmem:[#allocation2 + $0x68] sm:$0xf]  ;;  %v3663_v6 = vld [vmem:[#allocation7 + $0xf8] sm:$0xff]   ;;  %v3273_v17 = vunpack.c.h.bf16 %v3659_v12 }
  0x92   :  { %356 = vst [vmem:[#allocation1 + $0x1] ss:$2 sm:$0xff] %v169_v18  ;;  %v3293_v10 = vunpack.c.h.bf16 %v3663_v6  ;;  %v3292_v14 = vunpack.c.l.bf16 %v3663_v6  ;;  %v588_v16 = vld [vmem:[#allocation2 + $0x10] sm:$0xf]  ;;  %837 = vmatpush.msra.mxu0 %v3276_v9  ;;  %v595_v44 = vld [vmem:[#allocation2 + $0x58] sm:$0xf] }
  0x93   :  { %271 = vst [vmem:[#allocation1 + $0x11] ss:$2 sm:$0xff] %v211_v19  ;;  %v3662_v18 = vld [vmem:[#allocation7 + $0xf0] sm:$0xff]   ;;  %v601_v8 = vld [vmem:[#allocation2 + $0x88] sm:$0xf] }
  0x94   :  { %v4115_v24 = vld.sshfl [vmem:[#allocation1 + $0x20] sm:$0xff pattern:$0x75316420]  ;;  %159 = vst.msk [vmem:[#allocation2 + $0x41] sm:$0xf] %vm151_vm1, %v94_v3  ;;  %981 = vmatpush.msrb.mxu1 %v3293_v10  ;;  %v3668_v19 = vld [vmem:[#allocation7 + $0xb0] sm:$0xff]   ;;  %838 = vmatpush.msra.mxu0 %v3273_v17 }
  0x95   :  { %514 = vst [vmem:[#allocation1 + $0x20] ss:$2 sm:$0xff] %v454_v21  ;;  %v452_v21 = vld [vmem:[#allocation2 + $0x62] sm:$0xf]  ;;  %v3320_v43 = vunpack.c.l.bf16 %v3668_v19  ;;  %v598_v5 = vld [vmem:[#allocation2 + $0x70] sm:$0xf] }
  0x96   :  { %v4117_v26 = vld.sshfl [vmem:[#allocation1 + $0x30] sm:$0xff pattern:$0x75316420]  ;;  %3122 = vmatmul.msk.f32.gmra.mxu0 %vm280_vm2, %v276_v20  ;;  %515 = vst [vmem:[#allocation1 + $0x21] ss:$2 sm:$0xff] %v455_v22  ;;  %982 = vmatpush.msrb.mxu1 %v3292_v14  ;;  %v3289_v22 = vunpack.c.h.bf16 %v3662_v18 }
  0x97   :  { %366 = vst [vmem:[#allocation1 + $0x30] ss:$2 sm:$0xff] %v174_v23  ;;  %v3321_v23 = vunpack.c.h.bf16 %v3668_v19  ;;  %v737_v6 = vld [vmem:[#allocation2 + $0x31] sm:$0xf]  ;;  %v741_v14 = vld [vmem:[#allocation2 + $0x61] sm:$0xf] }
  0x98   :  { %368 = vst [vmem:[#allocation1 + $0x31] ss:$2 sm:$0xff] %v175_v25  ;;  %v453_v25 = vld [vmem:[#allocation2 + $0x6a] sm:$0xf]  ;;  %983 = vmatpush.msrb.mxu1 %v3289_v22  ;;  %v735_v17 = vld [vmem:[#allocation2 + $0x21] sm:$0xf] }
  0x99   :  { %v4120_v33 = vld.sshfl [vmem:[#allocation1] sm:$0xff pattern:$0x75316420] }
  0x9a   :  { %373 = vst [vmem:[#allocation1] ss:$2 sm:$0xff] %v176_v27  ;;  %v277_v36 = vld.sshfl [vmem:[#allocation1 + $0x10] sm:$0xff pattern:$0x75316420] }
  0x9b   :  { %374 = vst [vmem:[#allocation1 + $0x1] ss:$2 sm:$0xff] %v177_v30  ;;  %v599_v27 = vld [vmem:[#allocation2 + $0x78] sm:$0xf]  ;;  %v3658_v30 = vld [vmem:[#allocation7 + $0x88] sm:$0xff]  }
  0x9c   :  { %358 = vst [vmem:[#allocation1 + $0x10] ss:$2 sm:$0xff] %v170_v31  ;;  %v3288_v31 = vunpack.c.l.bf16 %v3662_v18  ;;  %v3269_v32 = vunpack.c.h.bf16 %v3658_v30  ;;  %v744_v22 = vld [vmem:[#allocation2 + $0x79] sm:$0xf] }
  0x9d   :  { %v520_v40 = vld.sshfl [vmem:[#allocation1 + $0x20] sm:$0xff pattern:$0x75316420]  ;;  %360 = vst [vmem:[#allocation1 + $0x11] ss:$2 sm:$0xff] %v171_v34  ;;  %v3661_v34 = vld [vmem:[#allocation7 + $0xe8] sm:$0xff]  }
  0x9e   :  { %3140 = vmatmul.msk.f32.vlgmr.msra.gmra.mxu3 %vm280_vm2, %v520_v40  ;;  %3123 = vmatmul.msk.f32.gmra.mxu0 %vm280_vm2, %v277_v36  ;;  %644 = vst [vmem:[#allocation1 + $0x20] ss:$2 sm:$0xff] %v591_v59  ;;  %v593_v36 = vld [vmem:[#allocation2 + $0x38] sm:$0xf]  ;;  %v3285_v37 = vunpack.c.h.bf16 %v3661_v34  ;;  %v3284_v40 = vunpack.c.l.bf16 %v3661_v34  ;;  %v3665_v59 = vld [vmem:[#allocation7 + $0x50] sm:$0xff]  }
  0x9f   :  { %v372_v42 = vld.sshfl [vmem:[#allocation1 + $0x30] sm:$0xff pattern:$0x75316420]  ;;  %1272 = vmatpush.msra.mxu3 %v3325_v55  ;;  %984 = vmatpush.msrb.mxu1 %v3288_v31  ;;  %v102_v55 = vld [vmem:[#allocation4 + $0x3c] sm:$0xf] }
  0xa0   :  { %3129 = vmatmul.msk.f32.gmra.mxu1 %vm280_vm2, %v372_v42  ;;  %379 = vst [vmem:[#allocation1 + $0x30] ss:$2 sm:$0xff] %v182_v38  ;;  %v594_v38 = vld [vmem:[#allocation2 + $0x40] sm:$0xf]  ;;  %v3265_v42 = vunpack.c.h.bf16 %v3263_v35  ;;  %v742_v34 = vld [vmem:[#allocation2 + $0x69] sm:$0xf] }
  0xa1   :  { %380 = vst [vmem:[#allocation1 + $0x31] ss:$2 sm:$0xff] %v183_v41  ;;  %1273 = vmatpush.msra.mxu3 %v3324_v0  ;;  %v600_v41 = vld [vmem:[#allocation2 + $0x80] sm:$0xf]  ;;  %985 = vmatpush.msrb.mxu1 %v3285_v37  ;;  %v733_v0 = vld [vmem:[#allocation2 + $0x11] sm:$0xf] }
  0xa2   :  { %v381_v49 = vld.sshfl [vmem:[#allocation1] sm:$0xff pattern:$0x75316420]  ;;  %167 = vst.msk [vmem:[#allocation2 + $0x91] sm:$0xf] %vm151_vm1, %v102_v55 }
  0xa3   :  { %491 = vst [vmem:[#allocation1] ss:$2 sm:$0xff] %v442_v45  ;;  %1274 = vmatpush.msra.mxu3 %v3321_v23  ;;  %v3666_v45 = vld [vmem:[#allocation7 + $0x58] sm:$0xff]   ;;  %986 = vmatpush.msrb.mxu1 %v3284_v40  ;;  %v745_v23 = vld [vmem:[#allocation2 + $0x81] sm:$0xf] }
  0xa4   :  { %493 = vst [vmem:[#allocation1 + $0x1] ss:$2 sm:$0xff] %v443_v47  ;;  %v4125_v54 = vld.sshfl [vmem:[#allocation1 + $0x10] sm:$0xff pattern:$0x75316420]  ;;  %v3309_v48 = vunpack.c.h.bf16 %v3666_v45 }
  0xa5   :  { %375 = vst [vmem:[#allocation1 + $0x10] ss:$2 sm:$0xff] %v178_v51  ;;  %v596_v47 = vld [vmem:[#allocation2 + $0x60] sm:$0xf]  ;;  %v3264_v51 = vunpack.c.l.bf16 %v3263_v35  ;;  %1275 = vmatpush.msra.mxu3 %v3320_v43  ;;  %v882_v37 = vld [vmem:[#allocation2 + $0x32] sm:$0xf] }
  0xa6   :  { %376 = vst [vmem:[#allocation1 + $0x11] ss:$2 sm:$0xff] %v179_v52  ;;  %3124 = vmatmul.msk.f32.gmra.mxu0 %vm280_vm2, %v4051_v50  ;;  %v592_v50 = vld [vmem:[#allocation2 + $0x30] sm:$0xf]  ;;  %1127 = vmatpush.msrb.mxu2 %v3309_v48  ;;  %v879_v43 = vld [vmem:[#allocation2 + $0x1a] sm:$0xf] }
  0xa7   :  { %646 = vst [vmem:[#allocation1 + $0x21] ss:$2 sm:$0xff] %v592_v50  ;;  %v597_v50 = vld [vmem:[#allocation2 + $0x68] sm:$0xf]  ;;  %v889_v48 = vld [vmem:[#allocation2 + $0x7a] sm:$0xf] }
  0xa8   :  { %3130 = vmatmul.msk.f32.gmra.mxu1 %vm280_vm2, %v381_v49  ;;  %v4130_v58 = vld.sshfl [vmem:[#allocation1 + $0x30] sm:$0xff pattern:$0x75316420]  ;;  %v884_v55 = vld [vmem:[#allocation2 + $0x42] sm:$0xf] }
  0xa9   :  { %503 = vst [vmem:[#allocation1 + $0x30] ss:$2 sm:$0xff] %v448_v56  ;;  %v602_v10 = vld [vmem:[#allocation2 + $0x90] sm:$0xf] }
  0xaa   :  { %505 = vst [vmem:[#allocation1 + $0x31] ss:$2 sm:$0xff] %v449_v57  ;;  %v747_v40 = vld [vmem:[#allocation2 + $0x91] sm:$0xf] }
  0xab   :  { %v506_v63 = vld.sshfl [vmem:[#allocation1] sm:$0xff pattern:$0x75316420] }
  0xac   :  { %3134 = vmatmul.msk.f32.vlgmr.msra.gmra.mxu2 %vm280_vm2, %v506_v63  ;;  %510 = vst [vmem:[#allocation1] ss:$2 sm:$0xff] %v450_v60  ;;  %v3667_v60 = vld [vmem:[#allocation7 + $0xa8] sm:$0xff]  }
  0xad   :  { %v382_v2 = vld.sshfl [vmem:[#allocation1 + $0x10] sm:$0xff pattern:$0x75316420]  ;;  %511 = vst [vmem:[#allocation1 + $0x1] ss:$2 sm:$0xff] %v451_v62 }
  0xae   :  { %495 = vst [vmem:[#allocation1 + $0x10] ss:$2 sm:$0xff] %v444_v61  ;;  %3125 = vmatmul.msk.f32.gmra.mxu0 %vm280_vm2, %v4117_v26  ;;  %v3272_v26 = vunpack.c.l.bf16 %v3659_v12  ;;  %v4144_v29 = vld.sshfl [vmem:[#allocation1 + $0x20] sm:$0xff pattern:$0x75316420]  ;;  %v3664_v61 = vld [vmem:[#allocation7 + $0x48] sm:$0xff]  }
  0xaf   :  { %497 = vst [vmem:[#allocation1 + $0x11] ss:$2 sm:$0xff] %v445_v1  ;;  %v736_v62 = vld [vmem:[#allocation2 + $0x29] sm:$0xf]  ;;  %v3317_v1 = vunpack.c.h.bf16 %v3667_v60  ;;  %v740_v12 = vld [vmem:[#allocation2 + $0x59] sm:$0xf] }
  0xb0   :  { %3131 = vmatmul.msk.f32.gmra.mxu1 %vm280_vm2, %v382_v2  ;;  %839 = vmatpush.msra.mxu0 %v3272_v26  ;;  %659 = vst [vmem:[#allocation1 + $0x20] ss:$2 sm:$0xff] %v599_v27  ;;  %v732_v63 = vld [vmem:[#allocation2 + $0x9] sm:$0xf]  ;;  %v738_v27 = vld [vmem:[#allocation2 + $0x39] sm:$0xf] }
  0xb1   :  { %v4136_v13 = vld.sshfl [vmem:[#allocation1 + $0x30] sm:$0xff pattern:$0x75316420]  ;;  %660 = vst [vmem:[#allocation1 + $0x21] ss:$2 sm:$0xff] %v600_v41  ;;  %1276 = vmatpush.msra.mxu3 %v3317_v1 }
  0xb2   :  { %516 = vst [vmem:[#allocation1 + $0x30] ss:$2 sm:$0xff] %v456_v4  ;;  %840 = vmatpush.msra.mxu0 %v3269_v32  ;;  %v3301_v4 = vunpack.c.h.bf16 %v3664_v61  ;;  %v878_v32 = vld [vmem:[#allocation2 + $0x12] sm:$0xf]  ;;  %v885_v41 = vld [vmem:[#allocation2 + $0x5a] sm:$0xf] }
  0xb3   :  { %517 = vst [vmem:[#allocation1 + $0x31] ss:$2 sm:$0xff] %v457_v7  ;;  %v1028_v1 = vld [vmem:[#allocation2 + $0x38] sm:$0xf] }
  0xb4   :  { %v4139_v20 = vld.sshfl [vmem:[#allocation1] sm:$0xff pattern:$0x75316420] }
  0xb5   :  { %636 = vst [vmem:[#allocation1] ss:$2 sm:$0xff] %v587_v15  ;;  %v3300_v15 = vunpack.c.l.bf16 %v3664_v61  ;;  %v887_v61 = vld [vmem:[#allocation2 + $0x6a] sm:$0xf] }
  0xb6   :  { %v507_v28 = vld.sshfl [vmem:[#allocation1 + $0x10] sm:$0xff pattern:$0x75316420]  ;;  %638 = vst [vmem:[#allocation1 + $0x1] ss:$2 sm:$0xff] %v588_v16  ;;  %3126 = vmatmul.msk.f32.vlgmr.msrb.gmra.mxu0 %vm280_vm2, %v4120_v33  ;;  %v3268_v33 = vunpack.c.l.bf16 %v3658_v30  ;;  %v3295_v16 = vld [vmem:[#allocation7 + $0x40] sm:$0xff]  }
  0xb7   :  { %3135 = vmatmul.msk.f32.gmra.mxu2 %vm280_vm2, %v507_v28  ;;  %512 = vst [vmem:[#allocation1 + $0x10] ss:$2 sm:$0xff] %v452_v21  ;;  %v3297_v18 = vunpack.c.h.bf16 %v3295_v16  ;;  %v3296_v21 = vunpack.c.l.bf16 %v3295_v16  ;;  %v739_v28 = vld [vmem:[#allocation2 + $0x41] sm:$0xf]  ;;  %v877_v30 = vld [vmem:[#allocation2 + $0xa] sm:$0xf] }
  0xb8   :  { %3132 = vmatmul.msk.f32.gmra.mxu1 %vm280_vm2, %v4112_v11  ;;  %513 = vst [vmem:[#allocation1 + $0x11] ss:$2 sm:$0xff] %v453_v25  ;;  %v3279_v11 = vld [vmem:[#allocation7 + $0xe0] sm:$0xff]   ;;  %841 = vmatpush.msra.mxu0 %v3268_v33  ;;  %v4159_v2 = vld.sshfl [vmem:[#allocation1 + $0x20] sm:$0xff pattern:$0x75316420] }
  0xb9   :  { %v3281_v52 = vunpack.c.h.bf16 %v3279_v11  ;;  %v3280_v57 = vunpack.c.l.bf16 %v3279_v11  ;;  %789 = vst [vmem:[#allocation1 + $0x20] ss:$2 sm:$0xff] %v736_v62 }
  0xba   :  { %v521_v39 = vld.sshfl [vmem:[#allocation1 + $0x30] sm:$0xff pattern:$0x75316420]  ;;  %842 = vmatpush.msra.mxu0 %v3265_v42  ;;  %791 = vst [vmem:[#allocation1 + $0x21] ss:$2 sm:$0xff] %v737_v6  ;;  %v3311_v42 = vld [vmem:[#allocation7 + $0xa0] sm:$0xff]  }
  0xbb   :  { %3141 = vmatmul.msk.f32.gmra.mxu3 %vm280_vm2, %v521_v39  ;;  %648 = vst [vmem:[#allocation1 + $0x30] ss:$2 sm:$0xff] %v593_v36  ;;  %987 = vmatpush.msrb.mxu1 %v3281_v52  ;;  %v881_v36 = vld [vmem:[#allocation2 + $0x2a] sm:$0xf]  ;;  %v892_v6 = vld [vmem:[#allocation2 + $0x92] sm:$0xf] }
  0xbc   :  { %650 = vst [vmem:[#allocation1 + $0x31] ss:$2 sm:$0xff] %v594_v38  ;;  %843 = vmatpush.msra.mxu0 %v3264_v51  ;;  %v746_v39 = vld [vmem:[#allocation2 + $0x89] sm:$0xf]  ;;  %v890_v51 = vld [vmem:[#allocation2 + $0x82] sm:$0xf] }
  0xbd   :  { %v651_v49 = vld.sshfl [vmem:[#allocation1] sm:$0xff pattern:$0x75316420]  ;;  %988 = vmatpush.msrb.mxu1 %v3280_v57 }
  0xbe   :  { %3127 = vmatmul.msk.f32.gmra.mxu0 %vm280_vm2, %v4125_v54  ;;  %655 = vst [vmem:[#allocation1] ss:$2 sm:$0xff] %v595_v44  ;;  %v3308_v54 = vunpack.c.l.bf16 %v3666_v45  ;;  %v886_v44 = vld [vmem:[#allocation2 + $0x62] sm:$0xf]  ;;  %v3313_v45 = vunpack.c.h.bf16 %v3311_v42  ;;  %v3672_v57 = vld [vmem:[#allocation7 + $0x118] sm:$0xff]  }
  0xbf   :  { %3136 = vmatmul.msk.f32.gmra.mxu2 %vm280_vm2, %v4115_v24  ;;  %v4153_v56 = vld.sshfl [vmem:[#allocation1 + $0x10] sm:$0xff pattern:$0x75316420]  ;;  %656 = vst [vmem:[#allocation1 + $0x1] ss:$2 sm:$0xff] %v596_v47  ;;  %v3305_v24 = vunpack.c.h.bf16 %v3665_v59 }
  0xc0   :  { %3133 = vmatmul.msk.f32.gmra.mxu1 %vm280_vm2, %v4130_v58  ;;  %640 = vst [vmem:[#allocation1 + $0x10] ss:$2 sm:$0xff] %v589_v46  ;;  %1128 = vmatpush.msrb.mxu2 %v3308_v54  ;;  %v3304_v58 = vunpack.c.l.bf16 %v3665_v59  ;;  %v880_v47 = vld [vmem:[#allocation2 + $0x22] sm:$0xf]  ;;  %v1023_v54 = vld [vmem:[#allocation2 + $0x10] sm:$0xf] }
  0xc1   :  { %642 = vst [vmem:[#allocation1 + $0x11] ss:$2 sm:$0xff] %v590_v53  ;;  %v798_v26 = vld.sshfl [vmem:[#allocation1 + $0x20] sm:$0xff pattern:$0x75316420] }
  0xc2   :  { %1129 = vmatpush.msrb.mxu2 %v3305_v24  ;;  %804 = vst [vmem:[#allocation1 + $0x20] ss:$2 sm:$0xff] %v744_v22  ;;  %v883_v53 = vld [vmem:[#allocation2 + $0x3a] sm:$0xf]  ;;  %v3341_v24 = vunpack.c.h.bf16 %v3672_v57  ;;  %v1030_v22 = vld [vmem:[#allocation2 + $0x48] sm:$0xf] }
  0xc3   :  { %3142 = vmatmul.msk.f32.vlgmr.msrb.gmra.mxu3 %vm280_vm2, %v651_v49  ;;  %v654_v9 = vld.sshfl [vmem:[#allocation1 + $0x30] sm:$0xff pattern:$0x75316420]  ;;  %805 = vst [vmem:[#allocation1 + $0x21] ss:$2 sm:$0xff] %v745_v23 }
  0xc4   :  { %1130 = vmatpush.msrb.mxu2 %v3304_v58  ;;  %661 = vst [vmem:[#allocation1 + $0x30] ss:$2 sm:$0xff] %v601_v8  ;;  %1417 = vmatpush.msrb.mxu0 %v3341_v24  ;;  %v1031_v8 = vld [vmem:[#allocation2 + $0x60] sm:$0xf] }
  0xc5   :  { %662 = vst [vmem:[#allocation1 + $0x31] ss:$2 sm:$0xff] %v602_v10  ;;  %v1032_v10 = vld [vmem:[#allocation2 + $0x68] sm:$0xf] }
  0xc6   :  { %v4161_v3 = vld.sshfl [vmem:[#allocation1] sm:$0xff pattern:$0x75316420]  ;;  %1131 = vmatpush.msrb.mxu2 %v3301_v4  ;;  %v4199_v4 = vpop.f32.mrf.mxu0 }
  0xc7   :  { %3137 = vmatmul.msk.f32.gmra.mxu2 %vm280_vm2, %v4136_v13  ;;  %781 = vst [vmem:[#allocation1] ss:$2 sm:$0xff] %v732_v63  ;;  %v734_v13 = vld [vmem:[#allocation2 + $0x19] sm:$0xf]  ;;  %v888_v63 = vld [vmem:[#allocation2 + $0x72] sm:$0xf] }
  0xc8   :  { %v652_v7 = vld.sshfl [vmem:[#allocation1 + $0x10] sm:$0xff pattern:$0x75316420]  ;;  %783 = vst [vmem:[#allocation1 + $0x1] ss:$2 sm:$0xff] %v733_v0  ;;  %1132 = vmatpush.msrb.mxu2 %v3300_v15 }
  0xc9   :  { %657 = vst [vmem:[#allocation1 + $0x10] ss:$2 sm:$0xff] %v597_v50  ;;  %v1027_v0 = vld [vmem:[#allocation2 + $0x30] sm:$0xf]  ;;  %v1035_v15 = vld [vmem:[#allocation2 + $0x80] sm:$0xf] }
  0xca   :  { %658 = vst [vmem:[#allocation1 + $0x11] ss:$2 sm:$0xff] %v598_v5  ;;  %1133 = vmatpush.msrb.mxu2 %v3297_v18  ;;  %v4181_v38 = vld.sshfl [vmem:[#allocation1 + $0x20] sm:$0xff pattern:$0x75316420]  ;;  %v3340_v5 = vunpack.c.l.bf16 %v3672_v57 }
  0xcb   :  { %3143 = vmatmul.msk.f32.gmra.mxu3 %vm280_vm2, %v652_v7  ;;  %934 = vst [vmem:[#allocation1 + $0x20] ss:$2 sm:$0xff] %v881_v36  ;;  %v3327_v36 = vld [vmem:[#allocation7 + $0x100] sm:$0xff]  }
  0xcc   :  { %1134 = vmatpush.msrb.mxu2 %v3296_v21  ;;  %v4173_v31 = vld.sshfl [vmem:[#allocation1 + $0x30] sm:$0xff pattern:$0x75316420]  ;;  %936 = vst [vmem:[#allocation1 + $0x21] ss:$2 sm:$0xff] %v882_v37  ;;  %1418 = vmatpush.msrb.mxu0 %v3340_v5 }
  0xcd   :  { %793 = vst [vmem:[#allocation1 + $0x30] ss:$2 sm:$0xff] %v738_v27 }
  0xce   :  { %795 = vst [vmem:[#allocation1 + $0x31] ss:$2 sm:$0xff] %v739_v28  ;;  %v1034_v28 = vld [vmem:[#allocation2 + $0x78] sm:$0xf] }
  0xcf   :  { %3138 = vmatmul.msk.f32.gmra.mxu2 %vm280_vm2, %v4139_v20  ;;  %v796_v19 = vld.sshfl [vmem:[#allocation1] sm:$0xff pattern:$0x75316420]  ;;  %v3316_v20 = vunpack.c.l.bf16 %v3667_v60 }
  0xd0   :  { %3150 = vmatmul.msk.f32.vlgmr.msra.gmra.mxu0 %vm280_vm2, %v796_v19  ;;  %800 = vst [vmem:[#allocation1] ss:$2 sm:$0xff] %v740_v12  ;;  %v1024_v60 = vld [vmem:[#allocation2 + $0x18] sm:$0xf]  ;;  %v1029_v19 = vld [vmem:[#allocation2 + $0x40] sm:$0xf] }
  0xd1   :  { %801 = vst [vmem:[#allocation1 + $0x1] ss:$2 sm:$0xff] %v741_v14  ;;  %v4169_v25 = vld.sshfl [vmem:[#allocation1 + $0x10] sm:$0xff pattern:$0x75316420]  ;;  %1277 = vmatpush.msra.mxu3 %v3316_v20 }
  0xd2   :  { %785 = vst [vmem:[#allocation1 + $0x10] ss:$2 sm:$0xff] %v734_v13  ;;  %v1026_v14 = vld [vmem:[#allocation2 + $0x28] sm:$0xf]  ;;  %v1033_v20 = vld [vmem:[#allocation2 + $0x70] sm:$0xf] }
  0xd3   :  { %3144 = vmatmul.msk.f32.gmra.mxu3 %vm280_vm2, %v4144_v29  ;;  %787 = vst [vmem:[#allocation1 + $0x11] ss:$2 sm:$0xff] %v735_v17  ;;  %v743_v29 = vld [vmem:[#allocation2 + $0x71] sm:$0xf]  ;;  %v1036_v13 = vld [vmem:[#allocation2 + $0x88] sm:$0xf] }
  0xd4   :  { %1278 = vmatpush.msra.mxu3 %v3313_v45  ;;  %v943_v52 = vld.sshfl [vmem:[#allocation1 + $0x20] sm:$0xff pattern:$0x75316420]  ;;  %v1177_v45 = vld [vmem:[#allocation2 + $0x69] sm:$0xf] }
  0xd5   :  { %v799_v11 = vld.sshfl [vmem:[#allocation1 + $0x30] sm:$0xff pattern:$0x75316420]  ;;  %949 = vst [vmem:[#allocation1 + $0x20] ss:$2 sm:$0xff] %v889_v48  ;;  %v4209_v18 = vpop.f32.mrf.mxu0 }
  0xd6   :  { %806 = vst [vmem:[#allocation1 + $0x30] ss:$2 sm:$0xff] %v746_v39  ;;  %v1171_v48 = vld [vmem:[#allocation2 + $0x29] sm:$0xf] }
  0xd7   :  { %3139 = vmatmul.msk.f32.gmra.mxu2 %vm280_vm2, %v4153_v56  ;;  %807 = vst [vmem:[#allocation1 + $0x31] ss:$2 sm:$0xff] %v747_v40  ;;  %v3312_v56 = vunpack.c.l.bf16 %v3311_v42  ;;  %v1037_v40 = vld [vmem:[#allocation2 + $0x90] sm:$0xf]  ;;  %v1038_v42 = vld [vmem:[#allocation2 + $0x98] sm:$0xf] }
  0xd8   :  { %v4177_v35 = vld.sshfl [vmem:[#allocation1] sm:$0xff pattern:$0x75316420]  ;;  %950 = vst [vmem:[#allocation1 + $0x21] ss:$2 sm:$0xff] %v890_v51 }
  0xd9   :  { %926 = vst [vmem:[#allocation1] ss:$2 sm:$0xff] %v877_v30  ;;  %1279 = vmatpush.msra.mxu3 %v3312_v56  ;;  %v1172_v30 = vld [vmem:[#allocation2 + $0x31] sm:$0xf]  ;;  %v1174_v51 = vld [vmem:[#allocation2 + $0x41] sm:$0xf] }
  0xda   :  { %928 = vst [vmem:[#allocation1 + $0x1] ss:$2 sm:$0xff] %v878_v32  ;;  %v797_v33 = vld.sshfl [vmem:[#allocation1 + $0x10] sm:$0xff pattern:$0x75316420] }
  0xdb   :  { %3145 = vmatmul.msk.f32.gmra.mxu3 %vm280_vm2, %v654_v9  ;;  %3151 = vmatmul.msk.f32.gmra.mxu0 %vm280_vm2, %v797_v33  ;;  %802 = vst [vmem:[#allocation1 + $0x10] ss:$2 sm:$0xff] %v742_v34  ;;  %v1025_v9 = vld [vmem:[#allocation2 + $0x20] sm:$0xf]  ;;  %v1313_v56 = vld [vmem:[#allocation2 + $0x12] sm:$0xf] }
  0xdc   :  { %803 = vst [vmem:[#allocation1 + $0x11] ss:$2 sm:$0xff] %v743_v29  ;;  %3755 = vmatpush.msrb.mxu3 %v3341_v24  ;;  %v1314_v24 = vld [vmem:[#allocation2 + $0x1a] sm:$0xf] }
  0xdd   :  { %v4223_v39 = vpop.f32.mrf.mxu0 }
  0xde   :  { %v4189_v59 = vld.sshfl [vmem:[#allocation1 + $0x30] sm:$0xff pattern:$0x75316420]  ;;  %3756 = vmatpush.msrb.mxu3 %v3340_v5  ;;  %v1183_v5 = vld [vmem:[#allocation2 + $0x99] sm:$0xf] }
  0xdf   :  { %938 = vst [vmem:[#allocation1 + $0x30] ss:$2 sm:$0xff] %v883_v53  ;;  %v4197_v50 = vld.sshfl [vmem:[#allocation1 + $0x20] sm:$0xff pattern:$0x75316420] }
  0xe0   :  { %940 = vst [vmem:[#allocation1 + $0x31] ss:$2 sm:$0xff] %v884_v55  ;;  %v1181_v53 = vld [vmem:[#allocation2 + $0x89] sm:$0xf] }
  0xe1   :  { %v941_v46 = vld.sshfl [vmem:[#allocation1] sm:$0xff pattern:$0x75316420]  ;;  %1080 = vst [vmem:[#allocation1 + $0x20] ss:$2 sm:$0xff] %v1027_v0 }
  0xe2   :  { %3158 = vmatmul.msk.f32.vlgmr.msrb.gmra.mxu1 %vm280_vm2, %v941_v46  ;;  %945 = vst [vmem:[#allocation1] ss:$2 sm:$0xff] %v885_v41  ;;  %v3329_v41 = vunpack.c.h.bf16 %v3327_v36  ;;  %v1175_v55 = vld [vmem:[#allocation2 + $0x49] sm:$0xf]  ;;  %v1318_v0 = vld [vmem:[#allocation2 + $0x3a] sm:$0xf] }
  0xe3   :  { %3146 = vmatmul.msk.f32.gmra.mxu3 %vm280_vm2, %v4161_v3  ;;  %v4186_v49 = vld.sshfl [vmem:[#allocation1 + $0x10] sm:$0xff pattern:$0x75316420]  ;;  %946 = vst [vmem:[#allocation1 + $0x1] ss:$2 sm:$0xff] %v886_v44  ;;  %3152 = vmatmul.msk.f32.gmra.mxu0 %vm280_vm2, %v798_v26 }
  0xe4   :  { %930 = vst [vmem:[#allocation1 + $0x10] ss:$2 sm:$0xff] %v879_v43  ;;  %v891_v3 = vld [vmem:[#allocation2 + $0x8a] sm:$0xf]  ;;  %v1169_v26 = vld [vmem:[#allocation2 + $0x19] sm:$0xf] }
  0xe5   :  { %932 = vst [vmem:[#allocation1 + $0x11] ss:$2 sm:$0xff] %v880_v47  ;;  %v1176_v43 = vld [vmem:[#allocation2 + $0x61] sm:$0xf]  ;;  %v3328_v47 = vunpack.c.l.bf16 %v3327_v36 }
  0xe6   :  { %1082 = vst [vmem:[#allocation1 + $0x21] ss:$2 sm:$0xff] %v1028_v1  ;;  %v1170_v44 = vld [vmem:[#allocation2 + $0x21] sm:$0xf] }
  0xe7   :  { %v944_v7 = vld.sshfl [vmem:[#allocation1 + $0x30] sm:$0xff pattern:$0x75316420] }
  0xe8   :  { %951 = vst [vmem:[#allocation1 + $0x30] ss:$2 sm:$0xff] %v891_v3  ;;  %v1182_v3 = vld [vmem:[#allocation2 + $0x91] sm:$0xf] }
  0xe9   :  { %952 = vst [vmem:[#allocation1 + $0x31] ss:$2 sm:$0xff] %v892_v6 }
  0xea   :  { %v4191_v62 = vld.sshfl [vmem:[#allocation1] sm:$0xff pattern:$0x75316420] }
  0xeb   :  { %3147 = vmatmul.msk.f32.gmra.mxu3 %vm280_vm2, %v4169_v25  ;;  %1072 = vst [vmem:[#allocation1] ss:$2 sm:$0xff] %v1023_v54  ;;  %3153 = vmatmul.msk.f32.gmra.mxu0 %vm280_vm2, %v799_v11  ;;  %v1168_v25 = vld [vmem:[#allocation2 + $0x11] sm:$0xf] }
  0xec   :  { %v942_v58 = vld.sshfl [vmem:[#allocation1 + $0x10] sm:$0xff pattern:$0x75316420]  ;;  %1074 = vst [vmem:[#allocation1 + $0x1] ss:$2 sm:$0xff] %v1024_v60 }
  0xed   :  { %3159 = vmatmul.msk.f32.gmra.mxu1 %vm280_vm2, %v942_v58  ;;  %947 = vst [vmem:[#allocation1 + $0x10] ss:$2 sm:$0xff] %v887_v61  ;;  %v1089_v17 = vld.sshfl [vmem:[#allocation1 + $0x20] sm:$0xff pattern:$0x75316420] }
  0xee   :  { %948 = vst [vmem:[#allocation1 + $0x11] ss:$2 sm:$0xff] %v888_v63  ;;  %v1178_v60 = vld [vmem:[#allocation2 + $0x71] sm:$0xf] }
  0xef   :  { %1095 = vst [vmem:[#allocation1 + $0x20] ss:$2 sm:$0xff] %v1035_v15  ;;  %v1317_v63 = vld [vmem:[#allocation2 + $0x32] sm:$0xf] }
  0xf0   :  { %1096 = vst [vmem:[#allocation1 + $0x21] ss:$2 sm:$0xff] %v1036_v13  ;;  %v4211_v23 = vld.sshfl [vmem:[#allocation1 + $0x30] sm:$0xff pattern:$0x75316420] }
  0xf1   :  { %1084 = vst [vmem:[#allocation1 + $0x30] ss:$2 sm:$0xff] %v1029_v19  ;;  %v1321_v13 = vld [vmem:[#allocation2 + $0x62] sm:$0xf] }
  0xf2   :  { %1086 = vst [vmem:[#allocation1 + $0x31] ss:$2 sm:$0xff] %v1030_v22  ;;  %v1324_v22 = vld [vmem:[#allocation2 + $0x7a] sm:$0xf] }
  0xf3   :  { %v1087_v12 = vld.sshfl [vmem:[#allocation1] sm:$0xff pattern:$0x75316420]  ;;  %3148 = vmatmul.msk.f32.gmra.mxu3 %vm280_vm2, %v4159_v2  ;;  %3154 = vmatmul.msk.f32.gmra.mxu0 %vm280_vm2, %v4177_v35  ;;  %v3671_v2 = vld [vmem:[#allocation7 + $0x110] sm:$0xff]   ;;  %v3670_v35 = vld [vmem:[#allocation7 + $0x108] sm:$0xff]  }
  0xf4   :  { %3166 = vmatmul.msk.f32.vlgmr.msrb.gmra.mxu2 %vm280_vm2, %v1087_v12  ;;  %1091 = vst [vmem:[#allocation1] ss:$2 sm:$0xff] %v1031_v8  ;;  %v3337_v21 = vunpack.c.h.bf16 %v3671_v2  ;;  %v3336_v32 = vunpack.c.l.bf16 %v3671_v2  ;;  %v3333_v29 = vunpack.c.h.bf16 %v3670_v35  ;;  %v3332_v37 = vunpack.c.l.bf16 %v3670_v35 }
  0xf5   :  { %3160 = vmatmul.msk.f32.gmra.mxu1 %vm280_vm2, %v943_v52  ;;  %v4207_v16 = vld.sshfl [vmem:[#allocation1 + $0x10] sm:$0xff pattern:$0x75316420]  ;;  %1092 = vst [vmem:[#allocation1 + $0x1] ss:$2 sm:$0xff] %v1032_v10 }
  0xf6   :  { %1076 = vst [vmem:[#allocation1 + $0x10] ss:$2 sm:$0xff] %v1025_v9  ;;  %1419 = vmatpush.msrb.mxu0 %v3337_v21  ;;  %3757 = vmatpush.msrb.mxu3 %v3337_v21  ;;  %v1180_v52 = vld [vmem:[#allocation2 + $0x81] sm:$0xf]  ;;  %v1316_v9 = vld [vmem:[#allocation2 + $0x2a] sm:$0xf] }
  0xf7   :  { %1078 = vst [vmem:[#allocation1 + $0x11] ss:$2 sm:$0xff] %v1026_v14  ;;  %v4221_v33 = vld.sshfl [vmem:[#allocation1 + $0x20] sm:$0xff pattern:$0x75316420] }
  0xf8   :  { %1420 = vmatpush.msrb.mxu0 %v3336_v32  ;;  %3758 = vmatpush.msrb.mxu3 %v3336_v32  ;;  %1225 = vst [vmem:[#allocation1 + $0x20] ss:$2 sm:$0xff] %v1172_v30  ;;  %v1320_v14 = vld [vmem:[#allocation2 + $0x4a] sm:$0xf]  ;;  %v1323_v21 = vld [vmem:[#allocation2 + $0x72] sm:$0xf] }
  0xf9   :  { %v1090_v11 = vld.sshfl [vmem:[#allocation1 + $0x30] sm:$0xff pattern:$0x75316420]  ;;  %v1327_v32 = vld [vmem:[#allocation2 + $0x92] sm:$0xf] }
  0xfa   :  { %1421 = vmatpush.msrb.mxu0 %v3333_v29  ;;  %3759 = vmatpush.msrb.mxu3 %v3333_v29  ;;  %1097 = vst [vmem:[#allocation1 + $0x30] ss:$2 sm:$0xff] %v1037_v40  ;;  %v4276_v40 = vpop.f32.mrf.mxu1 }
  0xfb   :  { %3149 = vmatmul.msk.f32.gmra.mxu3 %vm280_vm2, %v4173_v31  ;;  %3155 = vmatmul.msk.f32.gmra.mxu0 %vm280_vm2, %v4186_v49  ;;  %v1173_v31 = vld [vmem:[#allocation2 + $0x39] sm:$0xf]  ;;  %1098 = vst [vmem:[#allocation1 + $0x31] ss:$2 sm:$0xff] %v1038_v42 }
  0xfc   :  { %v4217_v27 = vld.sshfl [vmem:[#allocation1] sm:$0xff pattern:$0x75316420]  ;;  %1227 = vst [vmem:[#allocation1 + $0x21] ss:$2 sm:$0xff] %v1173_v31  ;;  %1422 = vmatpush.msrb.mxu0 %v3332_v37  ;;  %3760 = vmatpush.msrb.mxu3 %v3332_v37 }
  0xfd   :  { %3161 = vmatmul.msk.f32.gmra.mxu1 %vm280_vm2, %v944_v7  ;;  %1217 = vst [vmem:[#allocation1] ss:$2 sm:$0xff] %v1168_v25  ;;  %v1315_v7 = vld [vmem:[#allocation2 + $0x22] sm:$0xf] }
  0xfe   :  { %v1088_v34 = vld.sshfl [vmem:[#allocation1 + $0x10] sm:$0xff pattern:$0x75316420]  ;;  %1219 = vst [vmem:[#allocation1 + $0x1] ss:$2 sm:$0xff] %v1169_v26  ;;  %1423 = vmatpush.msrb.mxu0 %v3329_v41  ;;  %3761 = vmatpush.msrb.mxu3 %v3329_v41 }
  0xff   :  { %3167 = vmatmul.msk.f32.gmra.mxu2 %vm280_vm2, %v1088_v34  ;;  %1093 = vst [vmem:[#allocation1 + $0x10] ss:$2 sm:$0xff] %v1033_v20  ;;  %v1325_v26 = vld [vmem:[#allocation2 + $0x82] sm:$0xf]  ;;  %v1326_v20 = vld [vmem:[#allocation2 + $0x8a] sm:$0xf] }
 0x100   :  { %1094 = vst [vmem:[#allocation1 + $0x11] ss:$2 sm:$0xff] %v1034_v28  ;;  %1424 = vmatpush.msrb.mxu0 %v3328_v47  ;;  %3762 = vmatpush.msrb.mxu3 %v3328_v47  ;;  %v1328_v34 = vld [vmem:[#allocation2 + $0x9a] sm:$0xf] }
 0x102   :  { %v1102_v54 = vld.sshfl [vmem:[#allocation1 + $0x30] sm:$0xff pattern:$0x75316420] }
 0x103   :  { %3156 = vmatmul.msk.f32.gmra.mxu0 %vm280_vm2, %v4181_v38  ;;  %v1234_v49 = vld.sshfl [vmem:[#allocation1 + $0x20] sm:$0xff pattern:$0x75316420]  ;;  %1229 = vst [vmem:[#allocation1 + $0x30] ss:$2 sm:$0xff] %v1174_v51 }
 0x104   :  { %1240 = vst [vmem:[#allocation1 + $0x20] ss:$2 sm:$0xff] %v1180_v52 }
 0x105   :  { %3162 = vmatmul.msk.f32.gmra.mxu1 %vm280_vm2, %v4191_v62  ;;  %v1232_v46 = vld.sshfl [vmem:[#allocation1] sm:$0xff pattern:$0x75316420]  ;;  %1241 = vst [vmem:[#allocation1 + $0x21] ss:$2 sm:$0xff] %v1181_v53 }
 0x106   :  { %3174 = vmatmul.msk.f32.vlgmr.msra.gmra.mxu3 %vm280_vm2, %v1232_v46  ;;  %1236 = vst [vmem:[#allocation1] ss:$2 sm:$0xff] %v1176_v43  ;;  %v1179_v62 = vld [vmem:[#allocation2 + $0x79] sm:$0xf] }
 0x107   :  { %3168 = vmatmul.msk.f32.gmra.mxu2 %vm280_vm2, %v1089_v17  ;;  %v1100_v38 = vld.sshfl [vmem:[#allocation1 + $0x10] sm:$0xff pattern:$0x75316420]  ;;  %1237 = vst [vmem:[#allocation1 + $0x1] ss:$2 sm:$0xff] %v1177_v45 }
 0x108   :  { %1221 = vst [vmem:[#allocation1 + $0x10] ss:$2 sm:$0xff] %v1170_v44  ;;  %v1322_v17 = vld [vmem:[#allocation2 + $0x6a] sm:$0xf] }
 0x109   :  { %1223 = vst [vmem:[#allocation1 + $0x11] ss:$2 sm:$0xff] %v1171_v48 }
 0x10a   :  { %1231 = vst [vmem:[#allocation1 + $0x31] ss:$2 sm:$0xff] %v1175_v55 }
 0x10b   :  { %3157 = vmatmul.msk.f32.gmra.mxu0 %vm280_vm2, %v4189_v59  ;;  %v4233_v57 = vpop.f32.mrf.mxu0 }
 0x10c   :  { %v1246_v1 = vld.sshfl [vmem:[#allocation1 + $0x20] sm:$0xff pattern:$0x75316420] }
 0x10d   :  { %3163 = vmatmul.msk.f32.gmra.mxu1 %vm280_vm2, %v4207_v16  ;;  %1370 = vst [vmem:[#allocation1 + $0x20] ss:$2 sm:$0xff] %v1317_v63 }
 0x10e   :  { %v1244_v61 = vld.sshfl [vmem:[#allocation1] sm:$0xff pattern:$0x75316420]  ;;  %1372 = vst [vmem:[#allocation1 + $0x21] ss:$2 sm:$0xff] %v1318_v0 }
 0x10f   :  { %3169 = vmatmul.msk.f32.gmra.mxu2 %vm280_vm2, %v1090_v11  ;;  %1362 = vst [vmem:[#allocation1] ss:$2 sm:$0xff] %v1313_v56 }
 0x110   :  { %v1233_v59 = vld.sshfl [vmem:[#allocation1 + $0x10] sm:$0xff pattern:$0x75316420]  ;;  %1364 = vst [vmem:[#allocation1 + $0x1] ss:$2 sm:$0xff] %v1314_v24 }
 0x111   :  { %3175 = vmatmul.msk.f32.gmra.mxu3 %vm280_vm2, %v1233_v59  ;;  %1238 = vst [vmem:[#allocation1 + $0x10] ss:$2 sm:$0xff] %v1178_v60  ;;  %v1235_v6 = vld.sshfl [vmem:[#allocation1 + $0x30] sm:$0xff pattern:$0x75316420]  ;;  %v3686_v59 = vld [vmem:[#allocation9 + $0xf8] sm:$0xff]  }
 0x112   :  { %1239 = vst [vmem:[#allocation1 + $0x11] ss:$2 sm:$0xff] %v1179_v62  ;;  %v3405_v63 = vunpack.c.h.bf16 %v3686_v59  ;;  %v3404_v0 = vunpack.c.l.bf16 %v3686_v59 }
 0x113   :  { %v4239_v58 = vpop.f32.mrf.mxu0  ;;  %1242 = vst [vmem:[#allocation1 + $0x30] ss:$2 sm:$0xff] %v1182_v3 }
 0x114   :  { %1243 = vst [vmem:[#allocation1 + $0x31] ss:$2 sm:$0xff] %v1183_v5  ;;  %1716 = vmatpush.msra.mxu1 %v3405_v63 }
 0x115   :  { %3164 = vmatmul.msk.f32.gmra.mxu1 %vm280_vm2, %v4197_v50  ;;  %v1319_v50 = vld [vmem:[#allocation2 + $0x42] sm:$0xf]  ;;  %v1379_v19 = vld.sshfl [vmem:[#allocation1 + $0x20] sm:$0xff pattern:$0x75316420] }
 0x116   :  { %1385 = vst [vmem:[#allocation1 + $0x20] ss:$2 sm:$0xff] %v1325_v26  ;;  %1717 = vmatpush.msra.mxu1 %v3404_v0  ;;  %v3680_v0 = vld [vmem:[#allocation9 + $0xc8] sm:$0xff]  }
 0x117   :  { %3170 = vmatmul.msk.f32.gmra.mxu2 %vm280_vm2, %v4217_v27  ;;  %v1377_v8 = vld.sshfl [vmem:[#allocation1] sm:$0xff pattern:$0x75316420]  ;;  %1386 = vst [vmem:[#allocation1 + $0x21] ss:$2 sm:$0xff] %v1326_v20 }
 0x118   :  { %3182 = vmatmul.msk.f32.vlgmr.msrb.gmra.mxu0 %vm280_vm2, %v1377_v8  ;;  %1381 = vst [vmem:[#allocation1] ss:$2 sm:$0xff] %v1321_v13  ;;  %v3682_v20 = vld [vmem:[#allocation9 + $0xd8] sm:$0xff]  }
 0x119   :  { %3176 = vmatmul.msk.f32.gmra.mxu3 %vm280_vm2, %v1234_v49  ;;  %v1245_v10 = vld.sshfl [vmem:[#allocation1 + $0x10] sm:$0xff pattern:$0x75316420]  ;;  %1382 = vst [vmem:[#allocation1 + $0x1] ss:$2 sm:$0xff] %v1322_v17  ;;  %v3683_v17 = vld [vmem:[#allocation9 + $0xe0] sm:$0xff]  }
 0x11a   :  { %1366 = vst [vmem:[#allocation1 + $0x10] ss:$2 sm:$0xff] %v1315_v7 }
 0x11b   :  { %1368 = vst [vmem:[#allocation1 + $0x11] ss:$2 sm:$0xff] %v1316_v9  ;;  %v4247_v12 = vpop.f32.mrf.mxu0  ;;  %v1247_v15 = vld.sshfl [vmem:[#allocation1 + $0x30] sm:$0xff pattern:$0x75316420] }
 0x11c   :  { %1374 = vst [vmem:[#allocation1 + $0x30] ss:$2 sm:$0xff] %v1319_v50 }
 0x11d   :  { %3165 = vmatmul.msk.f32.gmra.mxu1 %vm280_vm2, %v4211_v23  ;;  %1376 = vst [vmem:[#allocation1 + $0x31] ss:$2 sm:$0xff] %v1320_v14  ;;  %v4284_v44 = vpop.f32.mrf.mxu1 }
 0x11e   :  { %v1391_v42 = vld.sshfl [vmem:[#allocation1 + $0x20] sm:$0xff pattern:$0x75316420] }
 0x11f   :  { %3171 = vmatmul.msk.f32.gmra.mxu2 %vm280_vm2, %v1100_v38 }
 0x120   :  { %v1389_v31 = vld.sshfl [vmem:[#allocation1] sm:$0xff pattern:$0x75316420] }
 0x121   :  { %3177 = vmatmul.msk.f32.gmra.mxu3 %vm280_vm2, %v1235_v6  ;;  %v4265_v27 = vpop.f32.mrf.mxu3 }
 0x122   :  { %v1378_v16 = vld.sshfl [vmem:[#allocation1 + $0x10] sm:$0xff pattern:$0x75316420] }
 0x123   :  { %3183 = vmatmul.msk.f32.gmra.mxu0 %vm280_vm2, %v1378_v16  ;;  %v4254_v2 = vpop.f32.mrf.mxu0  ;;  %1383 = vst [vmem:[#allocation1 + $0x10] ss:$2 sm:$0xff] %v1323_v21  ;;  %v3392_v21 = vunpack.c.l.bf16 %v3683_v17 }
 0x124   :  { %1384 = vst [vmem:[#allocation1 + $0x11] ss:$2 sm:$0xff] %v1324_v22  ;;  %v1380_v23 = vld.sshfl [vmem:[#allocation1 + $0x30] sm:$0xff pattern:$0x75316420] }
 0x125   :  { %1387 = vst [vmem:[#allocation1 + $0x30] ss:$2 sm:$0xff] %v1327_v32  ;;  %v4291_v38 = vpop.f32.mrf.mxu1 }
 0x126   :  { %1388 = vst [vmem:[#allocation1 + $0x31] ss:$2 sm:$0xff] %v1328_v34 }
 0x127   :  { %3172 = vmatmul.msk.f32.gmra.mxu2 %vm280_vm2, %v4221_v33 }
 0x129   :  { %3178 = vmatmul.msk.f32.gmra.mxu3 %vm280_vm2, %v1244_v61 }
 0x12b   :  { %3184 = vmatmul.msk.f32.gmra.mxu0 %vm280_vm2, %v1379_v19  ;;  %v4261_v25 = vpop.f32.mrf.mxu0  ;;  %v1390_v36 = vld.sshfl [vmem:[#allocation1 + $0x10] sm:$0xff pattern:$0x75316420]  ;;  %v3393_v19 = vunpack.c.h.bf16 %v3683_v17 }
 0x12d   :  { %v1392_v46 = vld.sshfl [vmem:[#allocation1 + $0x30] sm:$0xff pattern:$0x75316420]  ;;  %v4299_v53 = vpop.f32.mrf.mxu1 }
 0x12f   :  { %3173 = vmatmul.msk.f32.gmra.mxu2 %vm280_vm2, %v1102_v54  ;;  %v555_v41 = vpop.f32.mrf.mxu2 }
 0x131   :  { %3179 = vmatmul.msk.f32.gmra.mxu3 %vm280_vm2, %v1245_v10  ;;  %v3684_v10 = vld [vmem:[#allocation9 + $0xe8] sm:$0xff]  }
 0x132   :  { %v3397_v50 = vunpack.c.h.bf16 %v3684_v10  ;;  %v3396_v16 = vunpack.c.l.bf16 %v3684_v10  ;;  %v3380_v10 = vunpack.c.l.bf16 %v3680_v0 }
 0x133   :  { %3185 = vmatmul.msk.f32.gmra.mxu0 %vm280_vm2, %v1380_v23  ;;  %v418_v28 = vpop.f32.mrf.mxu0 }
 0x134   :  { %v419_v9 = vadd.f32 %v418_v28, %v4199_v4  ;;  %v3389_v28 = vunpack.c.h.bf16 %v3682_v20 }
 0x135   :  { %v4309_v60 = vpop.f32.mrf.mxu1 }
 0x136   :  { %v579_v13 = vadd.f32 %v555_v41, %v419_v9  ;;  %v3681_v41 = vld [vmem:[#allocation9 + $0xd0] sm:$0xff]  }
 0x139   :  { %3180 = vmatmul.msk.f32.gmra.mxu3 %vm280_vm2, %v1246_v1  ;;  %v3685_v1 = vld [vmem:[#allocation9 + $0xf0] sm:$0xff]  }
 0x13a   :  { %v558_v45 = vpop.f32.mrf.mxu2  ;;  %v3401_v3 = vunpack.c.h.bf16 %v3685_v1  ;;  %v3400_v7 = vunpack.c.l.bf16 %v3685_v1  ;;  %v3381_v1 = vunpack.c.h.bf16 %v3680_v0 }
 0x13b   :  { %v4271_v35 = vpop.f32.mrf.mxu0 }
 0x13c   :  { %1718 = vmatpush.msra.mxu1 %v3401_v3 }
 0x13d   :  { %v4319_v8 = vpop.f32.mrf.mxu1 }
 0x13e   :  { %v4268_v30 = vpop.f32.mrf.mxu3  ;;  %1719 = vmatpush.msra.mxu1 %v3400_v7 }
 0x140   :  { %1720 = vmatpush.msra.mxu1 %v3397_v50 }
 0x141   :  { %3181 = vmatmul.msk.f32.gmra.mxu3 %vm280_vm2, %v1247_v15  ;;  %v1612_v15 = vld [vmem:[#allocation3 + $0x1] sm:$0xf] }
 0x142   :  { %v4293_v49 = vpop.f32.mrf.mxu2  ;;  %1677 = vst [vmem:[#allocation1] ss:$2 sm:$0xff] %v1612_v15  ;;  %1721 = vmatpush.msra.mxu1 %v3396_v16  ;;  %v3375_v15 = vld [vmem:[#allocation9 + $0xc0] sm:$0xff]   ;;  %v425_v16 = vadd.f32 %v4276_v40, %v4223_v39 }
 0x143   :  { %v3377_v17 = vunpack.c.h.bf16 %v3375_v15 }
 0x144   :  { %1722 = vmatpush.msra.mxu1 %v3393_v19 }
 0x146   :  { %v700_v29 = vpop.f32.mrf.mxu3  ;;  %1723 = vmatpush.msra.mxu1 %v3392_v21  ;;  %v3679_v21 = vld [vmem:[#allocation9 + $0x38] sm:$0xff]  }
 0x147   :  { %v724_v22 = vadd.f32 %v700_v29, %v579_v13  ;;  %v3384_v29 = vunpack.c.l.bf16 %v3681_v41 }
 0x148   :  { %1724 = vmatpush.msra.mxu1 %v3389_v28 }
 0x149   :  { %3186 = vmatmul.msk.f32.vlgmr.msrb.gmra.mxu3 %vm280_vm2, %v1389_v31  ;;  %v422_v31 = vadd.f32 %v4271_v35, %v4209_v18  ;;  %v4331_v18 = vld [vmem:[%s4556_s2] ss:$0 sm:$0xff] }
 0x14a   :  { %v4303_v56 = vpop.f32.mrf.mxu2 }
 0x14b   :  { %v580_v59 = vadd.f32 %v558_v45, %v422_v31 }
 0x14d   :  { %v845_v37 = vpop.f32.mrf.mxu0 }
 0x14e   :  { %v4274_v33 = vpop.f32.mrf.mxu3  ;;  %v869_v32 = vadd.f32 %v845_v37, %v724_v22  ;;  %v3376_v22 = vunpack.c.l.bf16 %v3375_v15 }
 0x14f   :  { %v725_v35 = vadd.f32 %v4274_v33, %v580_v59  ;;  %v3373_v33 = vunpack.c.h.bf16 %v3679_v21  ;;  %v3678_v59 = vld [vmem:[#allocation9 + $0x30] sm:$0xff]  }
 0x151   :  { %3187 = vmatmul.msk.f32.gmra.mxu3 %vm280_vm2, %v1390_v36  ;;  %v3388_v36 = vunpack.c.l.bf16 %v3682_v20  ;;  %1812 = vmatpush.msra.mxu2 %v3373_v33 }
 0x152   :  { %v4313_v62 = vpop.f32.mrf.mxu2 }
 0x153   :  { %1725 = vmatpush.msra.mxu1 %v3388_v36 }
 0x156   :  { %v4279_v11 = vpop.f32.mrf.mxu3 }
 0x158   :  { %v4281_v43 = vpop.f32.mrf.mxu0 }
 0x159   :  { %3188 = vmatmul.msk.f32.gmra.mxu3 %vm280_vm2, %v1391_v42  ;;  %v3385_v42 = vunpack.c.h.bf16 %v3681_v41  ;;  %v870_v13 = vadd.f32 %v4281_v43, %v725_v35 }
 0x15a   :  { %v4322_v14 = vpop.f32.mrf.mxu2 }
 0x15b   :  { %1726 = vmatpush.msra.mxu1 %v3385_v42 }
 0x15d   :  { %1727 = vmatpush.msra.mxu1 %v3384_v29  ;;  %v3369_v29 = vunpack.c.h.bf16 %v3678_v59 }
 0x15e   :  { %v4286_v47 = vpop.f32.mrf.mxu3 }
 0x15f   :  { %v990_v23 = vpop.f32.mrf.mxu1  ;;  %1728 = vmatpush.msra.mxu1 %v3381_v1 }
 0x160   :  { %v4288_v48 = vpop.f32.mrf.mxu0 }
 0x161   :  { %3189 = vmatmul.msk.f32.gmra.mxu3 %vm280_vm2, %v1392_v46  ;;  %v1014_v46 = vadd.f32 %v990_v23, %v869_v32  ;;  %1729 = vmatpush.msra.mxu1 %v3380_v10 }
 0x163   :  { %1730 = vmatpush.msra.mxu1 %v3377_v17  ;;  %v3368_v17 = vunpack.c.l.bf16 %v3678_v59 }
 0x165   :  { %1731 = vmatpush.msra.mxu1 %v3376_v22 }
 0x166   :  { %v4295_v51 = vpop.f32.mrf.mxu3 }
 0x168   :  { %v4297_v52 = vpop.f32.mrf.mxu0 }
 0x16a   :  { %v993_v3 = vpop.f32.mrf.mxu1 }
 0x16b   :  { %v1015_v20 = vadd.f32 %v993_v3, %v870_v13 }
 0x16e   :  { %v4301_v55 = vpop.f32.mrf.mxu3 }
 0x170   :  { %v4305_v54 = vpop.f32.mrf.mxu0 }
 0x172   :  { %v996_v43 = vpop.f32.mrf.mxu1 }
 0x176   :  { %v4307_v24 = vpop.f32.mrf.mxu3 }
 0x177   :  { %v1136_v34 = vpop.f32.mrf.mxu2 }
 0x178   :  { %v4311_v61 = vpop.f32.mrf.mxu0  ;;  %v1160_v63 = vadd.f32 %v1136_v34, %v1014_v46  ;;  %v428_v34 = vadd.f32 %v4284_v44, %v4233_v57  ;;  %v3372_v46 = vunpack.c.l.bf16 %v3679_v21 }
 0x17a   :  { %1813 = vmatpush.msra.mxu2 %v3372_v46  ;;  %v999_v35 = vpop.f32.mrf.mxu1 }
 0x17c   :  { %1814 = vmatpush.msra.mxu2 %v3369_v29  ;;  %v431_v29 = vadd.f32 %v4291_v38, %v4239_v58 }
 0x17e   :  { %v4315_v5 = vpop.f32.mrf.mxu3  ;;  %1815 = vmatpush.msra.mxu2 %v3368_v17 }
 0x180   :  { %v4317_v6 = vpop.f32.mrf.mxu0 }
 0x182   :  { %v1139_v45 = vpop.f32.mrf.mxu2 }
 0x183   :  { %v1161_v40 = vadd.f32 %v1139_v45, %v1015_v20 }
 0x188   :  { %v4324_v4 = vpop.f32.mrf.mxu0 }
 0x189   :  { %v1281_v26 = vpop.f32.mrf.mxu3 }
 0x18a   :  { %v1305_v7 = vadd.f32 %v1281_v26, %v1160_v63  ;;  %v581_v26 = vadd.f32 %v4293_v49, %v425_v16  ;;  %v1142_v41 = vpop.f32.mrf.mxu2  ;;  %v582_v63 = vadd.f32 %v4303_v56, %v428_v34 }
 0x18c   :  { %v726_v39 = vadd.f32 %v4279_v11, %v581_v26  ;;  %v727_v57 = vadd.f32 %v4286_v47, %v582_v63  ;;  %v3677_v47 = vld [vmem:[#allocation9 + $0x28] sm:$0xff]  }
 0x18d   :  { %v3365_v21 = vunpack.c.h.bf16 %v3677_v47  ;;  %v3364_v33 = vunpack.c.l.bf16 %v3677_v47 }
 0x18e   :  { %v871_v31 = vadd.f32 %v4288_v48, %v726_v39 }
 0x18f   :  { %1816 = vmatpush.msra.mxu2 %v3365_v21 }
 0x190   :  { %v1016_v0 = vadd.f32 %v996_v43, %v871_v31 }
 0x191   :  { %1817 = vmatpush.msra.mxu2 %v3364_v33  ;;  %v3673_v33 = vld [vmem:[#allocation9 + $0x8] sm:$0xff]  }
 0x192   :  { %v1162_v44 = vadd.f32 %v1142_v41, %v1016_v0  ;;  %v1145_v45 = vpop.f32.mrf.mxu2 }
 0x194   :  { %v1284_v37 = vpop.f32.mrf.mxu3 }
 0x195   :  { %v1426_v9 = vpop.f32.mrf.mxu0  ;;  %v1306_v36 = vadd.f32 %v1284_v37, %v1161_v40 }
 0x196   :  { %v1450_v50 = vadd.f32 %v1426_v9, %v1305_v7  ;;  %v872_v7 = vadd.f32 %v4297_v52, %v727_v57  ;;  %v3676_v52 = vld [vmem:[#allocation9 + $0x20] sm:$0xff]  }
 0x197   :  { %v3361_v20 = vunpack.c.h.bf16 %v3676_v52  ;;  %v3360_v43 = vunpack.c.l.bf16 %v3676_v52 }
 0x198   :  { %v1462_v19 = vadd.f32 %v4331_v18, %v1450_v50  ;;  %v1017_v15 = vadd.f32 %v999_v35, %v872_v7  ;;  %v1620_v35 = vld [vmem:[#allocation3 + $0x51] sm:$0xf] }
 0x199   :  { %1818 = vmatpush.msra.mxu2 %v3361_v20  ;;  %v3349_v20 = vunpack.c.h.bf16 %v3673_v33 }
 0x19a   :  { %v1470_v23 = vmax.f32 %v1462_v19, 0.0  ;;  %v1163_v22 = vadd.f32 %v1145_v45, %v1017_v15 }
 0x19b   :  { %1819 = vmatpush.msra.mxu2 %v3360_v43 }
 0x19c   :  { %v1287_v28 = vpop.f32.mrf.mxu3  ;;  %v1486_v32 = vrot.slane %v1470_v23, 4  ;;  %1548 = vst [vmem:[#allocation3 + $0x9] sm:$0xf] %v1470_v23 }
 0x19d   :  { %v1307_v37 = vadd.f32 %v1287_v28, %v1162_v44 }
 0x19e   :  { %1549 = vst [vmem:[#allocation3 + $0x11] sm:$0xf] %v1486_v32  ;;  %v3675_v32 = vld [vmem:[#allocation9 + $0x18] sm:$0xff]  }
 0x19f   :  { %v3356_v7 = vunpack.c.l.bf16 %v3675_v32 }
 0x1a0   :  { %v1429_v42 = vpop.f32.mrf.mxu0 }
 0x1a1   :  { %v1451_v49 = vadd.f32 %v1429_v42, %v1306_v36  ;;  %v3357_v36 = vunpack.c.h.bf16 %v3675_v32 }
 0x1a3   :  { %v1613_v1 = vld [vmem:[#allocation3 + $0x9] sm:$0xf]  ;;  %v1463_v3 = vadd.f32 %v4331_v18, %v1451_v49  ;;  %1820 = vmatpush.msra.mxu2 %v3357_v36 }
 0x1a4   :  { %1679 = vst [vmem:[#allocation1 + $0x1] ss:$2 sm:$0xff] %v1613_v1  ;;  %v1290_v11 = vpop.f32.mrf.mxu3 }
 0x1a5   :  { %v1614_v48 = vld [vmem:[#allocation3 + $0x11] sm:$0xf]  ;;  %v1471_v9 = vmax.f32 %v1463_v3, 0.0  ;;  %v1308_v26 = vadd.f32 %v1290_v11, %v1163_v22  ;;  %v583_v11 = vadd.f32 %v4313_v62, %v431_v29  ;;  %v1002_v3 = vpop.f32.mrf.mxu1  ;;  %1821 = vmatpush.msra.mxu2 %v3356_v7  ;;  %v3691_v7 = vld [vmem:[#allocation9 + $0x1a8] sm:$0xff]  }
 0x1a6   :  { %1681 = vst [vmem:[#allocation1 + $0x10] ss:$2 sm:$0xff] %v1614_v48  ;;  %v1148_v48 = vpop.f32.mrf.mxu2  ;;  %v3674_v62 = vld [vmem:[#allocation9 + $0x10] sm:$0xff]  }
 0x1a7   :  { %v1487_v50 = vrot.slane %v1471_v9, 4  ;;  %1550 = vst [vmem:[#allocation3 + $0x19] sm:$0xf] %v1471_v9  ;;  %v728_v44 = vadd.f32 %v4295_v51, %v583_v11  ;;  %v3353_v45 = vunpack.c.h.bf16 %v3674_v62  ;;  %v3352_v22 = vunpack.c.l.bf16 %v3674_v62 }
 0x1a8   :  { %v1432_v10 = vpop.f32.mrf.mxu0 }
 0x1a9   :  { %v1452_v56 = vadd.f32 %v1432_v10, %v1307_v37  ;;  %1551 = vst [vmem:[#allocation3 + $0x21] sm:$0xf] %v1487_v50  ;;  %v434_v37 = vadd.f32 %v4299_v53, %v4247_v12  ;;  %v873_v58 = vadd.f32 %v4305_v54, %v728_v44  ;;  %v3693_v10 = vld [vmem:[#allocation9 + $0x1b8] sm:$0xff]   ;;  %1822 = vmatpush.msra.mxu2 %v3353_v45 }
 0x1aa   :  { %v3437_v50 = vunpack.c.h.bf16 %v3693_v10  ;;  %v3436_v12 = vunpack.c.l.bf16 %v3693_v10  ;;  %v437_v54 = vadd.f32 %v4309_v60, %v4254_v2  ;;  %v1565_v10 = vld [vmem:[#allocation3 + $0x8] sm:$0xf] }
 0x1ab   :  { %v1692_v16 = vld.sshfl [vmem:[#allocation1] sm:$0xff pattern:$0x75316420]  ;;  %v1464_v13 = vadd.f32 %v4331_v18, %v1452_v56  ;;  %v584_v51 = vadd.f32 %v4322_v14, %v434_v37  ;;  %v1018_v56 = vadd.f32 %v1002_v3, %v873_v58  ;;  %v3692_v14 = vld [vmem:[#allocation9 + $0x1b0] sm:$0xff]   ;;  %1823 = vmatpush.msra.mxu2 %v3352_v22  ;;  %v1564_v37 = vld [vmem:[#allocation3] sm:$0xf]  ;;  %v3429_v58 = vunpack.c.h.bf16 %v3691_v7 }
 0x1ac   :  { %v4348_v19 = vpop.f32.mrf.mxu3  ;;  %1732 = vmatmul.f32.vlgmr.msra.gmra.mxu1 %v1692_v16  ;;  %1696 = vst [vmem:[#allocation1] ss:$2 sm:$0xff] %v1620_v35  ;;  %1957 = vmatpush.msra.mxu3 %v3437_v50  ;;  %v585_v2 = vadd.f32 %v4265_v27, %v437_v54  ;;  %v3690_v35 = vld [vmem:[#allocation9 + $0x1a0] sm:$0xff]   ;;  %v3700_v50 = vld [vmem:[#allocation9 + $0x78] sm:$0xff]  }
 0x1ad   :  { %v1472_v23 = vmax.f32 %v1464_v13, 0.0  ;;  %v729_v15 = vadd.f32 %v4301_v55, %v584_v51  ;;  %v1164_v16 = vadd.f32 %v1148_v48, %v1018_v56  ;;  %v1005_v53 = vpop.f32.mrf.mxu1  ;;  %v3433_v55 = vunpack.c.h.bf16 %v3692_v14  ;;  %1824 = vmatpush.msra.mxu2 %v3349_v20 }
 0x1ae   :  { %v1615_v39 = vld [vmem:[#allocation3 + $0x19] sm:$0xf]  ;;  %1958 = vmatpush.msra.mxu3 %v3436_v12  ;;  %v1151_v21 = vpop.f32.mrf.mxu2  ;;  %v3425_v45 = vunpack.c.h.bf16 %v3690_v35  ;;  %v3469_v12 = vunpack.c.h.bf16 %v3700_v50  ;;  %v3468_v54 = vunpack.c.l.bf16 %v3700_v50  ;;  %v3704_v50 = vld [vmem:[#allocation9 + $0x120] sm:$0xff]  }
 0x1af   :  { %1552 = vst [vmem:[#allocation3 + $0x29] sm:$0xf] %v1472_v23  ;;  %v1488_v31 = vrot.slane %v1472_v23, 4  ;;  %v874_v13 = vadd.f32 %v4311_v61, %v729_v15  ;;  %v1309_v17 = vadd.f32 %v4348_v19, %v1164_v16  ;;  %v730_v19 = vadd.f32 %v4307_v24, %v585_v2  ;;  %v1567_v2 = vld [vmem:[#allocation3 + $0x18] sm:$0xf] }
 0x1b0   :  { %v1435_v28 = vpop.f32.mrf.mxu0  ;;  %1683 = vst [vmem:[#allocation1 + $0x11] ss:$2 sm:$0xff] %v1615_v39  ;;  %v1616_v34 = vld [vmem:[#allocation3 + $0x21] sm:$0xf]  ;;  %1959 = vmatpush.msra.mxu3 %v3433_v55  ;;  %v3348_v39 = vunpack.c.l.bf16 %v3673_v33  ;;  %v3424_v16 = vunpack.c.l.bf16 %v3690_v35  ;;  %2110 = vmatpush.msra.mxu0 %v3469_v12 }
 0x1b1   :  { %v1453_v40 = vadd.f32 %v1435_v28, %v1308_v26  ;;  %1685 = vst [vmem:[#allocation1 + $0x20] ss:$2 sm:$0xff] %v1616_v34  ;;  %v3432_v26 = vunpack.c.l.bf16 %v3692_v14  ;;  %v1019_v60 = vadd.f32 %v1005_v53, %v874_v13  ;;  %v875_v43 = vadd.f32 %v4317_v6, %v730_v19 }
 0x1b2   :  { %1553 = vst [vmem:[#allocation3 + $0x31] sm:$0xf] %v1488_v31  ;;  %1825 = vmatpush.msra.mxu2 %v3348_v39  ;;  %2111 = vmatpush.msra.mxu0 %v3468_v54  ;;  %v1856_v54 = vld [vmem:[#allocation3 + $0x1a] sm:$0xf] }
 0x1b3   :  { %v1465_v42 = vadd.f32 %v4331_v18, %v1453_v40  ;;  %1960 = vmatpush.msra.mxu3 %v3432_v26  ;;  %v1165_v28 = vadd.f32 %v1151_v21, %v1019_v60  ;;  %v3343_v40 = vld [vmem:[#allocation9] sm:$0xff]   ;;  %v1572_v21 = vld [vmem:[#allocation3 + $0x50] sm:$0xf] }
 0x1b4   :  { %v4350_v41 = vpop.f32.mrf.mxu3  ;;  %v3345_v36 = vunpack.c.h.bf16 %v3343_v40  ;;  %v3344_v56 = vunpack.c.l.bf16 %v3343_v40  ;;  %v1566_v26 = vld [vmem:[#allocation3 + $0x10] sm:$0xf]  ;;  %v3707_v40 = vld [vmem:[#allocation9 + $0x138] sm:$0xff]  }
 0x1b5   :  { %v1473_v59 = vmax.f32 %v1465_v42, 0.0  ;;  %v1310_v34 = vadd.f32 %v4350_v41, %v1165_v28  ;;  %v1008_v27 = vpop.f32.mrf.mxu1  ;;  %1961 = vmatpush.msra.mxu3 %v3429_v58  ;;  %v1853_v28 = vld [vmem:[#allocation3 + $0x2] sm:$0xf] }
 0x1b6   :  { %v1617_v49 = vld [vmem:[#allocation3 + $0x29] sm:$0xf]  ;;  %1826 = vmatpush.msra.mxu2 %v3345_v36  ;;  %v3407_v58 = vld [vmem:[#allocation9 + $0x180] sm:$0xff]  }
 0x1b7   :  { %v1693_v46 = vld.sshfl [vmem:[#allocation1 + $0x10] sm:$0xff pattern:$0x75316420]  ;;  %1687 = vst [vmem:[#allocation1 + $0x21] ss:$2 sm:$0xff] %v1617_v49  ;;  %v1489_v1 = vrot.slane %v1473_v59, 4  ;;  %v3408_v12 = vunpack.c.l.bf16 %v3407_v58 }
 0x1b8   :  { %1735 = vmatmul.f32.gmra.mxu1 %v1693_v46  ;;  %1554 = vst [vmem:[#allocation3 + $0x39] sm:$0xf] %v1473_v59  ;;  %v1154_v46 = vpop.f32.mrf.mxu2  ;;  %v1020_v59 = vadd.f32 %v1008_v27, %v875_v43  ;;  %1827 = vmatpush.msra.mxu2 %v3344_v56  ;;  %v1854_v43 = vld [vmem:[#allocation3 + $0xa] sm:$0xf]  ;;  %v1568_v27 = vld [vmem:[#allocation3 + $0x20] sm:$0xf] }
 0x1b9   :  { %v1618_v0 = vld [vmem:[#allocation3 + $0x31] sm:$0xf]  ;;  %1555 = vst [vmem:[#allocation3 + $0x41] sm:$0xf] %v1489_v1 }
 0x1ba   :  { %1689 = vst [vmem:[#allocation1 + $0x30] ss:$2 sm:$0xff] %v1618_v0  ;;  %v1166_v29 = vadd.f32 %v1154_v46, %v1020_v59  ;;  %v3688_v46 = vld [vmem:[#allocation9 + $0x190] sm:$0xff]  }
 0x1bc   :  { %v4355_v63 = vpop.f32.mrf.mxu3 }
 0x1bd   :  { %v1311_v1 = vadd.f32 %v4355_v63, %v1166_v29  ;;  %v1011_v13 = vpop.f32.mrf.mxu1  ;;  %v3699_v29 = vld [vmem:[#allocation9 + $0x70] sm:$0xff]  }
 0x1be   :  { %v1694_v57 = vld.sshfl [vmem:[#allocation1 + $0x20] sm:$0xff pattern:$0x75316420] }
 0x1bf   :  { %v1619_v38 = vld [vmem:[#allocation3 + $0x39] sm:$0xf] }
 0x1c0   :  { %1738 = vmatmul.f32.gmra.mxu1 %v1694_v57  ;;  %1691 = vst [vmem:[#allocation1 + $0x31] ss:$2 sm:$0xff] %v1619_v38  ;;  %v440_v57 = vadd.f32 %v4319_v8, %v4261_v25  ;;  %v3428_v38 = vunpack.c.l.bf16 %v3691_v7  ;;  %v3689_v8 = vld [vmem:[#allocation9 + $0x198] sm:$0xff]  }
 0x1c1   :  { %v3421_v53 = vunpack.c.h.bf16 %v3689_v8  ;;  %v3420_v14 = vunpack.c.l.bf16 %v3689_v8 }
 0x1c2   :  { %v586_v62 = vadd.f32 %v4268_v30, %v440_v57  ;;  %1962 = vmatpush.msra.mxu3 %v3428_v38  ;;  %v1861_v57 = vld [vmem:[#allocation3 + $0x52] sm:$0xf]  ;;  %v3705_v38 = vld [vmem:[#allocation9 + $0x128] sm:$0xff]  }
 0x1c4   :  { %v4362_v9 = vpop.f32.mrf.mxu3  ;;  %v731_v15 = vadd.f32 %v4315_v5, %v586_v62  ;;  %1963 = vmatpush.msra.mxu3 %v3425_v45  ;;  %v1157_v5 = vpop.f32.mrf.mxu2  ;;  %v3697_v62 = vld [vmem:[#allocation9 + $0x60] sm:$0xff]   ;;  %v3493_v45 = vunpack.c.h.bf16 %v3705_v38 }
 0x1c5   :  { %v3457_v8 = vunpack.c.h.bf16 %v3697_v62 }
 0x1c6   :  { %v876_v30 = vadd.f32 %v4324_v4, %v731_v15  ;;  %1964 = vmatpush.msra.mxu3 %v3424_v16  ;;  %v1855_v15 = vld [vmem:[#allocation3 + $0x12] sm:$0xf] }
 0x1c7   :  { %v1695_v47 = vld.sshfl [vmem:[#allocation1 + $0x30] sm:$0xff pattern:$0x75316420] }
 0x1c8   :  { %1741 = vmatmul.f32.gmra.mxu1 %v1695_v47  ;;  %1965 = vmatpush.msra.mxu3 %v3421_v53  ;;  %v3492_v53 = vunpack.c.l.bf16 %v3705_v38 }
 0x1ca   :  { %1966 = vmatpush.msra.mxu3 %v3420_v14  ;;  %v3714_v14 = vld [vmem:[#allocation9 + $0x1f8] sm:$0xff]  }
 0x1cc   :  { %v1438_v52 = vpop.f32.mrf.mxu3 }
 0x1cd   :  { %v1454_v23 = vadd.f32 %v1438_v52, %v1309_v17  ;;  %v1021_v52 = vadd.f32 %v1011_v13, %v876_v30  ;;  %v3696_v30 = vld [vmem:[#allocation9 + $0x58] sm:$0xff]  }
 0x1cf   :  { %v1466_v61 = vadd.f32 %v4331_v18, %v1454_v23  ;;  %v1167_v55 = vadd.f32 %v1157_v5, %v1021_v52  ;;  %v3489_v5 = vunpack.c.h.bf16 %v3704_v50 }
 0x1d1   :  { %v1474_v32 = vmax.f32 %v1466_v61, 0.0  ;;  %v1312_v33 = vadd.f32 %v4362_v9, %v1167_v55  ;;  %v3501_v9 = vunpack.c.h.bf16 %v3707_v40  ;;  %v3453_v55 = vunpack.c.h.bf16 %v3696_v30 }
 0x1d3   :  { %v1490_v31 = vrot.slane %v1474_v32, 4  ;;  %1556 = vst [vmem:[#allocation3 + $0x59] sm:$0xf] %v1474_v32  ;;  %2263 = vmatpush.msrb.mxu1 %v3501_v9 }
 0x1d4   :  { %v1441_v42 = vpop.f32.mrf.mxu3 }
 0x1d5   :  { %1557 = vst [vmem:[#allocation3 + $0x61] sm:$0xf] %v1490_v31  ;;  %v1455_v49 = vadd.f32 %v1441_v42, %v1310_v34  ;;  %v3500_v34 = vunpack.c.l.bf16 %v3707_v40 }
 0x1d7   :  { %v1467_v24 = vadd.f32 %v4331_v18, %v1455_v49  ;;  %2264 = vmatpush.msrb.mxu1 %v3500_v34 }
 0x1d9   :  { %v1475_v6 = vmax.f32 %v1467_v24, 0.0  ;;  %v3417_v24 = vunpack.c.h.bf16 %v3688_v46 }
 0x1da   :  { %v1621_v0 = vld [vmem:[#allocation3 + $0x59] sm:$0xf] }
 0x1db   :  { %1697 = vst [vmem:[#allocation1 + $0x1] ss:$2 sm:$0xff] %v1621_v0  ;;  %v1491_v44 = vrot.slane %v1475_v6, 4  ;;  %v1573_v4 = vld [vmem:[#allocation3 + $0x58] sm:$0xf]  ;;  %v3416_v0 = vunpack.c.l.bf16 %v3688_v46  ;;  %1967 = vmatpush.msra.mxu3 %v3417_v24 }
 0x1dc   :  { %v1622_v41 = vld [vmem:[#allocation3 + $0x61] sm:$0xf]  ;;  %v1444_v11 = vpop.f32.mrf.mxu3  ;;  %1558 = vst [vmem:[#allocation3 + $0x69] sm:$0xf] %v1475_v6  ;;  %v3687_v6 = vld [vmem:[#allocation9 + $0x188] sm:$0xff]  }
 0x1dd   :  { %1698 = vst [vmem:[#allocation1 + $0x10] ss:$2 sm:$0xff] %v1622_v41  ;;  %v1456_v3 = vadd.f32 %v1444_v11, %v1311_v1  ;;  %v1574_v31 = vld [vmem:[#allocation3 + $0x60] sm:$0xf]  ;;  %v3464_v1 = vunpack.c.l.bf16 %v3699_v29  ;;  %v3698_v41 = vld [vmem:[#allocation9 + $0x68] sm:$0xff]   ;;  %v3706_v11 = vld [vmem:[#allocation9 + $0x130] sm:$0xff]   ;;  %1968 = vmatpush.msra.mxu3 %v3416_v0 }
 0x1de   :  { %1559 = vst [vmem:[#allocation3 + $0x71] sm:$0xf] %v1491_v44  ;;  %v3413_v44 = vunpack.c.h.bf16 %v3687_v6  ;;  %v3461_v7 = vunpack.c.h.bf16 %v3698_v41  ;;  %v3460_v56 = vunpack.c.l.bf16 %v3698_v41  ;;  %v1863_v9 = vld [vmem:[#allocation3 + $0x62] sm:$0xf]  ;;  %v1570_v24 = vld [vmem:[#allocation3 + $0x30] sm:$0xf] }
 0x1df   :  { %v1468_v48 = vadd.f32 %v4331_v18, %v1456_v3  ;;  %v1569_v3 = vld [vmem:[#allocation3 + $0x28] sm:$0xf]  ;;  %v3702_v41 = vld [vmem:[#allocation9 + $0x110] sm:$0xff]   ;;  %v2014_v38 = vld [vmem:[#allocation3 + $0x58] sm:$0xf] }
 0x1e0   :  { %1969 = vmatpush.msra.mxu3 %v3413_v44  ;;  %v3712_v0 = vld [vmem:[#allocation9 + $0x1e8] sm:$0xff]   ;;  %v3480_v44 = vunpack.c.l.bf16 %v3702_v41 }
 0x1e1   :  { %v1476_v63 = vmax.f32 %v1468_v48, 0.0 }
 0x1e2   :  { %v1704_v51 = vld.sshfl [vmem:[#allocation1] sm:$0xff pattern:$0x75316420] }
 0x1e3   :  { %1773 = vst [vmem:[#allocation1] ss:$2 sm:$0xff] %v1564_v37  ;;  %v1492_v25 = vrot.slane %v1476_v63, 4  ;;  %1744 = vmatmul.f32.gmra.mxu1 %v1704_v51  ;;  %v1623_v17 = vld [vmem:[#allocation3 + $0x69] sm:$0xf]  ;;  %v3497_v37 = vunpack.c.h.bf16 %v3706_v11 }
 0x1e4   :  { %1775 = vst [vmem:[#allocation1 + $0x1] ss:$2 sm:$0xff] %v1565_v10  ;;  %v1447_v23 = vpop.f32.mrf.mxu3  ;;  %v1575_v36 = vld [vmem:[#allocation3 + $0x68] sm:$0xf]  ;;  %v3496_v10 = vunpack.c.l.bf16 %v3706_v11  ;;  %v1862_v51 = vld [vmem:[#allocation3 + $0x5a] sm:$0xf] }
 0x1e5   :  { %1560 = vst [vmem:[#allocation3 + $0x79] sm:$0xf] %v1476_v63  ;;  %v1624_v47 = vld [vmem:[#allocation3 + $0x71] sm:$0xf]  ;;  %v1457_v61 = vadd.f32 %v1447_v23, %v1312_v33  ;;  %v3412_v63 = vunpack.c.l.bf16 %v3687_v6  ;;  %2265 = vmatpush.msrb.mxu1 %v3497_v37  ;;  %v3488_v33 = vunpack.c.l.bf16 %v3704_v50  ;;  %v3525_v6 = vunpack.c.h.bf16 %v3712_v0  ;;  %v1571_v11 = vld [vmem:[#allocation3 + $0x38] sm:$0xf] }
 0x1e6   :  { %1561 = vst [vmem:[#allocation3 + $0x81] sm:$0xf] %v1492_v25  ;;  %v3409_v25 = vunpack.c.h.bf16 %v3407_v58  ;;  %v1576_v13 = vld [vmem:[#allocation3 + $0x70] sm:$0xf]  ;;  %v3711_v37 = vld [vmem:[#allocation9 + $0x1e0] sm:$0xff]  }
 0x1e7   :  { %1699 = vst [vmem:[#allocation1 + $0x11] ss:$2 sm:$0xff] %v1623_v17  ;;  %v1469_v39 = vadd.f32 %v4331_v18, %v1457_v61  ;;  %v3465_v18 = vunpack.c.h.bf16 %v3699_v29  ;;  %2266 = vmatpush.msrb.mxu1 %v3496_v10  ;;  %1970 = vmatpush.msra.mxu3 %v3412_v63  ;;  %v3456_v17 = vunpack.c.l.bf16 %v3697_v62  ;;  %v3695_v23 = vld [vmem:[#allocation9 + $0x50] sm:$0xff]   ;;  %v2015_v62 = vld [vmem:[#allocation3 + $0x60] sm:$0xf]  ;;  %v3521_v10 = vunpack.c.h.bf16 %v3711_v37 }
 0x1e8   :  { %1700 = vst [vmem:[#allocation1 + $0x20] ss:$2 sm:$0xff] %v1624_v47  ;;  %v2007_v61 = vld [vmem:[#allocation3 + $0x10] sm:$0xf]  ;;  %v3520_v50 = vunpack.c.l.bf16 %v3711_v37  ;;  %v2161_v37 = vld [vmem:[#allocation3 + $0x19] sm:$0xf] }
 0x1e9   :  { %v1477_v49 = vmax.f32 %v1469_v39, 0.0  ;;  %2112 = vmatpush.msra.mxu0 %v3465_v18  ;;  %2267 = vmatpush.msrb.mxu1 %v3493_v45  ;;  %v3694_v39 = vld [vmem:[#allocation9 + $0x48] sm:$0xff]  }
 0x1ea   :  { %1971 = vmatpush.msra.mxu3 %v3409_v25  ;;  %v3445_v18 = vunpack.c.h.bf16 %v3694_v39  ;;  %v3471_v25 = vld [vmem:[#allocation9 + $0x100] sm:$0xff]  }
 0x1eb   :  { %v1788_v22 = vld.sshfl [vmem:[#allocation1] sm:$0xff pattern:$0x75316420]  ;;  %v1493_v48 = vrot.slane %v1477_v49, 4  ;;  %1562 = vst [vmem:[#allocation3 + $0x89] sm:$0xf] %v1477_v49  ;;  %2113 = vmatpush.msra.mxu0 %v3464_v1  ;;  %2268 = vmatpush.msrb.mxu1 %v3492_v53 }
 0x1ec   :  { %1792 = vst [vmem:[#allocation1] ss:$2 sm:$0xff] %v1572_v21  ;;  %1828 = vmatmul.f32.vlgmr.msra.gmra.mxu2 %v1788_v22  ;;  %v1625_v60 = vld [vmem:[#allocation3 + $0x79] sm:$0xf]  ;;  %v3533_v22 = vunpack.c.h.bf16 %v3714_v14  ;;  %1972 = vmatpush.msra.mxu3 %v3408_v12  ;;  %v1865_v53 = vld [vmem:[#allocation3 + $0x72] sm:$0xf] }
 0x1ed   :  { %1793 = vst [vmem:[#allocation1 + $0x1] ss:$2 sm:$0xff] %v1573_v4  ;;  %v1626_v19 = vld [vmem:[#allocation3 + $0x81] sm:$0xf]  ;;  %2114 = vmatpush.msra.mxu0 %v3461_v7  ;;  %v1577_v21 = vld [vmem:[#allocation3 + $0x78] sm:$0xf]  ;;  %2269 = vmatpush.msrb.mxu1 %v3489_v5  ;;  %v3524_v7 = vunpack.c.l.bf16 %v3712_v0 }
 0x1ee   :  { %v1705_v20 = vld.sshfl [vmem:[#allocation1 + $0x10] sm:$0xff pattern:$0x75316420]  ;;  %1701 = vst [vmem:[#allocation1 + $0x21] ss:$2 sm:$0xff] %v1625_v60  ;;  %2416 = vmatpush.msrb.mxu2 %v3533_v22  ;;  %v3703_v60 = vld [vmem:[#allocation9 + $0x118] sm:$0xff]  }
 0x1ef   :  { %1777 = vst [vmem:[#allocation1 + $0x10] ss:$2 sm:$0xff] %v1566_v26  ;;  %1747 = vmatmul.f32.gmra.mxu1 %v1705_v20  ;;  %2115 = vmatpush.msra.mxu0 %v3460_v56  ;;  %v2006_v4 = vld [vmem:[#allocation3 + $0x8] sm:$0xf]  ;;  %v3532_v20 = vunpack.c.l.bf16 %v3714_v14  ;;  %v3484_v40 = vunpack.c.l.bf16 %v3703_v60  ;;  %v3721_v12 = vld [vmem:[#allocation9 + $0xb8] sm:$0xff]   ;;  %v3709_v5 = vld [vmem:[#allocation9 + $0x1d0] sm:$0xff]  }
 0x1f0   :  { %1779 = vst [vmem:[#allocation1 + $0x11] ss:$2 sm:$0xff] %v1567_v2  ;;  %v3452_v2 = vunpack.c.l.bf16 %v3696_v30  ;;  %2270 = vmatpush.msrb.mxu1 %v3488_v33  ;;  %v2009_v30 = vld [vmem:[#allocation3 + $0x20] sm:$0xf]  ;;  %v1866_v14 = vld [vmem:[#allocation3 + $0x7a] sm:$0xf] }
 0x1f1   :  { %1702 = vst [vmem:[#allocation1 + $0x30] ss:$2 sm:$0xff] %v1626_v19  ;;  %2116 = vmatpush.msra.mxu0 %v3457_v8  ;;  %v3485_v19 = vunpack.c.h.bf16 %v3703_v60  ;;  %2417 = vmatpush.msrb.mxu2 %v3532_v20  ;;  %v3564_v20 = vunpack.c.l.bf16 %v3721_v12 }
 0x1f2   :  { %1563 = vst [vmem:[#allocation3 + $0x91] sm:$0xf] %v1493_v48  ;;  %v1627_v52 = vld [vmem:[#allocation3 + $0x89] sm:$0xf] }
 0x1f3   :  { %1703 = vst [vmem:[#allocation1 + $0x31] ss:$2 sm:$0xff] %v1627_v52  ;;  %2117 = vmatpush.msra.mxu0 %v3456_v17  ;;  %2271 = vmatpush.msrb.mxu1 %v3485_v19  ;;  %v3701_v48 = vld [vmem:[#allocation9 + $0x108] sm:$0xff]  }
 0x1f4   :  { %v4384_v32 = vld.sshfl [vmem:[#allocation1] sm:$0xff pattern:$0x75316420]  ;;  %v3477_v63 = vunpack.c.h.bf16 %v3701_v48  ;;  %v3476_v45 = vunpack.c.l.bf16 %v3701_v48  ;;  %v1579_v33 = vld [vmem:[#allocation3 + $0x88] sm:$0xf] }
 0x1f5   :  { %1918 = vst [vmem:[#allocation1] ss:$2 sm:$0xff] %v1853_v28  ;;  %v1706_v59 = vld.sshfl [vmem:[#allocation1 + $0x20] sm:$0xff pattern:$0x75316420]  ;;  %2118 = vmatpush.msra.mxu0 %v3453_v55  ;;  %v3449_v28 = vunpack.c.h.bf16 %v3695_v23  ;;  %2272 = vmatpush.msrb.mxu1 %v3484_v40  ;;  %v3472_v55 = vunpack.c.l.bf16 %v3471_v25  ;;  %v3708_v19 = vld [vmem:[#allocation9 + $0x1c8] sm:$0xff]  }
 0x1f6   :  { %1920 = vst [vmem:[#allocation1 + $0x1] ss:$2 sm:$0xff] %v1854_v43  ;;  %v1857_v43 = vld [vmem:[#allocation3 + $0x22] sm:$0xf]  ;;  %v2010_v40 = vld [vmem:[#allocation3 + $0x28] sm:$0xf] }
 0x1f7   :  { %v1789_v42 = vld.sshfl [vmem:[#allocation1 + $0x10] sm:$0xff pattern:$0x75316420]  ;;  %1750 = vmatmul.f32.gmra.mxu1 %v1706_v59  ;;  %1781 = vst [vmem:[#allocation1 + $0x20] ss:$2 sm:$0xff] %v1568_v27  ;;  %2119 = vmatpush.msra.mxu0 %v3452_v2  ;;  %v4391_v59 = vld [vmem:[#allocation9 + $0x40] sm:$0xff]   ;;  %v3513_v2 = vunpack.c.h.bf16 %v3709_v5 }
 0x1f8   :  { %1794 = vst [vmem:[#allocation1 + $0x10] ss:$2 sm:$0xff] %v1574_v31  ;;  %1831 = vmatmul.f32.gmra.mxu2 %v1789_v42  ;;  %v3713_v31 = vld [vmem:[#allocation9 + $0x1f0] sm:$0xff]   ;;  %v1858_v27 = vld [vmem:[#allocation3 + $0x2a] sm:$0xf]  ;;  %v3440_v56 = vunpack.c.l.bf16 %v4391_v59 }
 0x1f9   :  { %1795 = vst [vmem:[#allocation1 + $0x11] ss:$2 sm:$0xff] %v1575_v36  ;;  %v3448_v36 = vunpack.c.l.bf16 %v3695_v23  ;;  %v1864_v42 = vld [vmem:[#allocation3 + $0x6a] sm:$0xf]  ;;  %v3529_v49 = vunpack.c.h.bf16 %v3713_v31  ;;  %v3528_v46 = vunpack.c.l.bf16 %v3713_v31  ;;  %2120 = vmatpush.msra.mxu0 %v3449_v28  ;;  %v3509_v31 = vunpack.c.h.bf16 %v3708_v19 }
 0x1fa   :  { %1783 = vst [vmem:[#allocation1 + $0x21] ss:$2 sm:$0xff] %v1569_v3  ;;  %v1707_v1 = vld.sshfl [vmem:[#allocation1 + $0x30] sm:$0xff pattern:$0x75316420]  ;;  %v3444_v3 = vunpack.c.l.bf16 %v3694_v39  ;;  %v3512_v39 = vunpack.c.l.bf16 %v3709_v5  ;;  %v3716_v5 = vld [vmem:[#allocation9 + $0x90] sm:$0xff]  }
 0x1fb   :  { %2418 = vmatpush.msrb.mxu2 %v3529_v49  ;;  %2121 = vmatpush.msra.mxu0 %v3448_v36  ;;  %1785 = vst [vmem:[#allocation1 + $0x30] ss:$2 sm:$0xff] %v1570_v24  ;;  %v2159_v23 = vld [vmem:[#allocation3 + $0x9] sm:$0xf]  ;;  %v3503_v49 = vld [vmem:[#allocation9 + $0x1c0] sm:$0xff]   ;;  %v3508_v24 = vunpack.c.l.bf16 %v3708_v19 }
 0x1fc   :  { %1787 = vst [vmem:[#allocation1 + $0x31] ss:$2 sm:$0xff] %v1571_v11  ;;  %v3504_v48 = vunpack.c.l.bf16 %v3503_v49  ;;  %v2170_v19 = vld [vmem:[#allocation3 + $0x71] sm:$0xf] }
 0x1fd   :  { %v1933_v35 = vld.sshfl [vmem:[#allocation1] sm:$0xff pattern:$0x75316420]  ;;  %2419 = vmatpush.msrb.mxu2 %v3528_v46  ;;  %2122 = vmatpush.msra.mxu0 %v3445_v18  ;;  %v1859_v46 = vld [vmem:[#allocation3 + $0x32] sm:$0xf] }
 0x1fe   :  { %1937 = vst [vmem:[#allocation1] ss:$2 sm:$0xff] %v1861_v57  ;;  %1973 = vmatmul.f32.vlgmr.msra.gmra.mxu3 %v1933_v35  ;;  %v3481_v57 = vunpack.c.h.bf16 %v3702_v41  ;;  %v3441_v35 = vunpack.c.h.bf16 %v4391_v59  ;;  %v2011_v59 = vld [vmem:[#allocation3 + $0x30] sm:$0xf]  ;;  %v3505_v41 = vunpack.c.h.bf16 %v3503_v49  ;;  %v2012_v49 = vld [vmem:[#allocation3 + $0x38] sm:$0xf] }
 0x1ff   :  { %1938 = vst [vmem:[#allocation1 + $0x1] ss:$2 sm:$0xff] %v1862_v51  ;;  %1753 = vmatmul.f32.gmra.mxu1 %v1707_v1  ;;  %2420 = vmatpush.msrb.mxu2 %v3525_v6  ;;  %v2008_v51 = vld [vmem:[#allocation3 + $0x18] sm:$0xf] }
 0x200   :  { %v4387_v16 = vld.sshfl [vmem:[#allocation1 + $0x10] sm:$0xff pattern:$0x75316420]  ;;  %2273 = vmatpush.msrb.mxu1 %v3481_v57  ;;  %2123 = vmatpush.msra.mxu0 %v3444_v3  ;;  %v1860_v1 = vld [vmem:[#allocation3 + $0x3a] sm:$0xf]  ;;  %v3718_v57 = vld [vmem:[#allocation9 + $0xa0] sm:$0xff]  }
 0x201   :  { %1922 = vst [vmem:[#allocation1 + $0x10] ss:$2 sm:$0xff] %v1855_v15  ;;  %v1790_v47 = vld.sshfl [vmem:[#allocation1 + $0x20] sm:$0xff pattern:$0x75316420]  ;;  %2421 = vmatpush.msrb.mxu2 %v3524_v7 }
 0x202   :  { %1924 = vst [vmem:[#allocation1 + $0x11] ss:$2 sm:$0xff] %v1856_v54  ;;  %1834 = vmatmul.f32.gmra.mxu2 %v1790_v47  ;;  %2274 = vmatpush.msrb.mxu1 %v3480_v44  ;;  %v3710_v15 = vld [vmem:[#allocation9 + $0x1d8] sm:$0xff]   ;;  %v1578_v54 = vld [vmem:[#allocation3 + $0x80] sm:$0xf]  ;;  %v3473_v47 = vunpack.c.h.bf16 %v3471_v25 }
 0x203   :  { %1796 = vst [vmem:[#allocation1 + $0x20] ss:$2 sm:$0xff] %v1576_v13  ;;  %2124 = vmatpush.msra.mxu0 %v3441_v35  ;;  %2422 = vmatpush.msrb.mxu2 %v3521_v10  ;;  %v3517_v17 = vunpack.c.h.bf16 %v3710_v15  ;;  %v1791_v52 = vld.sshfl [vmem:[#allocation1 + $0x30] sm:$0xff pattern:$0x75316420]  ;;  %v3516_v22 = vunpack.c.l.bf16 %v3710_v15  ;;  %v3728_v7 = vld [vmem:[#allocation9 + $0x178] sm:$0xff]  }
 0x204   :  { %1797 = vst [vmem:[#allocation1 + $0x21] ss:$2 sm:$0xff] %v1577_v21  ;;  %2275 = vmatpush.msrb.mxu1 %v3477_v63  ;;  %v3565_v21 = vunpack.c.h.bf16 %v3721_v12  ;;  %v2167_v6 = vld [vmem:[#allocation3 + $0x59] sm:$0xf]  ;;  %v2168_v44 = vld [vmem:[#allocation3 + $0x61] sm:$0xf]  ;;  %v3552_v12 = vunpack.c.l.bf16 %v3718_v57 }
 0x205   :  { %2125 = vmatpush.msra.mxu0 %v3440_v56  ;;  %2423 = vmatpush.msrb.mxu2 %v3520_v50  ;;  %1798 = vst [vmem:[#allocation1 + $0x30] ss:$2 sm:$0xff] %v1578_v54  ;;  %v2162_v35 = vld [vmem:[#allocation3 + $0x21] sm:$0xf]  ;;  %v3727_v56 = vld [vmem:[#allocation9 + $0x170] sm:$0xff]   ;;  %v3717_v25 = vld [vmem:[#allocation9 + $0x98] sm:$0xff]   ;;  %v3596_v50 = vunpack.c.l.bf16 %v3728_v7 }
 0x206   :  { %v4389_v26 = vld.sshfl [vmem:[#allocation1] sm:$0xff pattern:$0x75316420]  ;;  %2276 = vmatpush.msrb.mxu1 %v3476_v45  ;;  %1799 = vst [vmem:[#allocation1 + $0x31] ss:$2 sm:$0xff] %v1579_v33  ;;  %2570 = vmatpush.msrb.mxu3 %v3565_v21  ;;  %v3593_v54 = vunpack.c.h.bf16 %v3727_v56  ;;  %v3592_v21 = vunpack.c.l.bf16 %v3727_v56  ;;  %v3723_v56 = vld [vmem:[#allocation9 + $0x150] sm:$0xff]  }
 0x207   :  { %2071 = vst [vmem:[#allocation1] ss:$2 sm:$0xff] %v2006_v4  ;;  %v3720_v4 = vld [vmem:[#allocation9 + $0xb0] sm:$0xff]   ;;  %2424 = vmatpush.msrb.mxu2 %v3517_v17  ;;  %v2018_v45 = vld [vmem:[#allocation3 + $0x78] sm:$0xf] }
 0x208   :  { %2073 = vst [vmem:[#allocation1 + $0x1] ss:$2 sm:$0xff] %v2007_v61  ;;  %2277 = vmatpush.msrb.mxu1 %v3473_v47  ;;  %v2160_v61 = vld [vmem:[#allocation3 + $0x11] sm:$0xf]  ;;  %v3561_v28 = vunpack.c.h.bf16 %v3720_v4  ;;  %2571 = vmatpush.msrb.mxu3 %v3564_v20  ;;  %v3560_v36 = vunpack.c.l.bf16 %v3720_v4  ;;  %v3549_v47 = vunpack.c.h.bf16 %v3717_v25  ;;  %v3726_v4 = vld [vmem:[#allocation9 + $0x168] sm:$0xff]  }
 0x209   :  { %v1934_v34 = vld.sshfl [vmem:[#allocation1 + $0x10] sm:$0xff pattern:$0x75316420]  ;;  %2425 = vmatpush.msrb.mxu2 %v3516_v22  ;;  %v2313_v22 = vld [vmem:[#allocation3 + $0x12] sm:$0xf] }
 0x20a   :  { %1939 = vst [vmem:[#allocation1 + $0x10] ss:$2 sm:$0xff] %v1863_v9  ;;  %1976 = vmatmul.f32.gmra.mxu3 %v1934_v34  ;;  %1837 = vmatmul.f32.gmra.mxu2 %v1791_v52  ;;  %v2017_v34 = vld [vmem:[#allocation3 + $0x70] sm:$0xf]  ;;  %v2169_v33 = vld [vmem:[#allocation3 + $0x69] sm:$0xf] }
 0x20b   :  { %1940 = vst [vmem:[#allocation1 + $0x11] ss:$2 sm:$0xff] %v1864_v42  ;;  %v4393_v29 = vld.sshfl [vmem:[#allocation1 + $0x20] sm:$0xff pattern:$0x75316420]  ;;  %2278 = vmatpush.msrb.mxu1 %v3472_v55  ;;  %2426 = vmatpush.msrb.mxu2 %v3513_v2  ;;  %v3545_v55 = vunpack.c.h.bf16 %v3716_v5  ;;  %v3715_v2 = vld [vmem:[#allocation9 + $0x88] sm:$0xff]  }
 0x20c   :  { %1926 = vst [vmem:[#allocation1 + $0x20] ss:$2 sm:$0xff] %v1857_v43  ;;  %v2016_v43 = vld [vmem:[#allocation3 + $0x68] sm:$0xf]  ;;  %2572 = vmatpush.msrb.mxu3 %v3561_v28  ;;  %v3544_v28 = vunpack.c.l.bf16 %v3716_v5 }
 0x20d   :  { %1928 = vst [vmem:[#allocation1 + $0x21] ss:$2 sm:$0xff] %v1858_v27  ;;  %v3719_v27 = vld [vmem:[#allocation9 + $0xa8] sm:$0xff]   ;;  %2427 = vmatpush.msrb.mxu2 %v3512_v39 }
 0x20e   :  { %v4403_v0 = vld.sshfl [vmem:[#allocation1 + $0x30] sm:$0xff pattern:$0x75316420]  ;;  %v3557_v18 = vunpack.c.h.bf16 %v3719_v27  ;;  %2573 = vmatpush.msrb.mxu3 %v3560_v36  ;;  %v3556_v3 = vunpack.c.l.bf16 %v3719_v27  ;;  %v2164_v27 = vld [vmem:[#allocation3 + $0x31] sm:$0xf] }
 0x20f   :  { %v2086_v58 = vld.sshfl [vmem:[#allocation1] sm:$0xff pattern:$0x75316420]  ;;  %1930 = vst [vmem:[#allocation1 + $0x30] ss:$2 sm:$0xff] %v1859_v46  ;;  %2428 = vmatpush.msrb.mxu2 %v3509_v31  ;;  %v3541_v46 = vunpack.c.h.bf16 %v3715_v2 }
 0x210   :  { %2090 = vst [vmem:[#allocation1] ss:$2 sm:$0xff] %v2014_v38  ;;  %2126 = vmatmul.f32.vlgmr.msra.gmra.mxu0 %v2086_v58  ;;  %2574 = vmatpush.msrb.mxu3 %v3557_v18  ;;  %v3597_v58 = vunpack.c.h.bf16 %v3728_v7  ;;  %v4408_v38 = vld [vmem:[#allocation9 + $0x238] sm:$0xff]   ;;  %v3535_v18 = vld [vmem:[#allocation9 + $0x80] sm:$0xff]   ;;  %v4425_v7 = vld [vmem:[#allocation10 + $0x10] sm:$0xff]  }
 0x211   :  { %2091 = vst [vmem:[#allocation1 + $0x1] ss:$2 sm:$0xff] %v2015_v62  ;;  %2429 = vmatpush.msrb.mxu2 %v3508_v24  ;;  %v3553_v62 = vunpack.c.h.bf16 %v3718_v57  ;;  %v3628_v39 = vunpack.c.l.bf16 %v4408_v38  ;;  %v3537_v57 = vunpack.c.h.bf16 %v3535_v18 }
 0x212   :  { %v4397_v8 = vld.sshfl [vmem:[#allocation1 + $0x10] sm:$0xff pattern:$0x75316420]  ;;  %1840 = vmatmul.f32.gmra.mxu2 %v4384_v32  ;;  %1932 = vst [vmem:[#allocation1 + $0x31] ss:$2 sm:$0xff] %v1860_v1  ;;  %v4406_v32 = vld [vmem:[#allocation10 + $0x18] sm:$0xff]   ;;  %2575 = vmatpush.msrb.mxu3 %v3556_v3 }
 0x213   :  { %2075 = vst [vmem:[#allocation1 + $0x10] ss:$2 sm:$0xff] %v2008_v51  ;;  %2430 = vmatpush.msrb.mxu2 %v3505_v41  ;;  %v3645_v10 = vunpack.c.h.bf16 %v4406_v32  ;;  %v3629_v51 = vunpack.c.h.bf16 %v4408_v38  ;;  %2723 = vmatpush.msrb.mxu0 %v3597_v58  ;;  %v2320_v1 = vld [vmem:[#allocation3 + $0x5a] sm:$0xf]  ;;  %v2321_v3 = vld [vmem:[#allocation3 + $0x62] sm:$0xf]  ;;  %v3536_v38 = vunpack.c.l.bf16 %v3535_v18 }
 0x214   :  { %2077 = vst [vmem:[#allocation1 + $0x11] ss:$2 sm:$0xff] %v2009_v30  ;;  %v1935_v13 = vld.sshfl [vmem:[#allocation1 + $0x20] sm:$0xff pattern:$0x75316420]  ;;  %2576 = vmatpush.msrb.mxu3 %v3553_v62 }
 0x215   :  { %1941 = vst [vmem:[#allocation1 + $0x20] ss:$2 sm:$0xff] %v1865_v53  ;;  %1979 = vmatmul.f32.gmra.mxu3 %v1935_v13  ;;  %2431 = vmatpush.msrb.mxu2 %v3504_v48  ;;  %v1867_v30 = vld [vmem:[#allocation3 + $0x82] sm:$0xf]  ;;  %v2312_v13 = vld [vmem:[#allocation3 + $0xa] sm:$0xf] }
 0x216   :  { %1942 = vst [vmem:[#allocation1 + $0x21] ss:$2 sm:$0xff] %v1866_v14  ;;  %2876 = vmatpush.msra.mxu1 %v3629_v51  ;;  %v2019_v53 = vld [vmem:[#allocation3 + $0x80] sm:$0xf]  ;;  %v1868_v14 = vld [vmem:[#allocation3 + $0x8a] sm:$0xf]  ;;  %2724 = vmatpush.msrb.mxu0 %v3596_v50 }
 0x217   :  { %3028 = vmatpush.msra.mxu2 %v3645_v10  ;;  %2577 = vmatpush.msrb.mxu3 %v3552_v12  ;;  %v2171_v10 = vld [vmem:[#allocation3 + $0x79] sm:$0xf]  ;;  %v2172_v50 = vld [vmem:[#allocation3 + $0x81] sm:$0xf] }
 0x218   :  { %v4399_v60 = vld.sshfl [vmem:[#allocation1] sm:$0xff pattern:$0x75316420]  ;;  %2725 = vmatpush.msrb.mxu0 %v3593_v54  ;;  %2877 = vmatpush.msra.mxu1 %v3628_v39  ;;  %v2468_v18 = vld [vmem:[#allocation3 + $0x20] sm:$0xf] }
 0x219   :  { %2224 = vst [vmem:[#allocation1] ss:$2 sm:$0xff] %v2159_v23  ;;  %v1936_v17 = vld.sshfl [vmem:[#allocation1 + $0x30] sm:$0xff pattern:$0x75316420]  ;;  %2578 = vmatpush.msrb.mxu3 %v3549_v47 }
 0x21a   :  { %2226 = vst [vmem:[#allocation1 + $0x1] ss:$2 sm:$0xff] %v2160_v61  ;;  %1843 = vmatmul.f32.gmra.mxu2 %v4387_v16  ;;  %v3548_v16 = vunpack.c.l.bf16 %v3717_v25  ;;  %v2163_v23 = vld [vmem:[#allocation3 + $0x29] sm:$0xf]  ;;  %2726 = vmatpush.msrb.mxu0 %v3592_v21  ;;  %v3589_v61 = vunpack.c.h.bf16 %v3726_v4  ;;  %v2323_v21 = vld [vmem:[#allocation3 + $0x72] sm:$0xf] }
 0x21b   :  { %v2087_v9 = vld.sshfl [vmem:[#allocation1 + $0x10] sm:$0xff pattern:$0x75316420]  ;;  %1943 = vst [vmem:[#allocation1 + $0x30] ss:$2 sm:$0xff] %v1867_v30 }
 0x21c   :  { %2092 = vst [vmem:[#allocation1 + $0x10] ss:$2 sm:$0xff] %v2016_v43  ;;  %2129 = vmatmul.f32.gmra.mxu0 %v2087_v9  ;;  %2579 = vmatpush.msrb.mxu3 %v3548_v16  ;;  %v3588_v43 = vunpack.c.l.bf16 %v3726_v4  ;;  %v3734_v9 = vld [vmem:[#allocation9 + $0x230] sm:$0xff]   ;;  %v2316_v47 = vld [vmem:[#allocation3 + $0x2a] sm:$0xf]  ;;  %v3732_v4 = vld [vmem:[#allocation9 + $0x220] sm:$0xff]  }
 0x21d   :  { %v4401_v42 = vld.sshfl [vmem:[#allocation1 + $0x20] sm:$0xff pattern:$0x75316420]  ;;  %2093 = vst [vmem:[#allocation1 + $0x11] ss:$2 sm:$0xff] %v2017_v34  ;;  %1982 = vmatmul.f32.gmra.mxu3 %v1936_v17  ;;  %v3725_v34 = vld [vmem:[#allocation9 + $0x160] sm:$0xff]   ;;  %2727 = vmatpush.msrb.mxu0 %v3589_v61  ;;  %v3625_v36 = vunpack.c.h.bf16 %v3734_v9  ;;  %v3624_v48 = vunpack.c.l.bf16 %v3734_v9 }
 0x21e   :  { %2079 = vst [vmem:[#allocation1 + $0x20] ss:$2 sm:$0xff] %v2010_v40  ;;  %v3644_v40 = vunpack.c.l.bf16 %v4406_v32  ;;  %2580 = vmatpush.msrb.mxu3 %v3545_v55  ;;  %v3584_v41 = vunpack.c.l.bf16 %v3725_v34  ;;  %v2315_v32 = vld [vmem:[#allocation3 + $0x22] sm:$0xf]  ;;  %v2466_v30 = vld [vmem:[#allocation3 + $0x10] sm:$0xf] }
 0x21f   :  { %2081 = vst [vmem:[#allocation1 + $0x21] ss:$2 sm:$0xff] %v2011_v59  ;;  %v3585_v59 = vunpack.c.h.bf16 %v3725_v34  ;;  %2728 = vmatpush.msrb.mxu0 %v3588_v43  ;;  %2878 = vmatpush.msra.mxu1 %v3625_v36  ;;  %v2467_v17 = vld [vmem:[#allocation3 + $0x18] sm:$0xf]  ;;  %v2474_v43 = vld [vmem:[#allocation3 + $0x60] sm:$0xf] }
 0x220   :  { %1944 = vst [vmem:[#allocation1 + $0x31] ss:$2 sm:$0xff] %v1868_v14  ;;  %3029 = vmatpush.msra.mxu2 %v3644_v40  ;;  %2581 = vmatpush.msrb.mxu3 %v3544_v28  ;;  %v2322_v14 = vld [vmem:[#allocation3 + $0x6a] sm:$0xf]  ;;  %v2165_v61 = vld [vmem:[#allocation3 + $0x39] sm:$0xf]  ;;  %v3616_v28 = vunpack.c.l.bf16 %v3732_v4 }
 0x221   :  { %v2239_v11 = vld.sshfl [vmem:[#allocation1] sm:$0xff pattern:$0x75316420]  ;;  %2729 = vmatpush.msrb.mxu0 %v3585_v59  ;;  %2879 = vmatpush.msra.mxu1 %v3624_v48  ;;  %v2166_v40 = vld [vmem:[#allocation3 + $0x41] sm:$0xf]  ;;  %v3730_v59 = vld [vmem:[#allocation9 + $0x210] sm:$0xff]  }
 0x222   :  { %2243 = vst [vmem:[#allocation1] ss:$2 sm:$0xff] %v2167_v6  ;;  %2279 = vmatmul.f32.vlgmr.msrb.gmra.mxu1 %v2239_v11  ;;  %1846 = vmatmul.f32.gmra.mxu2 %v4393_v29  ;;  %v2013_v29 = vld [vmem:[#allocation3 + $0x40] sm:$0xf]  ;;  %v3540_v6 = vunpack.c.l.bf16 %v3715_v2  ;;  %v2317_v2 = vld [vmem:[#allocation3 + $0x32] sm:$0xf]  ;;  %v3608_v48 = vunpack.c.l.bf16 %v3730_v59 }
 0x223   :  { %2244 = vst [vmem:[#allocation1 + $0x1] ss:$2 sm:$0xff] %v2168_v44  ;;  %2582 = vmatpush.msrb.mxu3 %v3541_v46  ;;  %v3724_v44 = vld [vmem:[#allocation9 + $0x158] sm:$0xff]   ;;  %2730 = vmatpush.msrb.mxu0 %v3584_v41  ;;  %v2475_v34 = vld [vmem:[#allocation3 + $0x68] sm:$0xf] }
 0x224   :  { %v4410_v63 = vld.sshfl [vmem:[#allocation1 + $0x10] sm:$0xff pattern:$0x75316420]  ;;  %v3581_v62 = vunpack.c.h.bf16 %v3724_v44  ;;  %v3580_v25 = vunpack.c.l.bf16 %v3724_v44  ;;  %v2324_v41 = vld [vmem:[#allocation3 + $0x7a] sm:$0xf] }
 0x225   :  { %2228 = vst [vmem:[#allocation1 + $0x10] ss:$2 sm:$0xff] %v2161_v37  ;;  %1985 = vmatmul.f32.gmra.mxu3 %v4389_v26  ;;  %v2314_v26 = vld [vmem:[#allocation3 + $0x1a] sm:$0xf]  ;;  %v3733_v37 = vld [vmem:[#allocation9 + $0x228] sm:$0xff]  }
 0x226   :  { %v2088_v15 = vld.sshfl [vmem:[#allocation1 + $0x20] sm:$0xff pattern:$0x75316420]  ;;  %2230 = vst [vmem:[#allocation1 + $0x11] ss:$2 sm:$0xff] %v2162_v35  ;;  %2583 = vmatpush.msrb.mxu3 %v3540_v6  ;;  %v3641_v35 = vunpack.c.h.bf16 %v4425_v7  ;;  %v3621_v51 = vunpack.c.h.bf16 %v3733_v37  ;;  %2731 = vmatpush.msrb.mxu0 %v3581_v62  ;;  %v3620_v16 = vunpack.c.l.bf16 %v3733_v37 }
 0x227   :  { %2132 = vmatmul.f32.gmra.mxu0 %v2088_v15  ;;  %2094 = vst [vmem:[#allocation1 + $0x20] ss:$2 sm:$0xff] %v2018_v45  ;;  %v4422_v24 = vld.sshfl [vmem:[#allocation1 + $0x30] sm:$0xff pattern:$0x75316420] }
 0x228   :  { %2095 = vst [vmem:[#allocation1 + $0x21] ss:$2 sm:$0xff] %v2019_v53  ;;  %2584 = vmatpush.msrb.mxu3 %v3537_v57  ;;  %3030 = vmatpush.msra.mxu2 %v3641_v35  ;;  %v2020_v15 = vld [vmem:[#allocation3 + $0x88] sm:$0xf]  ;;  %v2021_v53 = vld [vmem:[#allocation3 + $0x90] sm:$0xf] }
 0x229   :  { %2083 = vst [vmem:[#allocation1 + $0x30] ss:$2 sm:$0xff] %v2012_v49  ;;  %2880 = vmatpush.msra.mxu1 %v3621_v51  ;;  %2732 = vmatpush.msrb.mxu0 %v3580_v25  ;;  %v2469_v6 = vld [vmem:[#allocation3 + $0x28] sm:$0xf]  ;;  %v2325_v57 = vld [vmem:[#allocation3 + $0x82] sm:$0xf] }
 0x22a   :  { %v4415_v52 = vld.sshfl [vmem:[#allocation1] sm:$0xff pattern:$0x75316420]  ;;  %2085 = vst [vmem:[#allocation1 + $0x31] ss:$2 sm:$0xff] %v2013_v29  ;;  %1849 = vmatmul.f32.gmra.mxu2 %v4403_v0  ;;  %2585 = vmatpush.msrb.mxu3 %v3536_v38  ;;  %v3577_v0 = vunpack.c.h.bf16 %v3723_v56  ;;  %v3729_v38 = vld [vmem:[#allocation9 + $0x208] sm:$0xff]  }
 0x22b   :  { %2377 = vst [vmem:[#allocation1] ss:$2 sm:$0xff] %v2312_v13  ;;  %v3576_v13 = vunpack.c.l.bf16 %v3723_v56  ;;  %2881 = vmatpush.msra.mxu1 %v3620_v16  ;;  %v2173_v44 = vld [vmem:[#allocation3 + $0x89] sm:$0xf]  ;;  %v2174_v37 = vld [vmem:[#allocation3 + $0x91] sm:$0xf] }
 0x22c   :  { %2379 = vst [vmem:[#allocation1 + $0x1] ss:$2 sm:$0xff] %v2313_v22  ;;  %2733 = vmatpush.msrb.mxu0 %v3577_v0  ;;  %v3640_v22 = vunpack.c.l.bf16 %v4425_v7  ;;  %v2619_v7 = vld [vmem:[#allocation3 + $0x11] sm:$0xf]  ;;  %v2477_v51 = vld [vmem:[#allocation3 + $0x78] sm:$0xf] }
 0x22d   :  { %v2240_v20 = vld.sshfl [vmem:[#allocation1 + $0x10] sm:$0xff pattern:$0x75316420]  ;;  %1988 = vmatmul.f32.gmra.mxu3 %v4397_v8  ;;  %v2476_v35 = vld [vmem:[#allocation3 + $0x70] sm:$0xf]  ;;  %v3599_v25 = vld [vmem:[#allocation9 + $0x200] sm:$0xff]  }
 0x22e   :  { %2245 = vst [vmem:[#allocation1 + $0x10] ss:$2 sm:$0xff] %v2169_v33  ;;  %2282 = vmatmul.f32.gmra.mxu1 %v2240_v20  ;;  %v3722_v8 = vld [vmem:[#allocation9 + $0x148] sm:$0xff]   ;;  %2734 = vmatpush.msrb.mxu0 %v3576_v13  ;;  %v3617_v33 = vunpack.c.h.bf16 %v3732_v4  ;;  %v3567_v20 = vld [vmem:[#allocation9 + $0x140] sm:$0xff]   ;;  %v3601_v0 = vunpack.c.h.bf16 %v3599_v25 }
 0x22f   :  { %2246 = vst [vmem:[#allocation1 + $0x11] ss:$2 sm:$0xff] %v2170_v19  ;;  %v4420_v31 = vld.sshfl [vmem:[#allocation1 + $0x20] sm:$0xff pattern:$0x75316420]  ;;  %v3573_v55 = vunpack.c.h.bf16 %v3722_v8  ;;  %3031 = vmatpush.msra.mxu2 %v3640_v22  ;;  %v3572_v19 = vunpack.c.l.bf16 %v3722_v8  ;;  %v3568_v36 = vunpack.c.l.bf16 %v3567_v20 }
 0x230   :  { %2232 = vst [vmem:[#allocation1 + $0x20] ss:$2 sm:$0xff] %v2163_v23  ;;  %2882 = vmatpush.msra.mxu1 %v3617_v33  ;;  %v2627_v13 = vld [vmem:[#allocation3 + $0x61] sm:$0xf]  ;;  %v2628_v8 = vld [vmem:[#allocation3 + $0x69] sm:$0xf] }
 0x231   :  { %2234 = vst [vmem:[#allocation1 + $0x21] ss:$2 sm:$0xff] %v2164_v27  ;;  %v2089_v12 = vld.sshfl [vmem:[#allocation1 + $0x30] sm:$0xff pattern:$0x75316420]  ;;  %2735 = vmatpush.msrb.mxu0 %v3573_v55  ;;  %v3731_v27 = vld [vmem:[#allocation9 + $0x218] sm:$0xff]  }
 0x232   :  { %2135 = vmatmul.f32.gmra.mxu0 %v2089_v12  ;;  %2096 = vst [vmem:[#allocation1 + $0x30] ss:$2 sm:$0xff] %v2020_v15  ;;  %2883 = vmatpush.msra.mxu1 %v3616_v28  ;;  %v3613_v49 = vunpack.c.h.bf16 %v3731_v27  ;;  %v3612_v46 = vunpack.c.l.bf16 %v3731_v27  ;;  %v2318_v15 = vld [vmem:[#allocation3 + $0x3a] sm:$0xf]  ;;  %v2478_v16 = vld [vmem:[#allocation3 + $0x80] sm:$0xf] }
 0x233   :  { %v2392_v11 = vld.sshfl [vmem:[#allocation1] sm:$0xff pattern:$0x75316420]  ;;  %2097 = vst [vmem:[#allocation1 + $0x31] ss:$2 sm:$0xff] %v2021_v53  ;;  %2736 = vmatpush.msrb.mxu0 %v3572_v19 }
 0x234   :  { %2396 = vst [vmem:[#allocation1] ss:$2 sm:$0xff] %v2320_v1  ;;  %2432 = vmatmul.f32.vlgmr.msrb.gmra.mxu2 %v2392_v11  ;;  %2884 = vmatpush.msra.mxu1 %v3613_v49  ;;  %v2471_v12 = vld [vmem:[#allocation3 + $0x38] sm:$0xf]  ;;  %v2319_v53 = vld [vmem:[#allocation3 + $0x42] sm:$0xf] }
 0x235   :  { %2397 = vst [vmem:[#allocation1 + $0x1] ss:$2 sm:$0xff] %v2321_v3  ;;  %1991 = vmatmul.f32.gmra.mxu3 %v4401_v42  ;;  %v3569_v42 = vunpack.c.h.bf16 %v3567_v20  ;;  %v3609_v3 = vunpack.c.h.bf16 %v3730_v59  ;;  %v2326_v55 = vld [vmem:[#allocation3 + $0x8a] sm:$0xf]  ;;  %v2772_v20 = vld [vmem:[#allocation3 + $0x12] sm:$0xf] }
 0x236   :  { %v4427_v58 = vld.sshfl [vmem:[#allocation1 + $0x10] sm:$0xff pattern:$0x75316420]  ;;  %2885 = vmatpush.msra.mxu1 %v3612_v46  ;;  %v2773_v28 = vld [vmem:[#allocation3 + $0x1a] sm:$0xf] }
 0x237   :  { %2381 = vst [vmem:[#allocation1 + $0x10] ss:$2 sm:$0xff] %v2314_v26  ;;  %2737 = vmatpush.msrb.mxu0 %v3569_v42  ;;  %v2479_v4 = vld [vmem:[#allocation3 + $0x88] sm:$0xf]  ;;  %v2630_v42 = vld [vmem:[#allocation3 + $0x79] sm:$0xf] }
 0x238   :  { %v2241_v45 = vld.sshfl [vmem:[#allocation1 + $0x20] sm:$0xff pattern:$0x75316420]  ;;  %2383 = vst [vmem:[#allocation1 + $0x11] ss:$2 sm:$0xff] %v2315_v32  ;;  %2886 = vmatpush.msra.mxu1 %v3609_v3 }
 0x239   :  { %2247 = vst [vmem:[#allocation1 + $0x20] ss:$2 sm:$0xff] %v2171_v10  ;;  %2285 = vmatmul.f32.gmra.mxu1 %v2241_v45  ;;  %2738 = vmatpush.msrb.mxu0 %v3568_v36  ;;  %v2620_v32 = vld [vmem:[#allocation3 + $0x19] sm:$0xf]  ;;  %v3605_v10 = vunpack.c.h.bf16 %v3729_v38  ;;  %v3604_v45 = vunpack.c.l.bf16 %v3729_v38  ;;  %v2473_v36 = vld [vmem:[#allocation3 + $0x48] sm:$0xf] }
 0x23a   :  { %2248 = vst [vmem:[#allocation1 + $0x21] ss:$2 sm:$0xff] %v2172_v50  ;;  %2138 = vmatmul.f32.gmra.mxu0 %v4399_v60  ;;  %v4439_v39 = vld.sshfl [vmem:[#allocation1 + $0x30] sm:$0xff pattern:$0x75316420]  ;;  %2887 = vmatpush.msra.mxu1 %v3608_v48 }
 0x23b   :  { %2236 = vst [vmem:[#allocation1 + $0x30] ss:$2 sm:$0xff] %v2165_v61  ;;  %v3736_v60 = vld [vmem:[#allocation10 + $0x8] sm:$0xff]   ;;  %v1733_v61 = vpop.f32.mrf.mxu1 }
 0x23c   :  { %v4432_v54 = vld.sshfl [vmem:[#allocation1] sm:$0xff pattern:$0x75316420]  ;;  %2238 = vst [vmem:[#allocation1 + $0x31] ss:$2 sm:$0xff] %v2166_v40  ;;  %v3637_v1 = vunpack.c.h.bf16 %v3736_v60  ;;  %v3636_v56 = vunpack.c.l.bf16 %v3736_v60  ;;  %2888 = vmatpush.msra.mxu1 %v3605_v10 }
 0x23d   :  { %2531 = vst [vmem:[#allocation1] ss:$2 sm:$0xff] %v2466_v30  ;;  %1994 = vmatmul.f32.gmra.mxu3 %v4422_v24  ;;  %v2629_v40 = vld [vmem:[#allocation3 + $0x71] sm:$0xf]  ;;  %v2780_v60 = vld [vmem:[#allocation3 + $0x62] sm:$0xf] }
 0x23e   :  { %2533 = vst [vmem:[#allocation1 + $0x1] ss:$2 sm:$0xff] %v2467_v17  ;;  %3032 = vmatpush.msra.mxu2 %v3637_v1  ;;  %2889 = vmatpush.msra.mxu1 %v3604_v45  ;;  %v3600_v17 = vunpack.c.l.bf16 %v3599_v25  ;;  %v2775_v1 = vld [vmem:[#allocation3 + $0x2a] sm:$0xf]  ;;  %v2783_v10 = vld [vmem:[#allocation3 + $0x7a] sm:$0xf] }
 0x23f   :  { %v2393_v5 = vld.sshfl [vmem:[#allocation1 + $0x10] sm:$0xff pattern:$0x75316420] }
 0x240   :  { %2398 = vst [vmem:[#allocation1 + $0x10] ss:$2 sm:$0xff] %v2322_v14  ;;  %2435 = vmatmul.f32.gmra.mxu2 %v2393_v5  ;;  %2890 = vmatpush.msra.mxu1 %v3601_v0  ;;  %v2621_v14 = vld [vmem:[#allocation3 + $0x21] sm:$0xf]  ;;  %v2626_v45 = vld [vmem:[#allocation3 + $0x49] sm:$0xf] }
 0x241   :  { %2399 = vst [vmem:[#allocation1 + $0x11] ss:$2 sm:$0xff] %v2323_v21  ;;  %v4436_v23 = vld.sshfl [vmem:[#allocation1 + $0x20] sm:$0xff pattern:$0x75316420]  ;;  %3033 = vmatpush.msra.mxu2 %v3636_v56 }
 0x242   :  { %2385 = vst [vmem:[#allocation1 + $0x20] ss:$2 sm:$0xff] %v2316_v47  ;;  %2141 = vmatmul.f32.gmra.mxu0 %v4410_v63  ;;  %v2470_v63 = vld [vmem:[#allocation3 + $0x30] sm:$0xf]  ;;  %v3631_v47 = vld [vmem:[#allocation10] sm:$0xff]   ;;  %2891 = vmatpush.msra.mxu1 %v3600_v17 }
 0x243   :  { %2387 = vst [vmem:[#allocation1 + $0x21] ss:$2 sm:$0xff] %v2317_v2  ;;  %v2242_v26 = vld.sshfl [vmem:[#allocation1 + $0x30] sm:$0xff pattern:$0x75316420]  ;;  %v1736_v49 = vpop.f32.mrf.mxu1  ;;  %v3632_v59 = vunpack.c.l.bf16 %v3631_v47 }
 0x244   :  { %2249 = vst [vmem:[#allocation1 + $0x30] ss:$2 sm:$0xff] %v2173_v44  ;;  %2288 = vmatmul.f32.gmra.mxu1 %v2242_v26  ;;  %v2622_v21 = vld [vmem:[#allocation3 + $0x29] sm:$0xf]  ;;  %v2327_v2 = vld [vmem:[#allocation3 + $0x92] sm:$0xf] }
 0x245   :  { %v2546_v9 = vld.sshfl [vmem:[#allocation1] sm:$0xff pattern:$0x75316420]  ;;  %2250 = vst [vmem:[#allocation1 + $0x31] ss:$2 sm:$0xff] %v2174_v37 }
 0x246   :  { %2550 = vst [vmem:[#allocation1] ss:$2 sm:$0xff] %v2474_v43  ;;  %2586 = vmatmul.f32.vlgmr.msrb.gmra.mxu3 %v2546_v9  ;;  %v2481_v44 = vld [vmem:[#allocation3 + $0x98] sm:$0xf]  ;;  %v2925_v26 = vld [vmem:[#allocation4] sm:$0xf] }
 0x247   :  { %2551 = vst [vmem:[#allocation1 + $0x1] ss:$2 sm:$0xff] %v2475_v34  ;;  %v2472_v34 = vld [vmem:[#allocation3 + $0x40] sm:$0xf]  ;;  %v2926_v37 = vld [vmem:[#allocation4 + $0x4] sm:$0xf] }
 0x248   :  { %v4441_v29 = vld.sshfl [vmem:[#allocation1 + $0x10] sm:$0xff pattern:$0x75316420]  ;;  %v2625_v56 = vld [vmem:[#allocation3 + $0x41] sm:$0xf] }
 0x249   :  { %2535 = vst [vmem:[#allocation1 + $0x10] ss:$2 sm:$0xff] %v2468_v18  ;;  %v2781_v18 = vld [vmem:[#allocation3 + $0x6a] sm:$0xf]  ;;  %v2633_v17 = vld [vmem:[#allocation3 + $0x91] sm:$0xf] }
 0x24a   :  { %v2394_v11 = vld.sshfl [vmem:[#allocation1 + $0x20] sm:$0xff pattern:$0x75316420]  ;;  %2537 = vst [vmem:[#allocation1 + $0x11] ss:$2 sm:$0xff] %v2469_v6  ;;  %2144 = vmatmul.f32.gmra.mxu0 %v4420_v31 }
 0x24b   :  { %2400 = vst [vmem:[#allocation1 + $0x20] ss:$2 sm:$0xff] %v2324_v41  ;;  %2438 = vmatmul.f32.gmra.mxu2 %v2394_v11  ;;  %v2631_v41 = vld [vmem:[#allocation3 + $0x81] sm:$0xf]  ;;  %v2480_v11 = vld [vmem:[#allocation3 + $0x90] sm:$0xf]  ;;  %v1739_v38 = vpop.f32.mrf.mxu1 }
 0x24c   :  { %2401 = vst [vmem:[#allocation1 + $0x21] ss:$2 sm:$0xff] %v2325_v57  ;;  %2291 = vmatmul.f32.gmra.mxu1 %v4415_v52  ;;  %v4451_v30 = vld.sshfl [vmem:[#allocation1 + $0x30] sm:$0xff pattern:$0x75316420]  ;;  %v3633_v52 = vunpack.c.h.bf16 %v3631_v47 }
 0x24d   :  { %2389 = vst [vmem:[#allocation1 + $0x30] ss:$2 sm:$0xff] %v2318_v15 }
 0x24e   :  { %v4445_v24 = vld.sshfl [vmem:[#allocation1] sm:$0xff pattern:$0x75316420]  ;;  %2391 = vst [vmem:[#allocation1 + $0x31] ss:$2 sm:$0xff] %v2319_v53  ;;  %3034 = vmatpush.msra.mxu2 %v3633_v52 }
 0x24f   :  { %2684 = vst [vmem:[#allocation1] ss:$2 sm:$0xff] %v2619_v7 }
 0x250   :  { %2686 = vst [vmem:[#allocation1 + $0x1] ss:$2 sm:$0xff] %v2620_v32  ;;  %3035 = vmatpush.msra.mxu2 %v3632_v59 }
 0x251   :  { %v2547_v62 = vld.sshfl [vmem:[#allocation1 + $0x10] sm:$0xff pattern:$0x75316420] }
 0x252   :  { %2552 = vst [vmem:[#allocation1 + $0x10] ss:$2 sm:$0xff] %v2476_v35  ;;  %2589 = vmatmul.f32.gmra.mxu3 %v2547_v62  ;;  %2147 = vmatmul.f32.gmra.mxu0 %v4439_v39  ;;  %v2623_v39 = vld [vmem:[#allocation3 + $0x31] sm:$0xf]  ;;  %v2777_v62 = vld [vmem:[#allocation3 + $0x3a] sm:$0xf] }
 0x253   :  { %2553 = vst [vmem:[#allocation1 + $0x11] ss:$2 sm:$0xff] %v2477_v51  ;;  %v4448_v50 = vld.sshfl [vmem:[#allocation1 + $0x20] sm:$0xff pattern:$0x75316420] }
 0x254   :  { %2539 = vst [vmem:[#allocation1 + $0x20] ss:$2 sm:$0xff] %v2470_v63  ;;  %2294 = vmatmul.f32.gmra.mxu1 %v4427_v58  ;;  %v2624_v58 = vld [vmem:[#allocation3 + $0x39] sm:$0xf]  ;;  %v2776_v63 = vld [vmem:[#allocation3 + $0x32] sm:$0xf] }
 0x255   :  { %2541 = vst [vmem:[#allocation1 + $0x21] ss:$2 sm:$0xff] %v2471_v12  ;;  %v2395_v33 = vld.sshfl [vmem:[#allocation1 + $0x30] sm:$0xff pattern:$0x75316420] }
 0x256   :  { %2402 = vst [vmem:[#allocation1 + $0x30] ss:$2 sm:$0xff] %v2326_v55  ;;  %2441 = vmatmul.f32.gmra.mxu2 %v2395_v33  ;;  %v2782_v35 = vld [vmem:[#allocation3 + $0x72] sm:$0xf]  ;;  %v2927_v12 = vld [vmem:[#allocation4 + $0x8] sm:$0xf] }
 0x257   :  { %v2699_v31 = vld.sshfl [vmem:[#allocation1] sm:$0xff pattern:$0x75316420]  ;;  %2403 = vst [vmem:[#allocation1 + $0x31] ss:$2 sm:$0xff] %v2327_v2 }
 0x258   :  { %2703 = vst [vmem:[#allocation1] ss:$2 sm:$0xff] %v2627_v13  ;;  %v2784_v13 = vld [vmem:[#allocation3 + $0x82] sm:$0xf]  ;;  %v2929_v55 = vld [vmem:[#allocation4 + $0x10] sm:$0xf] }
 0x259   :  { %2704 = vst [vmem:[#allocation1 + $0x1] ss:$2 sm:$0xff] %v2628_v8  ;;  %v2634_v8 = vld [vmem:[#allocation3 + $0x99] sm:$0xf]  ;;  %v2779_v2 = vld [vmem:[#allocation3 + $0x4a] sm:$0xf] }
 0x25a   :  { %v4453_v5 = vld.sshfl [vmem:[#allocation1 + $0x10] sm:$0xff pattern:$0x75316420]  ;;  %2739 = vmatmul.f32.vlgmr.msrb.gmra.mxu0 %v2699_v31 }
 0x25b   :  { %2688 = vst [vmem:[#allocation1 + $0x10] ss:$2 sm:$0xff] %v2621_v14  ;;  %v2785_v31 = vld [vmem:[#allocation3 + $0x8a] sm:$0xf] }
 0x25c   :  { %v2548_v22 = vld.sshfl [vmem:[#allocation1 + $0x20] sm:$0xff pattern:$0x75316420]  ;;  %2690 = vst [vmem:[#allocation1 + $0x11] ss:$2 sm:$0xff] %v2622_v21  ;;  %2297 = vmatmul.f32.gmra.mxu1 %v4436_v23 }
 0x25d   :  { %2554 = vst [vmem:[#allocation1 + $0x20] ss:$2 sm:$0xff] %v2478_v16  ;;  %2592 = vmatmul.f32.gmra.mxu3 %v2548_v22  ;;  %v2774_v23 = vld [vmem:[#allocation3 + $0x22] sm:$0xf] }
 0x25e   :  { %2555 = vst [vmem:[#allocation1 + $0x21] ss:$2 sm:$0xff] %v2479_v4  ;;  %2444 = vmatmul.f32.gmra.mxu2 %v4432_v54  ;;  %v4463_v27 = vld.sshfl [vmem:[#allocation1 + $0x30] sm:$0xff pattern:$0x75316420] }
 0x25f   :  { %2543 = vst [vmem:[#allocation1 + $0x30] ss:$2 sm:$0xff] %v2472_v34  ;;  %v2632_v54 = vld [vmem:[#allocation3 + $0x89] sm:$0xf]  ;;  %v2933_v16 = vld [vmem:[#allocation4 + $0x20] sm:$0xf] }
 0x260   :  { %v4457_v19 = vld.sshfl [vmem:[#allocation1] sm:$0xff pattern:$0x75316420]  ;;  %2545 = vst [vmem:[#allocation1 + $0x31] ss:$2 sm:$0xff] %v2473_v36 }
 0x261   :  { %2837 = vst [vmem:[#allocation1] ss:$2 sm:$0xff] %v2772_v20  ;;  %v2934_v22 = vld [vmem:[#allocation4 + $0x24] sm:$0xf]  ;;  %v2937_v36 = vld [vmem:[#allocation4 + $0x30] sm:$0xf] }
 0x262   :  { %2839 = vst [vmem:[#allocation1 + $0x1] ss:$2 sm:$0xff] %v2773_v28  ;;  %v2778_v20 = vld [vmem:[#allocation3 + $0x42] sm:$0xf] }
 0x263   :  { %v2700_v43 = vld.sshfl [vmem:[#allocation1 + $0x10] sm:$0xff pattern:$0x75316420] }
 0x264   :  { %2705 = vst [vmem:[#allocation1 + $0x10] ss:$2 sm:$0xff] %v2629_v40  ;;  %2742 = vmatmul.f32.gmra.mxu0 %v2700_v43  ;;  %2300 = vmatmul.f32.gmra.mxu1 %v4451_v30  ;;  %v4479_v30 = vpop.f32.mrf.mxu1  ;;  %v2935_v40 = vld [vmem:[#allocation4 + $0x28] sm:$0xf]  ;;  %v2936_v43 = vld [vmem:[#allocation4 + $0x2c] sm:$0xf] }
 0x265   :  { %2706 = vst [vmem:[#allocation1 + $0x11] ss:$2 sm:$0xff] %v2630_v42  ;;  %v4460_v9 = vld.sshfl [vmem:[#allocation1 + $0x20] sm:$0xff pattern:$0x75316420] }
 0x266   :  { %2692 = vst [vmem:[#allocation1 + $0x20] ss:$2 sm:$0xff] %v2623_v39  ;;  %2447 = vmatmul.f32.gmra.mxu2 %v4441_v29  ;;  %v2786_v42 = vld [vmem:[#allocation3 + $0x92] sm:$0xf] }
 0x267   :  { %2694 = vst [vmem:[#allocation1 + $0x21] ss:$2 sm:$0xff] %v2624_v58  ;;  %v2549_v7 = vld.sshfl [vmem:[#allocation1 + $0x30] sm:$0xff pattern:$0x75316420] }
 0x268   :  { %2556 = vst [vmem:[#allocation1 + $0x30] ss:$2 sm:$0xff] %v2480_v11  ;;  %2595 = vmatmul.f32.gmra.mxu3 %v2549_v7 }
 0x269   :  { %v2852_v46 = vld.sshfl [vmem:[#allocation1] sm:$0xff pattern:$0x75316420]  ;;  %2557 = vst [vmem:[#allocation1 + $0x31] ss:$2 sm:$0xff] %v2481_v44 }
 0x26a   :  { %2856 = vst [vmem:[#allocation1] ss:$2 sm:$0xff] %v2780_v60  ;;  %v2939_v44 = vld [vmem:[#allocation4 + $0x38] sm:$0xf] }
 0x26b   :  { %2857 = vst [vmem:[#allocation1 + $0x1] ss:$2 sm:$0xff] %v2781_v18  ;;  %v2931_v18 = vld [vmem:[#allocation4 + $0x18] sm:$0xf] }
 0x26c   :  { %v4465_v6 = vld.sshfl [vmem:[#allocation1 + $0x10] sm:$0xff pattern:$0x75316420]  ;;  %2892 = vmatmul.f32.vlgmr.msra.gmra.mxu1 %v2852_v46  ;;  %v1745_v52 = vpop.f32.mrf.mxu1 }
 0x26d   :  { %2841 = vst [vmem:[#allocation1 + $0x10] ss:$2 sm:$0xff] %v2774_v23 }
 0x26e   :  { %2843 = vst [vmem:[#allocation1 + $0x11] ss:$2 sm:$0xff] %v2775_v1  ;;  %v2701_v3 = vld.sshfl [vmem:[#allocation1 + $0x20] sm:$0xff pattern:$0x75316420]  ;;  %2450 = vmatmul.f32.gmra.mxu2 %v4448_v50 }
 0x26f   :  { %v1829_v57 = vpop.f32.mrf.mxu2  ;;  %2707 = vst [vmem:[#allocation1 + $0x20] ss:$2 sm:$0xff] %v2631_v41  ;;  %2745 = vmatmul.f32.gmra.mxu0 %v2701_v3  ;;  %v2928_v50 = vld [vmem:[#allocation4 + $0xc] sm:$0xf]  ;;  %v2932_v1 = vld [vmem:[#allocation4 + $0x1c] sm:$0xf] }
 0x270   :  { %v4469_v48 = vadd.f32 %v1829_v57, %v1733_v61  ;;  %2708 = vst [vmem:[#allocation1 + $0x21] ss:$2 sm:$0xff] %v2632_v54  ;;  %2598 = vmatmul.f32.gmra.mxu3 %v4445_v24  ;;  %v2561_v25 = vld.sshfl [vmem:[#allocation1 + $0x30] sm:$0xff pattern:$0x75316420] }
 0x271   :  { %2696 = vst [vmem:[#allocation1 + $0x30] ss:$2 sm:$0xff] %v2625_v56 }
 0x272   :  { %v4471_v32 = vld.sshfl [vmem:[#allocation1] sm:$0xff pattern:$0x75316420]  ;;  %2698 = vst [vmem:[#allocation1 + $0x31] ss:$2 sm:$0xff] %v2626_v45 }
 0x273   :  { %2973 = vst [vmem:[#allocation1] ss:$2 sm:$0xff] %v2925_v26  ;;  %v2940_v26 = vld [vmem:[#allocation4 + $0x3c] sm:$0xf] }
 0x274   :  { %2975 = vst [vmem:[#allocation1 + $0x1] ss:$2 sm:$0xff] %v2926_v37  ;;  %v1748_v58 = vpop.f32.mrf.mxu1 }
 0x275   :  { %v2853_v29 = vld.sshfl [vmem:[#allocation1 + $0x10] sm:$0xff pattern:$0x75316420] }
 0x276   :  { %2858 = vst [vmem:[#allocation1 + $0x10] ss:$2 sm:$0xff] %v2782_v35  ;;  %2895 = vmatmul.f32.gmra.mxu1 %v2853_v29  ;;  %2453 = vmatmul.f32.gmra.mxu2 %v4463_v27  ;;  %v2938_v27 = vld [vmem:[#allocation4 + $0x34] sm:$0xf] }
 0x277   :  { %v4474_v51 = vld.sshfl [vmem:[#allocation1 + $0x20] sm:$0xff pattern:$0x75316420]  ;;  %2859 = vst [vmem:[#allocation1 + $0x11] ss:$2 sm:$0xff] %v2783_v10 }
 0x278   :  { %2845 = vst [vmem:[#allocation1 + $0x20] ss:$2 sm:$0xff] %v2776_v63  ;;  %2601 = vmatmul.f32.gmra.mxu3 %v4453_v5  ;;  %v2930_v5 = vld [vmem:[#allocation4 + $0x14] sm:$0xf] }
 0x279   :  { %2847 = vst [vmem:[#allocation1 + $0x21] ss:$2 sm:$0xff] %v2777_v62  ;;  %v2702_v47 = vld.sshfl [vmem:[#allocation1 + $0x30] sm:$0xff pattern:$0x75316420] }
 0x27a   :  { %2709 = vst [vmem:[#allocation1 + $0x30] ss:$2 sm:$0xff] %v2633_v17  ;;  %2748 = vmatmul.f32.gmra.mxu0 %v2702_v47 }
 0x27b   :  { %v1832_v15 = vpop.f32.mrf.mxu2  ;;  %2710 = vst [vmem:[#allocation1 + $0x31] ss:$2 sm:$0xff] %v2634_v8  ;;  %v2988_v14 = vld.sshfl [vmem:[#allocation1] sm:$0xff pattern:$0x75316420] }
 0x27c   :  { %v4477_v0 = vadd.f32 %v1832_v15, %v1736_v49  ;;  %2992 = vst [vmem:[#allocation1] ss:$2 sm:$0xff] %v2933_v16  ;;  %v1751_v49 = vpop.f32.mrf.mxu1 }
 0x27d   :  { %2993 = vst [vmem:[#allocation1 + $0x1] ss:$2 sm:$0xff] %v2934_v22 }
 0x27e   :  { %v4481_v53 = vld.sshfl [vmem:[#allocation1 + $0x10] sm:$0xff pattern:$0x75316420]  ;;  %3190 = vmatmul.msk.f32.vlgmr.msra.gmra.mxu2 %vm280_vm2, %v2988_v14 }
 0x27f   :  { %2977 = vst [vmem:[#allocation1 + $0x10] ss:$2 sm:$0xff] %v2927_v12 }
 0x280   :  { %v2854_v24 = vld.sshfl [vmem:[#allocation1 + $0x20] sm:$0xff pattern:$0x75316420]  ;;  %2979 = vst [vmem:[#allocation1 + $0x11] ss:$2 sm:$0xff] %v2928_v50  ;;  %2604 = vmatmul.f32.gmra.mxu3 %v4460_v9 }
 0x281   :  { %2860 = vst [vmem:[#allocation1 + $0x20] ss:$2 sm:$0xff] %v2784_v13  ;;  %2898 = vmatmul.f32.gmra.mxu1 %v2854_v24  ;;  %v4490_v39 = vpop.f32.mrf.mxu3  ;;  %v2787_v9 = vld [vmem:[#allocation3 + $0x9a] sm:$0xf] }
 0x282   :  { %2861 = vst [vmem:[#allocation1 + $0x21] ss:$2 sm:$0xff] %v2785_v31  ;;  %v2714_v61 = vld.sshfl [vmem:[#allocation1 + $0x30] sm:$0xff pattern:$0x75316420]  ;;  %2751 = vmatmul.f32.gmra.mxu0 %v4457_v19 }
 0x283   :  { %2849 = vst [vmem:[#allocation1 + $0x30] ss:$2 sm:$0xff] %v2778_v20 }
 0x284   :  { %2851 = vst [vmem:[#allocation1 + $0x31] ss:$2 sm:$0xff] %v2779_v2  ;;  %v1754_v3 = vpop.f32.mrf.mxu1 }
 0x285   :  { %v1835_v21 = vpop.f32.mrf.mxu2 }
 0x286   :  { %v4486_v4 = vadd.f32 %v1835_v21, %v1739_v38  ;;  %v3000_v38 = vld.sshfl [vmem:[#allocation1] sm:$0xff pattern:$0x75316420] }
 0x287   :  { %v2989_v28 = vld.sshfl [vmem:[#allocation1 + $0x10] sm:$0xff pattern:$0x75316420] }
 0x288   :  { %3191 = vmatmul.msk.f32.gmra.mxu2 %vm280_vm2, %v2989_v28  ;;  %2994 = vst [vmem:[#allocation1 + $0x10] ss:$2 sm:$0xff] %v2935_v40  ;;  %2607 = vmatmul.f32.gmra.mxu3 %v2561_v25 }
 0x289   :  { %v2866_v33 = vld.sshfl [vmem:[#allocation1 + $0x20] sm:$0xff pattern:$0x75316420]  ;;  %2995 = vst [vmem:[#allocation1 + $0x11] ss:$2 sm:$0xff] %v2936_v43 }
 0x28a   :  { %2981 = vst [vmem:[#allocation1 + $0x20] ss:$2 sm:$0xff] %v2929_v55  ;;  %2754 = vmatmul.f32.gmra.mxu0 %v4465_v6 }
 0x28b   :  { %2983 = vst [vmem:[#allocation1 + $0x21] ss:$2 sm:$0xff] %v2930_v5  ;;  %v2855_v34 = vld.sshfl [vmem:[#allocation1 + $0x30] sm:$0xff pattern:$0x75316420] }
 0x28c   :  { %2862 = vst [vmem:[#allocation1 + $0x30] ss:$2 sm:$0xff] %v2786_v42  ;;  %2901 = vmatmul.f32.gmra.mxu1 %v2855_v34 }
 0x28d   :  { %2863 = vst [vmem:[#allocation1 + $0x31] ss:$2 sm:$0xff] %v2787_v9  ;;  %v4495_v60 = vpop.f32.mrf.mxu3  ;;  %v1838_v46 = vpop.f32.mrf.mxu2 }
 0x28e   :  { %v4497_v59 = vpop.f32.mrf.mxu0  ;;  %v1839_v23 = vadd.f32 %v1838_v46, %v4479_v30 }
 0x290   :  { %v3001_v56 = vld.sshfl [vmem:[#allocation1 + $0x10] sm:$0xff pattern:$0x75316420] }
 0x292   :  { %v2990_v19 = vld.sshfl [vmem:[#allocation1 + $0x20] sm:$0xff pattern:$0x75316420]  ;;  %2757 = vmatmul.f32.gmra.mxu0 %v4474_v51 }
 0x293   :  { %3192 = vmatmul.msk.f32.gmra.mxu2 %vm280_vm2, %v2990_v19  ;;  %2996 = vst [vmem:[#allocation1 + $0x20] ss:$2 sm:$0xff] %v2937_v36 }
 0x294   :  { %2997 = vst [vmem:[#allocation1 + $0x21] ss:$2 sm:$0xff] %v2938_v27  ;;  %v2867_v6 = vld.sshfl [vmem:[#allocation1 + $0x30] sm:$0xff pattern:$0x75316420]  ;;  %2904 = vmatmul.f32.gmra.mxu1 %v4471_v32 }
 0x295   :  { %2985 = vst [vmem:[#allocation1 + $0x30] ss:$2 sm:$0xff] %v2931_v18  ;;  %v1841_v41 = vpop.f32.mrf.mxu2 }
 0x296   :  { %2987 = vst [vmem:[#allocation1 + $0x31] ss:$2 sm:$0xff] %v2932_v1  ;;  %v1842_v11 = vadd.f32 %v1841_v41, %v1745_v52 }
 0x298   :  { %v4502_v54 = vpop.f32.mrf.mxu3 }
 0x299   :  { %v4504_v57 = vpop.f32.mrf.mxu0 }
 0x29a   :  { %2760 = vmatmul.f32.gmra.mxu0 %v2714_v61 }
 0x29b   :  { %v3002_v13 = vld.sshfl [vmem:[#allocation1 + $0x20] sm:$0xff pattern:$0x75316420] }
 0x29c   :  { %2907 = vmatmul.f32.gmra.mxu1 %v4481_v53 }
 0x29d   :  { %v2991_v7 = vld.sshfl [vmem:[#allocation1 + $0x30] sm:$0xff pattern:$0x75316420]  ;;  %v1844_v37 = vpop.f32.mrf.mxu2 }
 0x29e   :  { %3193 = vmatmul.msk.f32.gmra.mxu2 %vm280_vm2, %v2991_v7  ;;  %2998 = vst [vmem:[#allocation1 + $0x30] ss:$2 sm:$0xff] %v2939_v44  ;;  %v1845_v32 = vadd.f32 %v1844_v37, %v1748_v58  ;;  %v1998_v37 = vadd.f32 %v4490_v39, %v4469_v48  ;;  %v4533_v39 = vld [vmem:[%s4559_s5] ss:$0 sm:$0xff]  ;;  %s3910_s5 = smov [#allocation12]  }
 0x29f   :  { %2999 = vst [vmem:[#allocation1 + $0x31] ss:$2 sm:$0xff] %v2940_v26  ;;  %v2280_v35 = vpop.f32.mrf.mxu1  ;;  %s3101_s18 = sshll.u32 %s3910_s5, 4  ;;  %s3102_s18 = int_to_ptr.vmem [resolvable:$true] %s3101_s18 }
 0x2a0   :  { %v1983_v63 = vpop.f32.mrf.mxu3 }
 0x2a1   :  { %v2001_v29 = vadd.f32 %v1983_v63, %v1839_v23 }
 0x2a4   :  { %2910 = vmatmul.f32.gmra.mxu1 %v2866_v33  ;;  %v4508_v62 = vpop.f32.mrf.mxu0 }
 0x2a5   :  { %v1847_v10 = vpop.f32.mrf.mxu2 }
 0x2a6   :  { %3194 = vmatmul.msk.f32.gmra.mxu2 %vm280_vm2, %v3000_v38  ;;  %v1848_v51 = vadd.f32 %v1847_v10, %v1751_v49  ;;  %v3003_v14 = vld.sshfl [vmem:[#allocation1 + $0x30] sm:$0xff pattern:$0x75316420]  ;;  %v2151_v38 = vadd.f32 %v4497_v59, %v1998_v37 }
 0x2a8   :  { %v1986_v45 = vpop.f32.mrf.mxu3 }
 0x2a9   :  { %v2002_v25 = vadd.f32 %v1986_v45, %v1842_v11  ;;  %v1999_v45 = vadd.f32 %v4495_v60, %v4477_v0  ;;  %v2000_v0 = vadd.f32 %v4502_v54, %v4486_v4 }
 0x2ab   :  { %v2283_v15 = vpop.f32.mrf.mxu1 }
 0x2ac   :  { %2913 = vmatmul.f32.gmra.mxu1 %v2867_v6 }
 0x2ad   :  { %v1850_v50 = vpop.f32.mrf.mxu2 }
 0x2ae   :  { %3195 = vmatmul.msk.f32.gmra.mxu2 %vm280_vm2, %v3001_v56  ;;  %v1851_v53 = vadd.f32 %v1850_v50, %v1754_v3 }
 0x2af   :  { %v2136_v12 = vpop.f32.mrf.mxu0 }
 0x2b0   :  { %v2154_v30 = vadd.f32 %v2136_v12, %v2001_v29  ;;  %v1989_v17 = vpop.f32.mrf.mxu3  ;;  %v2304_v29 = vadd.f32 %v2280_v35, %v2151_v38 }
 0x2b1   :  { %v2003_v24 = vadd.f32 %v1989_v17, %v1845_v32 }
 0x2b6   :  { %3196 = vmatmul.msk.f32.gmra.mxu2 %vm280_vm2, %v3002_v13  ;;  %v4513_v8 = vpop.f32.mrf.mxu1 }
 0x2b7   :  { %v2139_v31 = vpop.f32.mrf.mxu0  ;;  %v2433_v21 = vpop.f32.mrf.mxu2 }
 0x2b8   :  { %v2155_v47 = vadd.f32 %v2139_v31, %v2002_v25  ;;  %v1992_v52 = vpop.f32.mrf.mxu3 }
 0x2b9   :  { %v2004_v16 = vadd.f32 %v1992_v52, %v1848_v51  ;;  %v2457_v51 = vadd.f32 %v2433_v21, %v2304_v29 }
 0x2be   :  { %3197 = vmatmul.msk.f32.gmra.mxu2 %vm280_vm2, %v3003_v14 }
 0x2bf   :  { %v2142_v22 = vpop.f32.mrf.mxu0 }
 0x2c0   :  { %v2156_v55 = vadd.f32 %v2142_v22, %v2003_v24  ;;  %v1995_v20 = vpop.f32.mrf.mxu3 }
 0x2c1   :  { %v2289_v5 = vpop.f32.mrf.mxu1  ;;  %v2005_v2 = vadd.f32 %v1995_v20, %v1851_v53 }
 0x2c2   :  { %v2307_v33 = vadd.f32 %v2289_v5, %v2154_v30  ;;  %v2152_v30 = vadd.f32 %v4504_v57, %v1999_v45  ;;  %v2153_v57 = vadd.f32 %v4508_v62, %v2000_v0 }
 0x2c3   :  { %v2436_v61 = vpop.f32.mrf.mxu2 }
 0x2c4   :  { %v2305_v13 = vadd.f32 %v2283_v15, %v2152_v30  ;;  %v2306_v52 = vadd.f32 %v4513_v8, %v2153_v57 }
 0x2c6   :  { %v2458_v17 = vadd.f32 %v2436_v61, %v2305_v13 }
 0x2c7   :  { %v2145_v28 = vpop.f32.mrf.mxu0 }
 0x2c8   :  { %v2157_v40 = vadd.f32 %v2145_v28, %v2004_v16 }
 0x2c9   :  { %v2292_v43 = vpop.f32.mrf.mxu1  ;;  %v2587_v7 = vpop.f32.mrf.mxu3 }
 0x2ca   :  { %v2308_v58 = vadd.f32 %v2292_v43, %v2155_v47  ;;  %v2611_v25 = vadd.f32 %v2587_v7, %v2457_v51 }
 0x2ce   :  { %v2439_v42 = vpop.f32.mrf.mxu2 }
 0x2cf   :  { %v2148_v9 = vpop.f32.mrf.mxu0 }
 0x2d0   :  { %v2158_v34 = vadd.f32 %v2148_v9, %v2005_v2 }
 0x2d1   :  { %v2295_v19 = vpop.f32.mrf.mxu1 }
 0x2d2   :  { %v2309_v36 = vadd.f32 %v2295_v19, %v2156_v55  ;;  %v2459_v55 = vadd.f32 %v2439_v42, %v2306_v52 }
 0x2d5   :  { %v2590_v12 = vpop.f32.mrf.mxu3 }
 0x2d6   :  { %v2612_v60 = vadd.f32 %v2590_v12, %v2458_v17 }
 0x2d7   :  { %v2740_v32 = vpop.f32.mrf.mxu0 }
 0x2d8   :  { %v2764_v50 = vadd.f32 %v2740_v32, %v2611_v25 }
 0x2d9   :  { %v2442_v27 = vpop.f32.mrf.mxu2  ;;  %v2298_v49 = vpop.f32.mrf.mxu1 }
 0x2da   :  { %v2460_v46 = vadd.f32 %v2442_v27, %v2307_v33  ;;  %v2310_v18 = vadd.f32 %v2298_v49, %v2157_v40 }
 0x2e0   :  { %v2593_v14 = vpop.f32.mrf.mxu3 }
 0x2e1   :  { %v2445_v23 = vpop.f32.mrf.mxu2  ;;  %v2301_v1 = vpop.f32.mrf.mxu1  ;;  %v2613_v20 = vadd.f32 %v2593_v14, %v2459_v55 }
 0x2e2   :  { %v4516_v6 = vadd.f32 %v2445_v23, %v2308_v58  ;;  %v2311_v41 = vadd.f32 %v2301_v1, %v2158_v34  ;;  %v2743_v53 = vpop.f32.mrf.mxu0 }
 0x2e3   :  { %v2765_v47 = vadd.f32 %v2743_v53, %v2612_v60 }
 0x2e9   :  { %v2448_v11 = vpop.f32.mrf.mxu2  ;;  %v2893_v63 = vpop.f32.mrf.mxu1 }
 0x2ea   :  { %v4518_v3 = vadd.f32 %v2448_v11, %v2309_v36  ;;  %v2917_v48 = vadd.f32 %v2893_v63, %v2764_v50 }
 0x2eb   :  { %v2596_v62 = vpop.f32.mrf.mxu3 }
 0x2ec   :  { %v2746_v16 = vpop.f32.mrf.mxu0  ;;  %v2614_v42 = vadd.f32 %v2596_v62, %v2460_v46 }
 0x2ed   :  { %v2766_v54 = vadd.f32 %v2746_v16, %v2613_v20 }
 0x2f1   :  { %v2451_v44 = vpop.f32.mrf.mxu2 }
 0x2f2   :  { %v4520_v26 = vadd.f32 %v2451_v44, %v2310_v18 }
 0x2f3   :  { %v2896_v59 = vpop.f32.mrf.mxu1  ;;  %v2599_v34 = vpop.f32.mrf.mxu3 }
 0x2f4   :  { %v2918_v21 = vadd.f32 %v2896_v59, %v2765_v47  ;;  %v2615_v1 = vadd.f32 %v2599_v34, %v4516_v6 }
 0x2f7   :  { %v2749_v43 = vpop.f32.mrf.mxu0 }
 0x2f8   :  { %v2767_v36 = vadd.f32 %v2749_v43, %v2614_v42 }
 0x2f9   :  { %v2454_v10 = vpop.f32.mrf.mxu2 }
 0x2fa   :  { %v4525_v56 = vadd.f32 %v2454_v10, %v2311_v41 }
 0x2fb   :  { %v2602_v11 = vpop.f32.mrf.mxu3 }
 0x2fc   :  { %v2616_v46 = vadd.f32 %v2602_v11, %v4518_v3 }
 0x2fe   :  { %v2899_v33 = vpop.f32.mrf.mxu1 }
 0x2ff   :  { %v2919_v61 = vadd.f32 %v2899_v33, %v2766_v54  ;;  %v2752_v19 = vpop.f32.mrf.mxu0 }
 0x300   :  { %v2768_v44 = vadd.f32 %v2752_v19, %v2615_v1 }
 0x301   :  { %v3037_v35 = vpop.f32.mrf.mxu2 }
 0x302   :  { %v3061_v24 = vadd.f32 %v3037_v35, %v2917_v48 }
 0x303   :  { %v2605_v25 = vpop.f32.mrf.mxu3 }
 0x304   :  { %v3073_v31 = vadd.f32 %v4533_v39, %v3061_v24  ;;  %v2617_v13 = vadd.f32 %v2605_v25, %v4520_v26 }
 0x306   :  { %v3081_v15 = vmax.f32 %v3073_v31, 0.0 }
 0x307   :  { %v2755_v37 = vpop.f32.mrf.mxu0 }
 0x308   :  { %3089 = vst [vmem:[#allocation12] sm:$0xff] %v3081_v15  ;;  %v2769_v51 = vadd.f32 %v2755_v37, %v2616_v46 }
 0x309   :  { %v2902_v58 = vpop.f32.mrf.mxu1 }
 0x30a   :  { %v2920_v49 = vadd.f32 %v2902_v58, %v2767_v36 }
 0x30b   :  { %v3040_v22 = vpop.f32.mrf.mxu2  ;;  %v2608_v3 = vpop.f32.mrf.mxu3 }
 0x30c   :  { %v3062_v5 = vadd.f32 %v3040_v22, %v2918_v21  ;;  %v2618_v31 = vadd.f32 %v2608_v3, %v4525_v56 }
 0x30e   :  { %v3074_v4 = vadd.f32 %v4533_v39, %v3062_v5 }
 0x30f   :  { %v2758_v6 = vpop.f32.mrf.mxu0 }
 0x310   :  { %v3082_v2 = vmax.f32 %v3074_v4, 0.0  ;;  %v2770_v59 = vadd.f32 %v2758_v6, %v2617_v13 }
 0x311   :  { %v2905_v27 = vpop.f32.mrf.mxu1 }
 0x312   :  { %3090 = vst [vmem:[#allocation12 + $0x8] sm:$0xff] %v3082_v2  ;;  %v2921_v32 = vadd.f32 %v2905_v27, %v2768_v44 }
 0x316   :  { %v3043_v28 = vpop.f32.mrf.mxu2 }
 0x317   :  { %v3063_v40 = vadd.f32 %v3043_v28, %v2919_v61  ;;  %v2761_v60 = vpop.f32.mrf.mxu0 }
 0x318   :  { %v2771_v15 = vadd.f32 %v2761_v60, %v2618_v31 }
 0x319   :  { %v3075_v8 = vadd.f32 %v4533_v39, %v3063_v40  ;;  %v2908_v38 = vpop.f32.mrf.mxu1 }
 0x31a   :  { %v2922_v12 = vadd.f32 %v2908_v38, %v2769_v51 }
 0x31b   :  { %v3083_v9 = vmax.f32 %v3075_v8, 0.0 }
 0x31d   :  { %3091 = vst [vmem:[#allocation12 + $0x10] sm:$0xff] %v3083_v9 }
 0x321   :  { %v3046_v18 = vpop.f32.mrf.mxu2  ;;  %v2911_v53 = vpop.f32.mrf.mxu1 }
 0x322   :  { %v3064_v23 = vadd.f32 %v3046_v18, %v2920_v49  ;;  %v2923_v17 = vadd.f32 %v2911_v53, %v2770_v59 }
 0x324   :  { %v3076_v41 = vadd.f32 %v4533_v39, %v3064_v23 }
 0x326   :  { %v3084_v7 = vmax.f32 %v3076_v41, 0.0 }
 0x328   :  { %3092 = vst [vmem:[#allocation12 + $0x18] sm:$0xff] %v3084_v7 }
 0x329   :  { %v3049_v63 = vpop.f32.mrf.mxu2  ;;  %v2914_v47 = vpop.f32.mrf.mxu1 }
 0x32a   :  { %v3065_v29 = vadd.f32 %v3049_v63, %v2921_v32  ;;  %v2924_v52 = vadd.f32 %v2914_v47, %v2771_v15 }
 0x32c   :  { %v3077_v10 = vadd.f32 %v4533_v39, %v3065_v29 }
 0x32e   :  { %v3085_v45 = vmax.f32 %v3077_v10, 0.0 }
 0x330   :  { %3093 = vst [vmem:[#allocation12 + $0x20] sm:$0xff] %v3085_v45 }
 0x331   :  { %v3052_v30 = vpop.f32.mrf.mxu2 }
 0x332   :  { %v3066_v50 = vadd.f32 %v3052_v30, %v2922_v12 }
 0x334   :  { %v3078_v48 = vadd.f32 %v4533_v39, %v3066_v50 }
 0x336   :  { %v3086_v35 = vmax.f32 %v3078_v48, 0.0 }
 0x338   :  { %3094 = vst [vmem:[#allocation12 + $0x28] sm:$0xff] %v3086_v35 }
 0x339   :  { %v3055_v24 = vpop.f32.mrf.mxu2 }
 0x33a   :  { %v3067_v0 = vadd.f32 %v3055_v24, %v2923_v17 }
 0x33c   :  { %v3079_v57 = vadd.f32 %v4533_v39, %v3067_v0 }
 0x33e   :  { %v3087_v14 = vmax.f32 %v3079_v57, 0.0 }
 0x340   :  { %3095 = vst [vmem:[#allocation12 + $0x30] sm:$0xff] %v3087_v14 }
 0x341   :  { %v3058_v26 = vpop.f32.mrf.mxu2 }
 0x342   :  { %v3068_v21 = vadd.f32 %v3058_v26, %v2924_v52 }
 0x344   :  { %v3080_v16 = vadd.f32 %v4533_v39, %v3068_v21 }
 0x346   :  { %v3088_v56 = vmax.f32 %v3080_v16, 0.0 }
 0x348   :  { %3096 = vst [vmem:[#allocation12 + $0x38] sm:$0xff] %v3088_v56 }
 0x349   :  { %3109 = dma.vmem_to_hbm [thread:$0]  %s3102_s18, 1024, %s3104_s21, [#allocation6], %s3911_s22, %s3911_s22, %s3912_s23  }
 0x34a   :  { %3901 = dma.done.wait [#allocation6], 1024  }
 0x34b   :  { %3902 = vsyncadd [#allocation6], 4294966272 }
 0x34c   :  { %3114 = vsyncpa [#allocation5], 1 }
 0x34d   :  { %3115 = vsyncpa [#allocation8], 1 }
 0x34e   :  { %3116 = vsyncpa [#allocation11], 1 }
 0x34f   :  { %3117 = vsyncpa [#allocation6], 1 }

</bundles_post_ra>
